<compile_context>
chip_gen: v6e
topology: v6e:2x2x1
jax: 0.10.0
libtpu: 0.0.40
codegen_flags: <defaults>
</compile_context>

<pallas_src>
import functools
import random

import jax
import jax.numpy as jnp
from jax.experimental import pallas as pl
from jax.experimental.pallas import tpu as pltpu


def _round_up(v, m):
    return ((v + m - 1) // m) * m


# -----------------------------------------------------------------------------
# Kernel 1: encoder conv-as-matmul (+bias, ReLU), bf16 output, row-tiled.
# -----------------------------------------------------------------------------
def _encoder_kernel(a_ref, w_ref, b_ref, o_ref):
    acc = jnp.dot(a_ref[...], w_ref[...], preferred_element_type=jnp.float32)
    acc = jnp.maximum(acc + b_ref[...], 0.0)
    o_ref[...] = acc.astype(o_ref.dtype)          # bf16 store (halves HBM write)


def encoder_matmul(frames, w, b, *, tile_m=512):
    # frames: (M, K) f32 -> (M, D) bf16,  relu(frames @ w + b)
    M, K = frames.shape
    D = w.shape[1]
    tile_m = min(tile_m, _round_up(M, 16))        # bf16 sublane tiling = 16
    Mp = _round_up(M, tile_m)
    if Mp != M:
        frames = jnp.pad(frames, ((0, Mp - M), (0, 0)))
    out = pl.pallas_call(
        _encoder_kernel,
        out_shape=jax.ShapeDtypeStruct((Mp, D), jnp.bfloat16),
        grid=(Mp // tile_m,),
        in_specs=[
            pl.BlockSpec((tile_m, K), lambda i: (i, 0)),
            pl.BlockSpec((K, D), lambda i: (0, 0)),
            pl.BlockSpec((1, D), lambda i: (0, 0)),
        ],
        out_specs=pl.BlockSpec((tile_m, D), lambda i: (i, 0)),
        compiler_params=pltpu.CompilerParams(
            dimension_semantics=("parallel",)),   # shard tiles across TCs on v7x
    )(frames.astype(jnp.bfloat16), w.astype(jnp.bfloat16),
      jnp.asarray(b, jnp.float32).reshape(1, D))
    return out[:M]


# -----------------------------------------------------------------------------
# Kernel 2: GRU recurrence with the input projection fused in.
#   grid over time chunks ("arbitrary"); h carried in a VMEM scratch.
#   Per chunk: one MXU matmul gi = z_chunk @ Wih + bih, then an unrolled
#   serial loop over the chunk's timesteps.  Steps beyond t_samples are
#   masked so one compiled kernel serves every t_samples value.
# -----------------------------------------------------------------------------
def _gru_kernel(ts_ref, z_ref, h0_ref, wih_ref, bih_ref, whh_ref, bhh_ref,
                h_out_ref, h_sc, *, t_chunk, batch, hidden_dim):
    c = pl.program_id(0)
    t0 = c * t_chunk
    ts = ts_ref[0]
    B, H = batch, hidden_dim

    @pl.when(c == 0)
    def _():
        h_sc[...] = h0_ref[...]

    @pl.when(t0 <= ts)                 # skip compute for chunks past t_samples
    def _():
        # Fused input projection for the whole chunk (single MXU matmul); the
        # serial recurrence below owns the critical path, so this is ~free.
        gi = jnp.dot(z_ref[...], wih_ref[...],
                     preferred_element_type=jnp.float32) + bih_ref[...]
        whh = whh_ref[...]
        bhh = bhh_ref[...]
        h = h_sc[...]
        for i in range(t_chunk):                       # fully unrolled, static slices
            g = gi[i * B:(i + 1) * B, :]
            gh = jnp.dot(h.astype(jnp.bfloat16), whh,
                         preferred_element_type=jnp.float32) + bhh
            r = jax.nn.sigmoid(g[:, :H] + gh[:, :H])
            zg = jax.nn.sigmoid(g[:, H:2 * H] + gh[:, H:2 * H])
            n = jnp.tanh(g[:, 2 * H:] + r * gh[:, 2 * H:])
            h_new = (1.0 - zg) * n + zg * h
            h = jnp.where(t0 + i <= ts, h_new, h)      # run exactly t_samples+1 steps
        h_sc[...] = h

    @pl.when(c == pl.num_programs(0) - 1)
    def _():
        h_out_ref[...] = h_sc[...]


def gru_forward(z2d, t_pad, ts_arr, h0, wih_t, bih, whh_t, bhh, *, t_chunk):
    # z2d: (T_pad*B, D) bf16 time-major (row = t*B + b); h0: (B, H) -> c_t (B, H)
    M, D = z2d.shape
    B, H = h0.shape
    n_chunks = t_pad // t_chunk
    kernel = functools.partial(_gru_kernel, t_chunk=t_chunk, batch=B,
                               hidden_dim=H)
    return pl.pallas_call(
        kernel,
        out_shape=jax.ShapeDtypeStruct((B, H), jnp.float32),
        grid_spec=pltpu.PrefetchScalarGridSpec(
            num_scalar_prefetch=1,
            grid=(n_chunks,),
            in_specs=[
                pl.BlockSpec((t_chunk * B, D), lambda c, ts: (c, 0)),   # z chunk
                pl.BlockSpec((B, H), lambda c, ts: (0, 0)),             # h0
                pl.BlockSpec((D, 3 * H), lambda c, ts: (0, 0)),         # Wih^T
                pl.BlockSpec((1, 3 * H), lambda c, ts: (0, 0)),         # bih
                pl.BlockSpec((H, 3 * H), lambda c, ts: (0, 0)),         # Whh^T
                pl.BlockSpec((1, 3 * H), lambda c, ts: (0, 0)),         # bhh
            ],
            out_specs=pl.BlockSpec((B, H), lambda c, ts: (0, 0)),
            scratch_shapes=[pltpu.VMEM((B, H), jnp.float32)],
        ),
        compiler_params=pltpu.CompilerParams(
            dimension_semantics=("arbitrary",)),       # sequential carry over chunks
    )(ts_arr, z2d, h0.astype(jnp.float32),
      wih_t.astype(jnp.bfloat16), jnp.asarray(bih, jnp.float32).reshape(1, 3 * H),
      whh_t.astype(jnp.bfloat16), jnp.asarray(bhh, jnp.float32).reshape(1, 3 * H))


# -----------------------------------------------------------------------------
# Kernel 3: fused CPC head, grid over prediction steps (parallel).
#   per step i: enc = softmax(z[t_samples+1+i])    (z row picked via scalar-
#               prefetch index_map — dynamic offset, no recompile)
#               pred = softmax(c_t @ Wk_i + b_i)
#               prob[i] = enc @ pred^T   (bf16 operands, f32 accumulation)
# -----------------------------------------------------------------------------
def _softmax_last(x):
    m = jnp.max(x, axis=-1, keepdims=True)
    e = jnp.exp(x - m)
    return e * pl.reciprocal(jnp.sum(e, axis=-1, keepdims=True), approx=True)


def _cpc_head_kernel(ts_ref, z_ref, ct_ref, wk_ref, bk_ref, prob_ref):
    del ts_ref  # consumed by the index_maps only
    enc = _softmax_last(z_ref[0].astype(jnp.float32))                   # (B, D)
    logits = jnp.dot(ct_ref[...], wk_ref[0],
                     preferred_element_type=jnp.float32) + bk_ref[0]    # (B, D)
    pred = _softmax_last(logits)
    prob_ref[0] = jax.lax.dot_general(
        enc.astype(jnp.bfloat16), pred.astype(jnp.bfloat16),
        (((1,), (1,)), ((), ())), preferred_element_type=jnp.float32)   # (B, B)


def cpc_head(z3d, ts_arr, c_t, wk_t, bk):
    # z3d: (T_pad, B, D) bf16; c_t: (B, H); wk_t: (n_steps, H, D); bk: (n_steps, D)
    T_pad, B, D = z3d.shape
    n_steps, H, _ = wk_t.shape
    return pl.pallas_call(
        _cpc_head_kernel,
        out_shape=jax.ShapeDtypeStruct((n_steps, B, B), jnp.float32),
        grid_spec=pltpu.PrefetchScalarGridSpec(
            num_scalar_prefetch=1,
            grid=(n_steps,),
            in_specs=[
                pl.BlockSpec((1, B, D), lambda i, ts: (ts[0] + 1 + i, 0, 0)),
                pl.BlockSpec((B, H), lambda i, ts: (0, 0)),
                pl.BlockSpec((1, H, D), lambda i, ts: (i, 0, 0)),
                pl.BlockSpec((1, 1, D), lambda i, ts: (i, 0, 0)),
            ],
            out_specs=pl.BlockSpec((1, B, B), lambda i, ts: (i, 0, 0)),
        ),
        compiler_params=pltpu.CompilerParams(
            dimension_semantics=("parallel",)),        # v7x: both TCs get steps
    )(ts_arr, z3d, c_t.astype(jnp.bfloat16),
      wk_t.astype(jnp.bfloat16), bk.reshape(n_steps, 1, D).astype(jnp.float32))


# -----------------------------------------------------------------------------
# Full CPC_Model.forward — jitted once; t_samples / neg_idx are traced inputs.
# -----------------------------------------------------------------------------
def make_cpc_forward(cfg):
    D, H = cfg["d_input"], cfg["d_coding"]
    K, S = cfg["kernel_size"], cfg["stride"]
    n_steps = cfg["n_steps"]
    t_chunk = cfg["t_chunk"]

    def forward(params, x, len_x, hidden, t_samples, neg_idx):
        del len_x                                       # synthetic encoder: full length
        B, L = x.shape
        L_z = L // S - 1
        T_pad = _round_up(L_z, t_chunk)

        # ---- encoder: strided Conv1d(1->D, K=2S, S) + ReLU as frames @ W ----
        # frames built from two phase-shifted reshapes (no gather), time-major.
        xr = x.reshape(B, L // S, S)
        frames = jnp.concatenate([xr[:, :-1, :], xr[:, 1:, :]], axis=-1)   # (B, L_z, K)
        frames_tm = jnp.transpose(frames, (1, 0, 2))                        # (L_z, B, K)
        frames_tm = jnp.pad(frames_tm, ((0, T_pad - L_z), (0, 0), (0, 0)))
        z2d = encoder_matmul(frames_tm.reshape(T_pad * B, K),
                             params["w_conv"], params["b_conv"])            # (T_pad*B, D) bf16

        ts_arr = jnp.asarray(t_samples, jnp.int32).reshape(1)

        # ---- GRU (fused input projection, chunk-streamed over time) ----
        c_t = gru_forward(z2d, T_pad, ts_arr, hidden[0],
                          params["wih_t"], params["bih"],
                          params["whh_t"], params["bhh"], t_chunk=t_chunk)  # (B, H)
        hidden_out = c_t[None, :, :]                                        # (1, B, H)

        # ---- fused CPC head: softmax(z_future), softmax(Wk c_t), bmm ----
        z3d = z2d.reshape(T_pad, B, D)
        prob_square = cpc_head(z3d, ts_arr, c_t, params["wk_t"], params["bk"])

        # ---- vectorized NCE-style loss / accuracy ----
        pos = jnp.diagonal(prob_square, axis1=1, axis2=2)                   # (n_steps, B)
        neg = prob_square[:, jnp.arange(B), neg_idx]                        # (n_steps, B)
        loss = jnp.sum(1.0 - pos) + jnp.sum(neg)
        n_correct = jnp.sum(pos > 0.5) + jnp.sum(neg < 0.5)
        acc = n_correct.astype(jnp.float32) / (B * n_steps * 2)
        return acc, loss, hidden_out

    return jax.jit(forward)


# -----------------------------------------------------------------------------
# Deterministic parameter construction (kaiming-normal-like, mode='fan_out')
# -----------------------------------------------------------------------------
def make_params(key, cfg):
    D, H = cfg["d_input"], cfg["d_coding"]
    K, n_steps = cfg["kernel_size"], cfg["n_steps"]
    keys = jax.random.split(key, 8)

    def kaiming(k, shape, fan_out):
        return jax.random.normal(k, shape, jnp.float32) * jnp.sqrt(2.0 / fan_out)

    return {
        # encoder conv: Conv1d(1, D, K) stored as (K, D) for matmul
        "w_conv": kaiming(keys[0], (K, D), D),
        "b_conv": jnp.zeros((1, D), jnp.float32),
        # GRU (weight_ih_l0: (3H, D), weight_hh_l0: (3H, H)) stored transposed
        "wih_t": kaiming(keys[1], (3 * H, D), 3 * H).T,      # (D, 3H)
        "whh_t": kaiming(keys[2], (3 * H, H), 3 * H).T,      # (H, 3H)
        "bih": jax.random.uniform(keys[3], (1, 3 * H), jnp.float32, -0.05, 0.05),
        "bhh": jax.random.uniform(keys[4], (1, 3 * H), jnp.float32, -0.05, 0.05),
        # Wk mappings: n_steps x Linear(H, D), stored transposed and stacked
        "wk_t": jnp.transpose(kaiming(keys[5], (n_steps, D, H), D), (0, 2, 1)),  # (n_steps, H, D)
        "bk": jax.random.uniform(keys[6], (n_steps, D), jnp.float32, -0.05, 0.05),
    }


if __name__ == "__main__":
    random.seed(0)
    key = jax.random.PRNGKey(0)

    cfg = {
        "d_input": 512,    # hardcoded in the reference forward (view(batch, 512))
        "d_coding": 256,   # hardcoded in the reference forward (view(batch, 256))
        "n_layers": 1,
        "n_steps": 3,
        "kernel_size": 8,
        "stride": 4,
        "t_chunk": 8,      # GRU time-chunk streamed through VMEM
    }

    B = 2
    LEN_X = 64             # -> L_z = 15, so t_samples in [1, 11]

    k_params, k_x = jax.random.split(key)
    params = make_params(k_params, cfg)

    x = jax.random.normal(k_x, (B, LEN_X), jnp.float32)
    len_x = jnp.full((B,), LEN_X, dtype=jnp.int32)
    hidden = jnp.zeros((cfg["n_layers"], B, cfg["d_coding"]), jnp.float32)  # init_hidden

    # sampled outside the compiled program; traced scalars -> no recompiles
    L_z = LEN_X // cfg["stride"] - 1
    t_samples = jnp.int32(random.randint(1, L_z - cfg["n_steps"] - 1))
    neg_idx = jnp.asarray(
        [random.choice([j for j in range(B) if j != i]) for i in range(B)],
        dtype=jnp.int32)

    forward = make_cpc_forward(cfg)
    acc, loss, hidden_out = forward(params, x, len_x, hidden, t_samples, neg_idx)
    jax.block_until_ready((acc, loss, hidden_out))
    print("KERNEL_OK")
</pallas_src>

<mosaic_0001>
module attributes {stable_mosaic.version = 11 : i64} {
  func.func @_encoder_kernel(%arg0: i32, %arg1: memref<32x8xbf16, #tpu.memory_space<vmem>>, %arg2: memref<8x512xbf16, #tpu.memory_space<vmem>>, %arg3: memref<1x512xf32, #tpu.memory_space<vmem>>, %arg4: memref<32x512xbf16, #tpu.memory_space<vmem>>) attributes {dimension_semantics = [#tpu.dimension_semantics<parallel>], iteration_bounds = array<i64: 1>, scalar_prefetch = 0 : i64, scratch_operands = 0 : i64, tpu.core_type = #tpu.core_type<tc>, window_params = [{transform_indices = @transform_0, window_bounds = array<i64: 32, 8>}, {pipeline_mode = #tpu.pipeline_mode<synchronous>, transform_indices = @transform_1, window_bounds = array<i64: 8, 512>}, {pipeline_mode = #tpu.pipeline_mode<synchronous>, transform_indices = @transform_2, window_bounds = array<i64: 1, 512>}, {transform_indices = @transform_3, window_bounds = array<i64: 32, 512>}]} {
    %c0 = arith.constant 0 : index
    %c0_0 = arith.constant 0 : index
    %0 = vector.load %arg1[%c0, %c0_0] : memref<32x8xbf16, #tpu.memory_space<vmem>>, vector<32x8xbf16>
    %c0_1 = arith.constant 0 : index
    %c0_2 = arith.constant 0 : index
    %1 = vector.load %arg2[%c0_1, %c0_2] : memref<8x512xbf16, #tpu.memory_space<vmem>>, vector<8x512xbf16>
    %cst = arith.constant dense<0.000000e+00> : vector<32x512xf32>
    %2 = tpu.matmul %0, %1, %cst {dimension_numbers = #tpu.dot_dimension_numbers<[1], [0], [0], [1], [0, 0, 1, 1], [], []>} : vector<32x8xbf16>, vector<8x512xbf16>, vector<32x512xf32> -> vector<32x512xf32>
    %c0_3 = arith.constant 0 : index
    %c0_4 = arith.constant 0 : index
    %3 = vector.load %arg3[%c0_3, %c0_4] : memref<1x512xf32, #tpu.memory_space<vmem>>, vector<1x512xf32>
    %4 = vector.broadcast %3 : vector<1x512xf32> to vector<32x512xf32>
    %5 = arith.addf %2, %4 : vector<32x512xf32>
    %cst_5 = arith.constant 0.000000e+00 : f32
    %6 = vector.broadcast %cst_5 : f32 to vector<32x512xf32>
    %7 = arith.maximumf %5, %6 : vector<32x512xf32>
    %8 = arith.truncf %7 : vector<32x512xf32> to vector<32x512xbf16>
    %c0_6 = arith.constant 0 : index
    %c0_7 = arith.constant 0 : index
    %9 = vector.load %arg4[%c0_6, %c0_7] : memref<32x512xbf16, #tpu.memory_space<vmem>>, vector<32x512xbf16>
    tpu.vector_store %arg4[%c0_6, %c0_7], %8 {strides = array<i32>} : memref<32x512xbf16, #tpu.memory_space<vmem>>, vector<32x512xbf16>,
    return
  }
  func.func @transform_0(%arg0: i32) -> (i32, i32) {
    %c0_i32 = arith.constant 0 : i32
    %c0_i32_0 = arith.constant 0 : i32
    return %arg0, %c0_i32 : i32, i32
  }
  func.func @transform_1(%arg0: i32) -> (i32, i32) {
    %c0_i32 = arith.constant 0 : i32
    %c0_i32_0 = arith.constant 0 : i32
    %c0_i32_1 = arith.constant 0 : i32
    return %c0_i32, %c0_i32_0 : i32, i32
  }
  func.func @transform_2(%arg0: i32) -> (i32, i32) {
    %c0_i32 = arith.constant 0 : i32
    %c0_i32_0 = arith.constant 0 : i32
    %c0_i32_1 = arith.constant 0 : i32
    return %c0_i32, %c0_i32_0 : i32, i32
  }
  func.func @transform_3(%arg0: i32) -> (i32, i32) {
    %c0_i32 = arith.constant 0 : i32
    %c0_i32_0 = arith.constant 0 : i32
    return %arg0, %c0_i32 : i32, i32
  }
}

module attributes {stable_mosaic.version = 11 : i64} {
  func.func @_gru_kernel(%arg0: i32, %arg1: memref<1xi32, #tpu.memory_space<smem>>, %arg2: memref<16x512xbf16, #tpu.memory_space<vmem>>, %arg3: memref<2x256xf32, #tpu.memory_space<vmem>>, %arg4: memref<512x768xbf16, #tpu.memory_space<vmem>>, %arg5: memref<1x768xf32, #tpu.memory_space<vmem>>, %arg6: memref<256x768xbf16, #tpu.memory_space<vmem>>, %arg7: memref<1x768xf32, #tpu.memory_space<vmem>>, %arg8: memref<2x256xf32, #tpu.memory_space<vmem>>, %arg9: memref<2x256xf32, #tpu.memory_space<vmem>>) attributes {dimension_semantics = [#tpu.dimension_semantics<arbitrary>], iteration_bounds = array<i64: 2>, scalar_prefetch = 1 : i64, scratch_operands = 1 : i64, tpu.core_type = #tpu.core_type<tc>, window_params = [{transform_indices = @transform_0, window_bounds = array<i64: 16, 512>}, {pipeline_mode = #tpu.pipeline_mode<synchronous>, transform_indices = @transform_1, window_bounds = array<i64: 2, 256>}, {pipeline_mode = #tpu.pipeline_mode<synchronous>, transform_indices = @transform_2, window_bounds = array<i64: 512, 768>}, {pipeline_mode = #tpu.pipeline_mode<synchronous>, transform_indices = @transform_3, window_bounds = array<i64: 1, 768>}, {pipeline_mode = #tpu.pipeline_mode<synchronous>, transform_indices = @transform_4, window_bounds = array<i64: 256, 768>}, {pipeline_mode = #tpu.pipeline_mode<synchronous>, transform_indices = @transform_5, window_bounds = array<i64: 1, 768>}, {pipeline_mode = #tpu.pipeline_mode<synchronous>, transform_indices = @transform_6, window_bounds = array<i64: 2, 256>}]} {
    %c8_i32 = arith.constant 8 : i32
    %0 = arith.muli %arg0, %c8_i32 : i32
    %c0 = arith.constant 0 : index
    %1 = memref.load %arg1[%c0] : memref<1xi32, #tpu.memory_space<smem>>
    %c0_i32 = arith.constant 0 : i32
    %2 = arith.cmpi eq, %arg0, %c0_i32 : i32
    %3 = arith.extui %2 : i1 to i32
    %c0_i32_0 = arith.constant 0 : i32
    %4 = arith.cmpi ne, %3, %c0_i32_0 : i32
    scf.if %4 {
      %c0_3 = arith.constant 0 : index
      %c0_4 = arith.constant 0 : index
      %11 = vector.load %arg3[%c0_3, %c0_4] : memref<2x256xf32, #tpu.memory_space<vmem>>, vector<2x256xf32>
      %c0_5 = arith.constant 0 : index
      %c0_6 = arith.constant 0 : index
      %12 = vector.load %arg9[%c0_5, %c0_6] : memref<2x256xf32, #tpu.memory_space<vmem>>, vector<2x256xf32>
      tpu.vector_store %arg9[%c0_5, %c0_6], %11 {strides = array<i32>} : memref<2x256xf32, #tpu.memory_space<vmem>>, vector<2x256xf32>,
    } else {
    }
    %5 = arith.cmpi sle, %0, %1 : i32
    %6 = arith.extui %5 : i1 to i32
    %c0_i32_1 = arith.constant 0 : i32
    %7 = arith.cmpi ne, %6, %c0_i32_1 : i32
    scf.if %7 {
      %c0_3 = arith.constant 0 : index
      %c0_4 = arith.constant 0 : index
      %11 = vector.load %arg2[%c0_3, %c0_4] : memref<16x512xbf16, #tpu.memory_space<vmem>>, vector<16x512xbf16>
      %c0_5 = arith.constant 0 : index
      %c0_6 = arith.constant 0 : index
      %12 = vector.load %arg4[%c0_5, %c0_6] : memref<512x768xbf16, #tpu.memory_space<vmem>>, vector<512x768xbf16>
      %cst = arith.constant dense<0.000000e+00> : vector<16x768xf32>
      %13 = tpu.matmul %11, %12, %cst {dimension_numbers = #tpu.dot_dimension_numbers<[1], [0], [0], [1], [0, 0, 1, 1], [], []>} : vector<16x512xbf16>, vector<512x768xbf16>, vector<16x768xf32> -> vector<16x768xf32>
      %c0_7 = arith.constant 0 : index
      %c0_8 = arith.constant 0 : index
      %14 = vector.load %arg5[%c0_7, %c0_8] : memref<1x768xf32, #tpu.memory_space<vmem>>, vector<1x768xf32>
      %15 = vector.broadcast %14 : vector<1x768xf32> to vector<16x768xf32>
      %16 = arith.addf %13, %15 : vector<16x768xf32>
      %c0_9 = arith.constant 0 : index
      %c0_10 = arith.constant 0 : index
      %17 = vector.load %arg6[%c0_9, %c0_10] : memref<256x768xbf16, #tpu.memory_space<vmem>>, vector<256x768xbf16>
      %c0_11 = arith.constant 0 : index
      %c0_12 = arith.constant 0 : index
      %18 = vector.load %arg7[%c0_11, %c0_12] : memref<1x768xf32, #tpu.memory_space<vmem>>, vector<1x768xf32>
      %c0_13 = arith.constant 0 : index
      %c0_14 = arith.constant 0 : index
      %19 = vector.load %arg9[%c0_13, %c0_14] : memref<2x256xf32, #tpu.memory_space<vmem>>, vector<2x256xf32>
      %20 = vector.extract_strided_slice %16 {offsets = [0, 0], sizes = [2, 768], strides = [1, 1]} : vector<16x768xf32> to vector<2x768xf32>
      %21 = arith.truncf %19 : vector<2x256xf32> to vector<2x256xbf16>
      %cst_15 = arith.constant dense<0.000000e+00> : vector<2x768xf32>
      %22 = tpu.matmul %21, %17, %cst_15 {dimension_numbers = #tpu.dot_dimension_numbers<[1], [0], [0], [1], [0, 0, 1, 1], [], []>} : vector<2x256xbf16>, vector<256x768xbf16>, vector<2x768xf32> -> vector<2x768xf32>
      %23 = vector.broadcast %18 : vector<1x768xf32> to vector<2x768xf32>
      %24 = arith.addf %22, %23 : vector<2x768xf32>
      %25 = vector.extract_strided_slice %20 {offsets = [0, 0], sizes = [2, 256], strides = [1, 1]} : vector<2x768xf32> to vector<2x256xf32>
      %26 = vector.extract_strided_slice %24 {offsets = [0, 0], sizes = [2, 256], strides = [1, 1]} : vector<2x768xf32> to vector<2x256xf32>
      %27 = arith.addf %25, %26 : vector<2x256xf32>
      %28 = arith.negf %27 : vector<2x256xf32>
      %29 = math.exp %28 : vector<2x256xf32>
      %cst_16 = arith.constant 1.000000e+00 : f32
      %30 = vector.broadcast %cst_16 : f32 to vector<2x256xf32>
      %31 = arith.addf %30, %29 : vector<2x256xf32>
      %32 = arith.divf %30, %31 : vector<2x256xf32>
      %33 = vector.extract_strided_slice %20 {offsets = [0, 256], sizes = [2, 256], strides = [1, 1]} : vector<2x768xf32> to vector<2x256xf32>
      %34 = vector.extract_strided_slice %24 {offsets = [0, 256], sizes = [2, 256], strides = [1, 1]} : vector<2x768xf32> to vector<2x256xf32>
      %35 = arith.addf %33, %34 : vector<2x256xf32>
      %36 = arith.negf %35 : vector<2x256xf32>
      %37 = math.exp %36 : vector<2x256xf32>
      %cst_17 = arith.constant 1.000000e+00 : f32
      %38 = vector.broadcast %cst_17 : f32 to vector<2x256xf32>
      %39 = arith.addf %38, %37 : vector<2x256xf32>
      %40 = arith.divf %38, %39 : vector<2x256xf32>
      %41 = vector.extract_strided_slice %20 {offsets = [0, 512], sizes = [2, 256], strides = [1, 1]} : vector<2x768xf32> to vector<2x256xf32>
      %42 = vector.extract_strided_slice %24 {offsets = [0, 512], sizes = [2, 256], strides = [1, 1]} : vector<2x768xf32> to vector<2x256xf32>
      %43 = arith.mulf %32, %42 : vector<2x256xf32>
      %44 = arith.addf %41, %43 : vector<2x256xf32>
      %45 = math.tanh %44 : vector<2x256xf32>
      %cst_18 = arith.constant 1.000000e+00 : f32
      %46 = vector.broadcast %cst_18 : f32 to vector<2x256xf32>
      %47 = arith.subf %46, %40 : vector<2x256xf32>
      %48 = arith.mulf %47, %45 : vector<2x256xf32>
      %49 = arith.mulf %40, %19 : vector<2x256xf32>
      %50 = arith.addf %48, %49 : vector<2x256xf32>
      %c0_i32_19 = arith.constant 0 : i32
      %51 = arith.addi %0, %c0_i32_19 : i32
      %52 = arith.cmpi sle, %51, %1 : i32
      %53 = arith.select %52, %50, %19 : vector<2x256xf32>
      %54 = vector.extract_strided_slice %16 {offsets = [2, 0], sizes = [2, 768], strides = [1, 1]} : vector<16x768xf32> to vector<2x768xf32>
      %55 = arith.truncf %53 : vector<2x256xf32> to vector<2x256xbf16>
      %cst_20 = arith.constant dense<0.000000e+00> : vector<2x768xf32>
      %56 = tpu.matmul %55, %17, %cst_20 {dimension_numbers = #tpu.dot_dimension_numbers<[1], [0], [0], [1], [0, 0, 1, 1], [], []>} : vector<2x256xbf16>, vector<256x768xbf16>, vector<2x768xf32> -> vector<2x768xf32>
      %57 = vector.broadcast %18 : vector<1x768xf32> to vector<2x768xf32>
      %58 = arith.addf %56, %57 : vector<2x768xf32>
      %59 = vector.extract_strided_slice %54 {offsets = [0, 0], sizes = [2, 256], strides = [1, 1]} : vector<2x768xf32> to vector<2x256xf32>
      %60 = vector.extract_strided_slice %58 {offsets = [0, 0], sizes = [2, 256], strides = [1, 1]} : vector<2x768xf32> to vector<2x256xf32>
      %61 = arith.addf %59, %60 : vector<2x256xf32>
      %62 = arith.negf %61 : vector<2x256xf32>
      %63 = math.exp %62 : vector<2x256xf32>
      %cst_21 = arith.constant 1.000000e+00 : f32
      %64 = vector.broadcast %cst_21 : f32 to vector<2x256xf32>
      %65 = arith.addf %64, %63 : vector<2x256xf32>
      %66 = arith.divf %64, %65 : vector<2x256xf32>
      %67 = vector.extract_strided_slice %54 {offsets = [0, 256], sizes = [2, 256], strides = [1, 1]} : vector<2x768xf32> to vector<2x256xf32>
      %68 = vector.extract_strided_slice %58 {offsets = [0, 256], sizes = [2, 256], strides = [1, 1]} : vector<2x768xf32> to vector<2x256xf32>
      %69 = arith.addf %67, %68 : vector<2x256xf32>
      %70 = arith.negf %69 : vector<2x256xf32>
      %71 = math.exp %70 : vector<2x256xf32>
      %cst_22 = arith.constant 1.000000e+00 : f32
      %72 = vector.broadcast %cst_22 : f32 to vector<2x256xf32>
      %73 = arith.addf %72, %71 : vector<2x256xf32>
      %74 = arith.divf %72, %73 : vector<2x256xf32>
      %75 = vector.extract_strided_slice %54 {offsets = [0, 512], sizes = [2, 256], strides = [1, 1]} : vector<2x768xf32> to vector<2x256xf32>
      %76 = vector.extract_strided_slice %58 {offsets = [0, 512], sizes = [2, 256], strides = [1, 1]} : vector<2x768xf32> to vector<2x256xf32>
      %77 = arith.mulf %66, %76 : vector<2x256xf32>
      %78 = arith.addf %75, %77 : vector<2x256xf32>
      %79 = math.tanh %78 : vector<2x256xf32>
      %cst_23 = arith.constant 1.000000e+00 : f32
      %80 = vector.broadcast %cst_23 : f32 to vector<2x256xf32>
      %81 = arith.subf %80, %74 : vector<2x256xf32>
      %82 = arith.mulf %81, %79 : vector<2x256xf32>
      %83 = arith.mulf %74, %53 : vector<2x256xf32>
      %84 = arith.addf %82, %83 : vector<2x256xf32>
      %c1_i32_24 = arith.constant 1 : i32
      %85 = arith.addi %0, %c1_i32_24 : i32
      %86 = arith.cmpi sle, %85, %1 : i32
      %87 = arith.select %86, %84, %53 : vector<2x256xf32>
      %88 = vector.extract_strided_slice %16 {offsets = [4, 0], sizes = [2, 768], strides = [1, 1]} : vector<16x768xf32> to vector<2x768xf32>
      %89 = arith.truncf %87 : vector<2x256xf32> to vector<2x256xbf16>
      %cst_25 = arith.constant dense<0.000000e+00> : vector<2x768xf32>
      %90 = tpu.matmul %89, %17, %cst_25 {dimension_numbers = #tpu.dot_dimension_numbers<[1], [0], [0], [1], [0, 0, 1, 1], [], []>} : vector<2x256xbf16>, vector<256x768xbf16>, vector<2x768xf32> -> vector<2x768xf32>
      %91 = vector.broadcast %18 : vector<1x768xf32> to vector<2x768xf32>
      %92 = arith.addf %90, %91 : vector<2x768xf32>
      %93 = vector.extract_strided_slice %88 {offsets = [0, 0], sizes = [2, 256], strides = [1, 1]} : vector<2x768xf32> to vector<2x256xf32>
      %94 = vector.extract_strided_slice %92 {offsets = [0, 0], sizes = [2, 256], strides = [1, 1]} : vector<2x768xf32> to vector<2x256xf32>
      %95 = arith.addf %93, %94 : vector<2x256xf32>
      %96 = arith.negf %95 : vector<2x256xf32>
      %97 = math.exp %96 : vector<2x256xf32>
      %cst_26 = arith.constant 1.000000e+00 : f32
      %98 = vector.broadcast %cst_26 : f32 to vector<2x256xf32>
      %99 = arith.addf %98, %97 : vector<2x256xf32>
      %100 = arith.divf %98, %99 : vector<2x256xf32>
      %101 = vector.extract_strided_slice %88 {offsets = [0, 256], sizes = [2, 256], strides = [1, 1]} : vector<2x768xf32> to vector<2x256xf32>
      %102 = vector.extract_strided_slice %92 {offsets = [0, 256], sizes = [2, 256], strides = [1, 1]} : vector<2x768xf32> to vector<2x256xf32>
      %103 = arith.addf %101, %102 : vector<2x256xf32>
      %104 = arith.negf %103 : vector<2x256xf32>
      %105 = math.exp %104 : vector<2x256xf32>
      %cst_27 = arith.constant 1.000000e+00 : f32
      %106 = vector.broadcast %cst_27 : f32 to vector<2x256xf32>
      %107 = arith.addf %106, %105 : vector<2x256xf32>
      %108 = arith.divf %106, %107 : vector<2x256xf32>
      %109 = vector.extract_strided_slice %88 {offsets = [0, 512], sizes = [2, 256], strides = [1, 1]} : vector<2x768xf32> to vector<2x256xf32>
      %110 = vector.extract_strided_slice %92 {offsets = [0, 512], sizes = [2, 256], strides = [1, 1]} : vector<2x768xf32> to vector<2x256xf32>
      %111 = arith.mulf %100, %110 : vector<2x256xf32>
      %112 = arith.addf %109, %111 : vector<2x256xf32>
      %113 = math.tanh %112 : vector<2x256xf32>
      %cst_28 = arith.constant 1.000000e+00 : f32
      %114 = vector.broadcast %cst_28 : f32 to vector<2x256xf32>
      %115 = arith.subf %114, %108 : vector<2x256xf32>
      %116 = arith.mulf %115, %113 : vector<2x256xf32>
      %117 = arith.mulf %108, %87 : vector<2x256xf32>
      %118 = arith.addf %116, %117 : vector<2x256xf32>
      %c2_i32 = arith.constant 2 : i32
      %119 = arith.addi %0, %c2_i32 : i32
      %120 = arith.cmpi sle, %119, %1 : i32
      %121 = arith.select %120, %118, %87 : vector<2x256xf32>
      %122 = vector.extract_strided_slice %16 {offsets = [6, 0], sizes = [2, 768], strides = [1, 1]} : vector<16x768xf32> to vector<2x768xf32>
      %123 = arith.truncf %121 : vector<2x256xf32> to vector<2x256xbf16>
      %cst_29 = arith.constant dense<0.000000e+00> : vector<2x768xf32>
      %124 = tpu.matmul %123, %17, %cst_29 {dimension_numbers = #tpu.dot_dimension_numbers<[1], [0], [0], [1], [0, 0, 1, 1], [], []>} : vector<2x256xbf16>, vector<256x768xbf16>, vector<2x768xf32> -> vector<2x768xf32>
      %125 = vector.broadcast %18 : vector<1x768xf32> to vector<2x768xf32>
      %126 = arith.addf %124, %125 : vector<2x768xf32>
      %127 = vector.extract_strided_slice %122 {offsets = [0, 0], sizes = [2, 256], strides = [1, 1]} : vector<2x768xf32> to vector<2x256xf32>
      %128 = vector.extract_strided_slice %126 {offsets = [0, 0], sizes = [2, 256], strides = [1, 1]} : vector<2x768xf32> to vector<2x256xf32>
      %129 = arith.addf %127, %128 : vector<2x256xf32>
      %130 = arith.negf %129 : vector<2x256xf32>
      %131 = math.exp %130 : vector<2x256xf32>
      %cst_30 = arith.constant 1.000000e+00 : f32
      %132 = vector.broadcast %cst_30 : f32 to vector<2x256xf32>
      %133 = arith.addf %132, %131 : vector<2x256xf32>
      %134 = arith.divf %132, %133 : vector<2x256xf32>
      %135 = vector.extract_strided_slice %122 {offsets = [0, 256], sizes = [2, 256], strides = [1, 1]} : vector<2x768xf32> to vector<2x256xf32>
      %136 = vector.extract_strided_slice %126 {offsets = [0, 256], sizes = [2, 256], strides = [1, 1]} : vector<2x768xf32> to vector<2x256xf32>
      %137 = arith.addf %135, %136 : vector<2x256xf32>
      %138 = arith.negf %137 : vector<2x256xf32>
      %139 = math.exp %138 : vector<2x256xf32>
      %cst_31 = arith.constant 1.000000e+00 : f32
      %140 = vector.broadcast %cst_31 : f32 to vector<2x256xf32>
      %141 = arith.addf %140, %139 : vector<2x256xf32>
      %142 = arith.divf %140, %141 : vector<2x256xf32>
      %143 = vector.extract_strided_slice %122 {offsets = [0, 512], sizes = [2, 256], strides = [1, 1]} : vector<2x768xf32> to vector<2x256xf32>
      %144 = vector.extract_strided_slice %126 {offsets = [0, 512], sizes = [2, 256], strides = [1, 1]} : vector<2x768xf32> to vector<2x256xf32>
      %145 = arith.mulf %134, %144 : vector<2x256xf32>
      %146 = arith.addf %143, %145 : vector<2x256xf32>
      %147 = math.tanh %146 : vector<2x256xf32>
      %cst_32 = arith.constant 1.000000e+00 : f32
      %148 = vector.broadcast %cst_32 : f32 to vector<2x256xf32>
      %149 = arith.subf %148, %142 : vector<2x256xf32>
      %150 = arith.mulf %149, %147 : vector<2x256xf32>
      %151 = arith.mulf %142, %121 : vector<2x256xf32>
      %152 = arith.addf %150, %151 : vector<2x256xf32>
      %c3_i32 = arith.constant 3 : i32
      %153 = arith.addi %0, %c3_i32 : i32
      %154 = arith.cmpi sle, %153, %1 : i32
      %155 = arith.select %154, %152, %121 : vector<2x256xf32>
      %156 = vector.extract_strided_slice %16 {offsets = [8, 0], sizes = [2, 768], strides = [1, 1]} : vector<16x768xf32> to vector<2x768xf32>
      %157 = arith.truncf %155 : vector<2x256xf32> to vector<2x256xbf16>
      %cst_33 = arith.constant dense<0.000000e+00> : vector<2x768xf32>
      %158 = tpu.matmul %157, %17, %cst_33 {dimension_numbers = #tpu.dot_dimension_numbers<[1], [0], [0], [1], [0, 0, 1, 1], [], []>} : vector<2x256xbf16>, vector<256x768xbf16>, vector<2x768xf32> -> vector<2x768xf32>
      %159 = vector.broadcast %18 : vector<1x768xf32> to vector<2x768xf32>
      %160 = arith.addf %158, %159 : vector<2x768xf32>
      %161 = vector.extract_strided_slice %156 {offsets = [0, 0], sizes = [2, 256], strides = [1, 1]} : vector<2x768xf32> to vector<2x256xf32>
      %162 = vector.extract_strided_slice %160 {offsets = [0, 0], sizes = [2, 256], strides = [1, 1]} : vector<2x768xf32> to vector<2x256xf32>
      %163 = arith.addf %161, %162 : vector<2x256xf32>
      %164 = arith.negf %163 : vector<2x256xf32>
      %165 = math.exp %164 : vector<2x256xf32>
      %cst_34 = arith.constant 1.000000e+00 : f32
      %166 = vector.broadcast %cst_34 : f32 to vector<2x256xf32>
      %167 = arith.addf %166, %165 : vector<2x256xf32>
      %168 = arith.divf %166, %167 : vector<2x256xf32>
      %169 = vector.extract_strided_slice %156 {offsets = [0, 256], sizes = [2, 256], strides = [1, 1]} : vector<2x768xf32> to vector<2x256xf32>
      %170 = vector.extract_strided_slice %160 {offsets = [0, 256], sizes = [2, 256], strides = [1, 1]} : vector<2x768xf32> to vector<2x256xf32>
      %171 = arith.addf %169, %170 : vector<2x256xf32>
      %172 = arith.negf %171 : vector<2x256xf32>
      %173 = math.exp %172 : vector<2x256xf32>
      %cst_35 = arith.constant 1.000000e+00 : f32
      %174 = vector.broadcast %cst_35 : f32 to vector<2x256xf32>
      %175 = arith.addf %174, %173 : vector<2x256xf32>
      %176 = arith.divf %174, %175 : vector<2x256xf32>
      %177 = vector.extract_strided_slice %156 {offsets = [0, 512], sizes = [2, 256], strides = [1, 1]} : vector<2x768xf32> to vector<2x256xf32>
      %178 = vector.extract_strided_slice %160 {offsets = [0, 512], sizes = [2, 256], strides = [1, 1]} : vector<2x768xf32> to vector<2x256xf32>
      %179 = arith.mulf %168, %178 : vector<2x256xf32>
      %180 = arith.addf %177, %179 : vector<2x256xf32>
      %181 = math.tanh %180 : vector<2x256xf32>
      %cst_36 = arith.constant 1.000000e+00 : f32
      %182 = vector.broadcast %cst_36 : f32 to vector<2x256xf32>
      %183 = arith.subf %182, %176 : vector<2x256xf32>
      %184 = arith.mulf %183, %181 : vector<2x256xf32>
      %185 = arith.mulf %176, %155 : vector<2x256xf32>
      %186 = arith.addf %184, %185 : vector<2x256xf32>
      %c4_i32 = arith.constant 4 : i32
      %187 = arith.addi %0, %c4_i32 : i32
      %188 = arith.cmpi sle, %187, %1 : i32
      %189 = arith.select %188, %186, %155 : vector<2x256xf32>
      %190 = vector.extract_strided_slice %16 {offsets = [10, 0], sizes = [2, 768], strides = [1, 1]} : vector<16x768xf32> to vector<2x768xf32>
      %191 = arith.truncf %189 : vector<2x256xf32> to vector<2x256xbf16>
      %cst_37 = arith.constant dense<0.000000e+00> : vector<2x768xf32>
      %192 = tpu.matmul %191, %17, %cst_37 {dimension_numbers = #tpu.dot_dimension_numbers<[1], [0], [0], [1], [0, 0, 1, 1], [], []>} : vector<2x256xbf16>, vector<256x768xbf16>, vector<2x768xf32> -> vector<2x768xf32>
      %193 = vector.broadcast %18 : vector<1x768xf32> to vector<2x768xf32>
      %194 = arith.addf %192, %193 : vector<2x768xf32>
      %195 = vector.extract_strided_slice %190 {offsets = [0, 0], sizes = [2, 256], strides = [1, 1]} : vector<2x768xf32> to vector<2x256xf32>
      %196 = vector.extract_strided_slice %194 {offsets = [0, 0], sizes = [2, 256], strides = [1, 1]} : vector<2x768xf32> to vector<2x256xf32>
      %197 = arith.addf %195, %196 : vector<2x256xf32>
      %198 = arith.negf %197 : vector<2x256xf32>
      %199 = math.exp %198 : vector<2x256xf32>
      %cst_38 = arith.constant 1.000000e+00 : f32
      %200 = vector.broadcast %cst_38 : f32 to vector<2x256xf32>
      %201 = arith.addf %200, %199 : vector<2x256xf32>
      %202 = arith.divf %200, %201 : vector<2x256xf32>
      %203 = vector.extract_strided_slice %190 {offsets = [0, 256], sizes = [2, 256], strides = [1, 1]} : vector<2x768xf32> to vector<2x256xf32>
      %204 = vector.extract_strided_slice %194 {offsets = [0, 256], sizes = [2, 256], strides = [1, 1]} : vector<2x768xf32> to vector<2x256xf32>
      %205 = arith.addf %203, %204 : vector<2x256xf32>
      %206 = arith.negf %205 : vector<2x256xf32>
      %207 = math.exp %206 : vector<2x256xf32>
      %cst_39 = arith.constant 1.000000e+00 : f32
      %208 = vector.broadcast %cst_39 : f32 to vector<2x256xf32>
      %209 = arith.addf %208, %207 : vector<2x256xf32>
      %210 = arith.divf %208, %209 : vector<2x256xf32>
      %211 = vector.extract_strided_slice %190 {offsets = [0, 512], sizes = [2, 256], strides = [1, 1]} : vector<2x768xf32> to vector<2x256xf32>
      %212 = vector.extract_strided_slice %194 {offsets = [0, 512], sizes = [2, 256], strides = [1, 1]} : vector<2x768xf32> to vector<2x256xf32>
      %213 = arith.mulf %202, %212 : vector<2x256xf32>
      %214 = arith.addf %211, %213 : vector<2x256xf32>
      %215 = math.tanh %214 : vector<2x256xf32>
      %cst_40 = arith.constant 1.000000e+00 : f32
      %216 = vector.broadcast %cst_40 : f32 to vector<2x256xf32>
      %217 = arith.subf %216, %210 : vector<2x256xf32>
      %218 = arith.mulf %217, %215 : vector<2x256xf32>
      %219 = arith.mulf %210, %189 : vector<2x256xf32>
      %220 = arith.addf %218, %219 : vector<2x256xf32>
      %c5_i32 = arith.constant 5 : i32
      %221 = arith.addi %0, %c5_i32 : i32
      %222 = arith.cmpi sle, %221, %1 : i32
      %223 = arith.select %222, %220, %189 : vector<2x256xf32>
      %224 = vector.extract_strided_slice %16 {offsets = [12, 0], sizes = [2, 768], strides = [1, 1]} : vector<16x768xf32> to vector<2x768xf32>
      %225 = arith.truncf %223 : vector<2x256xf32> to vector<2x256xbf16>
      %cst_41 = arith.constant dense<0.000000e+00> : vector<2x768xf32>
      %226 = tpu.matmul %225, %17, %cst_41 {dimension_numbers = #tpu.dot_dimension_numbers<[1], [0], [0], [1], [0, 0, 1, 1], [], []>} : vector<2x256xbf16>, vector<256x768xbf16>, vector<2x768xf32> -> vector<2x768xf32>
      %227 = vector.broadcast %18 : vector<1x768xf32> to vector<2x768xf32>
      %228 = arith.addf %226, %227 : vector<2x768xf32>
      %229 = vector.extract_strided_slice %224 {offsets = [0, 0], sizes = [2, 256], strides = [1, 1]} : vector<2x768xf32> to vector<2x256xf32>
      %230 = vector.extract_strided_slice %228 {offsets = [0, 0], sizes = [2, 256], strides = [1, 1]} : vector<2x768xf32> to vector<2x256xf32>
      %231 = arith.addf %229, %230 : vector<2x256xf32>
      %232 = arith.negf %231 : vector<2x256xf32>
      %233 = math.exp %232 : vector<2x256xf32>
      %cst_42 = arith.constant 1.000000e+00 : f32
      %234 = vector.broadcast %cst_42 : f32 to vector<2x256xf32>
      %235 = arith.addf %234, %233 : vector<2x256xf32>
      %236 = arith.divf %234, %235 : vector<2x256xf32>
      %237 = vector.extract_strided_slice %224 {offsets = [0, 256], sizes = [2, 256], strides = [1, 1]} : vector<2x768xf32> to vector<2x256xf32>
      %238 = vector.extract_strided_slice %228 {offsets = [0, 256], sizes = [2, 256], strides = [1, 1]} : vector<2x768xf32> to vector<2x256xf32>
      %239 = arith.addf %237, %238 : vector<2x256xf32>
      %240 = arith.negf %239 : vector<2x256xf32>
      %241 = math.exp %240 : vector<2x256xf32>
      %cst_43 = arith.constant 1.000000e+00 : f32
      %242 = vector.broadcast %cst_43 : f32 to vector<2x256xf32>
      %243 = arith.addf %242, %241 : vector<2x256xf32>
      %244 = arith.divf %242, %243 : vector<2x256xf32>
      %245 = vector.extract_strided_slice %224 {offsets = [0, 512], sizes = [2, 256], strides = [1, 1]} : vector<2x768xf32> to vector<2x256xf32>
      %246 = vector.extract_strided_slice %228 {offsets = [0, 512], sizes = [2, 256], strides = [1, 1]} : vector<2x768xf32> to vector<2x256xf32>
      %247 = arith.mulf %236, %246 : vector<2x256xf32>
      %248 = arith.addf %245, %247 : vector<2x256xf32>
      %249 = math.tanh %248 : vector<2x256xf32>
      %cst_44 = arith.constant 1.000000e+00 : f32
      %250 = vector.broadcast %cst_44 : f32 to vector<2x256xf32>
      %251 = arith.subf %250, %244 : vector<2x256xf32>
      %252 = arith.mulf %251, %249 : vector<2x256xf32>
      %253 = arith.mulf %244, %223 : vector<2x256xf32>
      %254 = arith.addf %252, %253 : vector<2x256xf32>
      %c6_i32 = arith.constant 6 : i32
      %255 = arith.addi %0, %c6_i32 : i32
      %256 = arith.cmpi sle, %255, %1 : i32
      %257 = arith.select %256, %254, %223 : vector<2x256xf32>
      %258 = vector.extract_strided_slice %16 {offsets = [14, 0], sizes = [2, 768], strides = [1, 1]} : vector<16x768xf32> to vector<2x768xf32>
      %259 = arith.truncf %257 : vector<2x256xf32> to vector<2x256xbf16>
      %cst_45 = arith.constant dense<0.000000e+00> : vector<2x768xf32>
      %260 = tpu.matmul %259, %17, %cst_45 {dimension_numbers = #tpu.dot_dimension_numbers<[1], [0], [0], [1], [0, 0, 1, 1], [], []>} : vector<2x256xbf16>, vector<256x768xbf16>, vector<2x768xf32> -> vector<2x768xf32>
      %261 = vector.broadcast %18 : vector<1x768xf32> to vector<2x768xf32>
      %262 = arith.addf %260, %261 : vector<2x768xf32>
      %263 = vector.extract_strided_slice %258 {offsets = [0, 0], sizes = [2, 256], strides = [1, 1]} : vector<2x768xf32> to vector<2x256xf32>
      %264 = vector.extract_strided_slice %262 {offsets = [0, 0], sizes = [2, 256], strides = [1, 1]} : vector<2x768xf32> to vector<2x256xf32>
      %265 = arith.addf %263, %264 : vector<2x256xf32>
      %266 = arith.negf %265 : vector<2x256xf32>
      %267 = math.exp %266 : vector<2x256xf32>
      %cst_46 = arith.constant 1.000000e+00 : f32
      %268 = vector.broadcast %cst_46 : f32 to vector<2x256xf32>
      %269 = arith.addf %268, %267 : vector<2x256xf32>
      %270 = arith.divf %268, %269 : vector<2x256xf32>
      %271 = vector.extract_strided_slice %258 {offsets = [0, 256], sizes = [2, 256], strides = [1, 1]} : vector<2x768xf32> to vector<2x256xf32>
      %272 = vector.extract_strided_slice %262 {offsets = [0, 256], sizes = [2, 256], strides = [1, 1]} : vector<2x768xf32> to vector<2x256xf32>
      %273 = arith.addf %271, %272 : vector<2x256xf32>
      %274 = arith.negf %273 : vector<2x256xf32>
      %275 = math.exp %274 : vector<2x256xf32>
      %cst_47 = arith.constant 1.000000e+00 : f32
      %276 = vector.broadcast %cst_47 : f32 to vector<2x256xf32>
      %277 = arith.addf %276, %275 : vector<2x256xf32>
      %278 = arith.divf %276, %277 : vector<2x256xf32>
      %279 = vector.extract_strided_slice %258 {offsets = [0, 512], sizes = [2, 256], strides = [1, 1]} : vector<2x768xf32> to vector<2x256xf32>
      %280 = vector.extract_strided_slice %262 {offsets = [0, 512], sizes = [2, 256], strides = [1, 1]} : vector<2x768xf32> to vector<2x256xf32>
      %281 = arith.mulf %270, %280 : vector<2x256xf32>
      %282 = arith.addf %279, %281 : vector<2x256xf32>
      %283 = math.tanh %282 : vector<2x256xf32>
      %cst_48 = arith.constant 1.000000e+00 : f32
      %284 = vector.broadcast %cst_48 : f32 to vector<2x256xf32>
      %285 = arith.subf %284, %278 : vector<2x256xf32>
      %286 = arith.mulf %285, %283 : vector<2x256xf32>
      %287 = arith.mulf %278, %257 : vector<2x256xf32>
      %288 = arith.addf %286, %287 : vector<2x256xf32>
      %c7_i32 = arith.constant 7 : i32
      %289 = arith.addi %0, %c7_i32 : i32
      %290 = arith.cmpi sle, %289, %1 : i32
      %291 = arith.select %290, %288, %257 : vector<2x256xf32>
      %c0_49 = arith.constant 0 : index
      %c0_50 = arith.constant 0 : index
      %292 = vector.load %arg9[%c0_49, %c0_50] : memref<2x256xf32, #tpu.memory_space<vmem>>, vector<2x256xf32>
      tpu.vector_store %arg9[%c0_49, %c0_50], %291 {strides = array<i32>} : memref<2x256xf32, #tpu.memory_space<vmem>>, vector<2x256xf32>,
    } else {
    }
    %c1_i32 = arith.constant 1 : i32
    %8 = arith.cmpi eq, %arg0, %c1_i32 : i32
    %9 = arith.extui %8 : i1 to i32
    %c0_i32_2 = arith.constant 0 : i32
    %10 = arith.cmpi ne, %9, %c0_i32_2 : i32
    scf.if %10 {
      %c0_3 = arith.constant 0 : index
      %c0_4 = arith.constant 0 : index
      %11 = vector.load %arg9[%c0_3, %c0_4] : memref<2x256xf32, #tpu.memory_space<vmem>>, vector<2x256xf32>
      %c0_5 = arith.constant 0 : index
      %c0_6 = arith.constant 0 : index
      %12 = vector.load %arg8[%c0_5, %c0_6] : memref<2x256xf32, #tpu.memory_space<vmem>>, vector<2x256xf32>
      tpu.vector_store %arg8[%c0_5, %c0_6], %11 {strides = array<i32>} : memref<2x256xf32, #tpu.memory_space<vmem>>, vector<2x256xf32>,
    } else {
    }
    return
  }
  func.func @transform_0(%arg0: i32, %arg1: memref<1xi32, #tpu.memory_space<smem>>) -> (i32, i32) {
    %c0_i32 = arith.constant 0 : i32
    %c0_i32_0 = arith.constant 0 : i32
    return %arg0, %c0_i32 : i32, i32
  }
  func.func @transform_1(%arg0: i32, %arg1: memref<1xi32, #tpu.memory_space<smem>>) -> (i32, i32) {
    %c0_i32 = arith.constant 0 : i32
    %c0_i32_0 = arith.constant 0 : i32
    %c0_i32_1 = arith.constant 0 : i32
    return %c0_i32, %c0_i32_0 : i32, i32
  }
  func.func @transform_2(%arg0: i32, %arg1: memref<1xi32, #tpu.memory_space<smem>>) -> (i32, i32) {
    %c0_i32 = arith.constant 0 : i32
    %c0_i32_0 = arith.constant 0 : i32
    %c0_i32_1 = arith.constant 0 : i32
    return %c0_i32, %c0_i32_0 : i32, i32
  }
  func.func @transform_3(%arg0: i32, %arg1: memref<1xi32, #tpu.memory_space<smem>>) -> (i32, i32) {
    %c0_i32 = arith.constant 0 : i32
    %c0_i32_0 = arith.constant 0 : i32
    %c0_i32_1 = arith.constant 0 : i32
    return %c0_i32, %c0_i32_0 : i32, i32
  }
  func.func @transform_4(%arg0: i32, %arg1: memref<1xi32, #tpu.memory_space<smem>>) -> (i32, i32) {
    %c0_i32 = arith.constant 0 : i32
    %c0_i32_0 = arith.constant 0 : i32
    %c0_i32_1 = arith.constant 0 : i32
    return %c0_i32, %c0_i32_0 : i32, i32
  }
  func.func @transform_5(%arg0: i32, %arg1: memref<1xi32, #tpu.memory_space<smem>>) -> (i32, i32) {
    %c0_i32 = arith.constant 0 : i32
    %c0_i32_0 = arith.constant 0 : i32
    %c0_i32_1 = arith.constant 0 : i32
    return %c0_i32, %c0_i32_0 : i32, i32
  }
  func.func @transform_6(%arg0: i32, %arg1: memref<1xi32, #tpu.memory_space<smem>>) -> (i32, i32) {
    %c0_i32 = arith.constant 0 : i32
    %c0_i32_0 = arith.constant 0 : i32
    %c0_i32_1 = arith.constant 0 : i32
    return %c0_i32, %c0_i32_0 : i32, i32
  }
}

module attributes {stable_mosaic.version = 11 : i64} {
  func.func @_cpc_head_kernel(%arg0: i32, %arg1: memref<1xi32, #tpu.memory_space<smem>>, %arg2: memref<1x2x512xbf16, #tpu.memory_space<vmem>>, %arg3: memref<2x256xbf16, #tpu.memory_space<vmem>>, %arg4: memref<1x256x512xbf16, #tpu.memory_space<vmem>>, %arg5: memref<1x1x512xf32, #tpu.memory_space<vmem>>, %arg6: memref<1x2x2xf32, #tpu.memory_space<vmem>>) attributes {dimension_semantics = [#tpu.dimension_semantics<parallel>], iteration_bounds = array<i64: 3>, scalar_prefetch = 1 : i64, scratch_operands = 0 : i64, tpu.core_type = #tpu.core_type<tc>, window_params = [{transform_indices = @transform_0, window_bounds = array<i64: 1, 2, 512>}, {pipeline_mode = #tpu.pipeline_mode<synchronous>, transform_indices = @transform_1, window_bounds = array<i64: 2, 256>}, {transform_indices = @transform_2, window_bounds = array<i64: 1, 256, 512>}, {transform_indices = @transform_3, window_bounds = array<i64: 1, 1, 512>}, {transform_indices = @transform_4, window_bounds = array<i64: 1, 2, 2>}]} {
    %c0 = arith.constant 0 : index
    %c0_0 = arith.constant 0 : index
    %c0_1 = arith.constant 0 : index
    %0 = vector.load %arg2[%c0, %c0_0, %c0_1] : memref<1x2x512xbf16, #tpu.memory_space<vmem>>, vector<1x2x512xbf16>
    %1 = vector.shape_cast %0 : vector<1x2x512xbf16> to vector<2x512xbf16>
    %2 = arith.extf %1 : vector<2x512xbf16> to vector<2x512xf32>
    %cst = arith.constant dense<0xFF800000> : vector<2xf32>
    %3 = vector.multi_reduction <maximumf>, %2, %cst [1] : vector<2x512xf32> to vector<2xf32>
    %4 = vector.shape_cast %3 : vector<2xf32> to vector<2x1xf32>
    %5 = vector.broadcast %4 : vector<2x1xf32> to vector<2x512xf32>
    %6 = arith.subf %2, %5 : vector<2x512xf32>
    %7 = math.exp %6 : vector<2x512xf32>
    %cst_2 = arith.constant dense<0.000000e+00> : vector<2xf32>
    %8 = vector.multi_reduction <add>, %7, %cst_2 [1] : vector<2x512xf32> to vector<2xf32>
    %9 = vector.shape_cast %8 : vector<2xf32> to vector<2x1xf32>
    %10 = tpu.reciprocal %9 {approx = true} : vector<2x1xf32> -> vector<2x1xf32>
    %11 = vector.broadcast %10 : vector<2x1xf32> to vector<2x512xf32>
    %12 = arith.mulf %7, %11 : vector<2x512xf32>
    %c0_3 = arith.constant 0 : index
    %c0_4 = arith.constant 0 : index
    %13 = vector.load %arg3[%c0_3, %c0_4] : memref<2x256xbf16, #tpu.memory_space<vmem>>, vector<2x256xbf16>
    %c0_5 = arith.constant 0 : index
    %c0_6 = arith.constant 0 : index
    %c0_7 = arith.constant 0 : index
    %14 = vector.load %arg4[%c0_5, %c0_6, %c0_7] : memref<1x256x512xbf16, #tpu.memory_space<vmem>>, vector<1x256x512xbf16>
    %15 = vector.shape_cast %14 : vector<1x256x512xbf16> to vector<256x512xbf16>
    %cst_8 = arith.constant dense<0.000000e+00> : vector<2x512xf32>
    %16 = tpu.matmul %13, %15, %cst_8 {dimension_numbers = #tpu.dot_dimension_numbers<[1], [0], [0], [1], [0, 0, 1, 1], [], []>} : vector<2x256xbf16>, vector<256x512xbf16>, vector<2x512xf32> -> vector<2x512xf32>
    %c0_9 = arith.constant 0 : index
    %c0_10 = arith.constant 0 : index
    %c0_11 = arith.constant 0 : index
    %17 = vector.load %arg5[%c0_9, %c0_10, %c0_11] : memref<1x1x512xf32, #tpu.memory_space<vmem>>, vector<1x1x512xf32>
    %18 = vector.shape_cast %17 : vector<1x1x512xf32> to vector<1x512xf32>
    %19 = vector.broadcast %18 : vector<1x512xf32> to vector<2x512xf32>
    %20 = arith.addf %16, %19 : vector<2x512xf32>
    %cst_12 = arith.constant dense<0xFF800000> : vector<2xf32>
    %21 = vector.multi_reduction <maximumf>, %20, %cst_12 [1] : vector<2x512xf32> to vector<2xf32>
    %22 = vector.shape_cast %21 : vector<2xf32> to vector<2x1xf32>
    %23 = vector.broadcast %22 : vector<2x1xf32> to vector<2x512xf32>
    %24 = arith.subf %20, %23 : vector<2x512xf32>
    %25 = math.exp %24 : vector<2x512xf32>
    %cst_13 = arith.constant dense<0.000000e+00> : vector<2xf32>
    %26 = vector.multi_reduction <add>, %25, %cst_13 [1] : vector<2x512xf32> to vector<2xf32>
    %27 = vector.shape_cast %26 : vector<2xf32> to vector<2x1xf32>
    %28 = tpu.reciprocal %27 {approx = true} : vector<2x1xf32> -> vector<2x1xf32>
    %29 = vector.broadcast %28 : vector<2x1xf32> to vector<2x512xf32>
    %30 = arith.mulf %25, %29 : vector<2x512xf32>
    %31 = arith.truncf %12 : vector<2x512xf32> to vector<2x512xbf16>
    %32 = arith.truncf %30 : vector<2x512xf32> to vector<2x512xbf16>
    %cst_14 = arith.constant dense<0.000000e+00> : vector<2x2xf32>
    %33 = tpu.matmul %31, %32, %cst_14 {dimension_numbers = #tpu.dot_dimension_numbers<[1], [1], [0], [0], [0, 0, 1, 0], [], []>} : vector<2x512xbf16>, vector<2x512xbf16>, vector<2x2xf32> -> vector<2x2xf32>
    %c0_15 = arith.constant 0 : index
    %c0_16 = arith.constant 0 : index
    %c0_17 = arith.constant 0 : index
    %34 = vector.load %arg6[%c0_15, %c0_16, %c0_17] : memref<1x2x2xf32, #tpu.memory_space<vmem>>, vector<1x2x2xf32>
    %35 = vector.shape_cast %34 : vector<1x2x2xf32> to vector<2x2xf32>
    %36 = vector.shape_cast %33 : vector<2x2xf32> to vector<1x2x2xf32>
    tpu.vector_store %arg6[%c0_15, %c0_16, %c0_17], %36 {strides = array<i32>} : memref<1x2x2xf32, #tpu.memory_space<vmem>>, vector<1x2x2xf32>,
    return
  }
  func.func @transform_0(%arg0: i32, %arg1: memref<1xi32, #tpu.memory_space<smem>>) -> (i32, i32, i32) {
    %c0 = arith.constant 0 : index
    %0 = memref.load %arg1[%c0] : memref<1xi32, #tpu.memory_space<smem>>
    %c1_i32 = arith.constant 1 : i32
    %1 = arith.addi %0, %c1_i32 : i32
    %2 = arith.addi %1, %arg0 : i32
    %c0_i32 = arith.constant 0 : i32
    %c0_i32_0 = arith.constant 0 : i32
    %c0_i32_1 = arith.constant 0 : i32
    return %2, %c0_i32, %c0_i32_0 : i32, i32, i32
  }
  func.func @transform_1(%arg0: i32, %arg1: memref<1xi32, #tpu.memory_space<smem>>) -> (i32, i32) {
    %c0_i32 = arith.constant 0 : i32
    %c0_i32_0 = arith.constant 0 : i32
    %c0_i32_1 = arith.constant 0 : i32
    return %c0_i32, %c0_i32_0 : i32, i32
  }
  func.func @transform_2(%arg0: i32, %arg1: memref<1xi32, #tpu.memory_space<smem>>) -> (i32, i32, i32) {
    %c0_i32 = arith.constant 0 : i32
    %c0_i32_0 = arith.constant 0 : i32
    %c0_i32_1 = arith.constant 0 : i32
    return %arg0, %c0_i32, %c0_i32_0 : i32, i32, i32
  }
  func.func @transform_3(%arg0: i32, %arg1: memref<1xi32, #tpu.memory_space<smem>>) -> (i32, i32, i32) {
    %c0_i32 = arith.constant 0 : i32
    %c0_i32_0 = arith.constant 0 : i32
    %c0_i32_1 = arith.constant 0 : i32
    return %arg0, %c0_i32, %c0_i32_0 : i32, i32, i32
  }
  func.func @transform_4(%arg0: i32, %arg1: memref<1xi32, #tpu.memory_space<smem>>) -> (i32, i32, i32) {
    %c0_i32 = arith.constant 0 : i32
    %c0_i32_0 = arith.constant 0 : i32
    %c0_i32_1 = arith.constant 0 : i32
    return %arg0, %c0_i32, %c0_i32_0 : i32, i32, i32
  }
}

</mosaic_0001>

<bundles_post_ra>
// kernel: forward.3
= control target key start
LH: loop header
LB: loop body
LE: loop exit
PB: predicated region body
PF: predicated region fallthrough
CT: control target
= control target key end

     0   :  { %8 = vsyncpa [#allocation3], 0  ;;  %s336_s12 = smov [#allocation2]   ;;  %s397_s0 = inlined_call_operand.vmem [shape: bf16[32,8], index: 0, kind: input, shape index: {}]   ;;  %s398_s1 = inlined_call_operand.vmem [shape: bf16[8,512], index: 1, kind: input, shape index: {}]   ;;  %s399_s2 = inlined_call_operand.hbm [shape: f32[1,512], index: 2, kind: input, shape index: {}]   ;;  %s400_s3 = inlined_call_operand.vmem [shape: bf16[32,512], index: 3, kind: output, shape index: {}]  }
   0x1   :  { %s19_s13 = sshll.u32 %s336_s12, 4  ;;  %s20_s13 = int_to_ptr.vmem [resolvable:$true] %s19_s13 }
   0x2   :  { %s322_s14 = scalar_lea.vmem %s20_s13, 64  ;;  %p327_p1 = scmp.lt.s32.totalorder %s20_s13, %s20_s13 }
   0x3   :  { %p323_p0 = scmp.ne.s32.totalorder %s20_s13, %s322_s14  ;;  %p328_p2 = scmp.lt.s32.totalorder %s322_s14, %s322_s14 }
   0x5   :  { %p329_p3 = por %p328_p2, %p327_p1 }
   0x7   :  { %p330_p4 = pnand %p329_p3, %p323_p0 }
   0x9   :  { %333 = shalt.err (!%p330_p4)
}
   0xa   :  { %22 = dma.hbm_to_vmem [thread:$0]  %s399_s2, 64, %s20_s13, [#allocation3]  }
   0xb   :  { %334 = dma.done.wait [#allocation3], 64  }
   0xc   :  { %335 = vsyncadd [#allocation3], 4294967232  ;;  %v337_v0 = vmov 0   ;;  %v31_v1 = vld [vmem:[%s398_s1] sm:$0xff]  ;;  %vm82_vm0 = vcmask 1043456   ;;  %v32_v2 = vld [vmem:[%s398_s1 + $0x8] sm:$0xff]  ;;  %v35_v11 = vlaneseq }
   0xd   :  { %127 = vmatprep.mubr.bf16.mxu0 %v337_v0  ;;  %180 = vmatprep.mubr.bf16.mxu1 %v337_v0  ;;  %v281_v3 = vcombine.high %v31_v1, %v31_v1  ;;  %v283_v4 = vcombine.high %v32_v2, %v32_v2  ;;  %v280_v5 = vcombine.low %v31_v1, %v31_v1  ;;  %v312_v9 = vld [vmem:[%s397_s0] sm:$0xff]   ;;  %vm75_vm1 = vcmask 64512   ;;  %v313_v10 = vld [vmem:[%s397_s0 + $0x8] sm:$0xff]  }
   0xe   :  { %v282_v6 = vcombine.low %v32_v2, %v32_v2  ;;  %v36_v12 = vshrl.u32 %v35_v11, 7  ;;  %v33_v15 = vld [vmem:[#allocation2] sm:$0xf] }
   0xf   :  { %284 = vmatprep.subr.msk.bf16.mxu0 %vm82_vm0, %v281_v3  ;;  %287 = vmatprep.subr.msk.bf16.mxu1 %vm82_vm0, %v283_v4  ;;  %v84_v7 = vsel %vm82_vm0, %v280_v5, 0 }
  0x10   :  { %v90_v8 = vsel %vm82_vm0, %v282_v6, 0  ;;  %110 = vmatpush1.bf16.msra.mxu0 %v84_v7  ;;  %v37_v13 = vsub.s32 0, %v36_v12  ;;  %v45_v14 = vsub.s32 2, %v36_v12  ;;  %v41_v16 = vsub.s32 1, %v36_v12 }
  0x11   :  { %163 = vmatpush1.bf16.msra.mxu1 %v90_v8  ;;  %v49_v17 = vsub.s32 3, %v36_v12 }
  0x12   :  { %v38_v18 = vrot.slane %v33_v15, %v37_v13  ;;  %v46_v19 = vrot.slane %v33_v15, %v45_v14  ;;  %v42_v20 = vrot.slane %v33_v15, %v41_v16 }
  0x13   :  { %285 = vmatmul.mubr.msk.bf16.vlgmr.msra.gmra.mxu0 %vm75_vm1, %v312_v9  ;;  %v50_v21 = vrot.slane %v33_v15, %v49_v17 }
  0x14   :  { %288 = vmatmul.mubr.msk.bf16.vlgmr.msra.gmra.mxu1 %vm75_vm1, %v312_v9  ;;  %137 = vmatprep.mubr.bf16.mxu0 %v337_v0 }
  0x15   :  { %190 = vmatprep.mubr.bf16.mxu1 %v337_v0 }
  0x1b   :  { %286 = vmatmul.mubr.msk.bf16.gmra.mxu0 %vm75_vm1, %v313_v10 }
  0x1c   :  { %289 = vmatmul.mubr.msk.bf16.gmra.mxu1 %vm75_vm1, %v313_v10 }
  0xd3   :  { %v129_v22 = vpop.f32.mrf.mxu0 }
  0xd4   :  { %v182_v23 = vpop.f32.mrf.mxu1  ;;  %v130_v24 = vadd.f32 %v129_v22, %v38_v18 }
  0xd5   :  { %v183_v25 = vadd.f32 %v182_v23, %v46_v19  ;;  %v131_v26 = vpop.f32.mrf.mxu0 }
  0xd6   :  { %v184_v27 = vpop.f32.mrf.mxu1  ;;  %v132_v28 = vadd.f32 %v131_v26, %v42_v20  ;;  %v201_v32 = vmax.f32 %v130_v24, 0.0 }
  0xd7   :  { %v185_v29 = vadd.f32 %v184_v27, %v50_v21  ;;  %v133_v30 = vpop.f32.mrf.mxu0  ;;  %v203_v33 = vmax.f32 %v183_v25, 0.0 }
  0xd8   :  { %v186_v31 = vpop.f32.mrf.mxu1  ;;  %v202_v34 = vmax.f32 %v132_v28, 0.0  ;;  %v134_v36 = vadd.f32 %v133_v30, %v38_v18 }
  0xd9   :  { %v204_v35 = vmax.f32 %v185_v29, 0.0  ;;  %v187_v37 = vadd.f32 %v186_v31, %v46_v19  ;;  %v135_v38 = vpop.f32.mrf.mxu0 }
  0xda   :  { %v188_v39 = vpop.f32.mrf.mxu1  ;;  %v298_v40 = vpack.c.bf16 %v202_v34, %v201_v32  ;;  %v136_v42 = vadd.f32 %v135_v38, %v42_v20  ;;  %v205_v48 = vmax.f32 %v134_v36, 0.0 }
  0xdb   :  { %v299_v41 = vpack.c.bf16 %v204_v35, %v203_v33  ;;  %v189_v43 = vadd.f32 %v188_v39, %v50_v21  ;;  %v139_v44 = vpop.f32.mrf.mxu0  ;;  %v207_v49 = vmax.f32 %v187_v37, 0.0 }
  0xdc   :  { %v192_v45 = vpop.f32.mrf.mxu1  ;;  %265 = vst [vmem:[%s400_s3] sm:$0xff] %v298_v40  ;;  %v140_v46 = vadd.f32 %v139_v44, %v38_v18  ;;  %v206_v50 = vmax.f32 %v136_v42, 0.0 }
  0xdd   :  { %266 = vst [vmem:[%s400_s3 + $0x8] sm:$0xff] %v299_v41  ;;  %v193_v47 = vadd.f32 %v192_v45, %v46_v19  ;;  %v208_v51 = vmax.f32 %v189_v43, 0.0  ;;  %v141_v52 = vpop.f32.mrf.mxu0 }
  0xde   :  { %v194_v53 = vpop.f32.mrf.mxu1  ;;  %v142_v54 = vadd.f32 %v141_v52, %v42_v20  ;;  %v300_v56 = vpack.c.bf16 %v206_v50, %v205_v48  ;;  %v209_v60 = vmax.f32 %v140_v46, 0.0 }
  0xdf   :  { %v195_v55 = vadd.f32 %v194_v53, %v50_v21  ;;  %v301_v57 = vpack.c.bf16 %v208_v51, %v207_v49  ;;  %v143_v58 = vpop.f32.mrf.mxu0  ;;  %v211_v61 = vmax.f32 %v193_v47, 0.0 }
  0xe0   :  { %v196_v59 = vpop.f32.mrf.mxu1  ;;  %v210_v62 = vmax.f32 %v142_v54, 0.0  ;;  %267 = vst [vmem:[%s400_s3 + $0x10] sm:$0xff] %v300_v56  ;;  %v144_v0 = vadd.f32 %v143_v58, %v38_v18 }
  0xe1   :  { %v212_v63 = vmax.f32 %v195_v55, 0.0  ;;  %268 = vst [vmem:[%s400_s3 + $0x18] sm:$0xff] %v301_v57  ;;  %v197_v1 = vadd.f32 %v196_v59, %v46_v19  ;;  %v145_v2 = vpop.f32.mrf.mxu0 }
  0xe2   :  { %v198_v3 = vpop.f32.mrf.mxu1  ;;  %v302_v4 = vpack.c.bf16 %v210_v62, %v209_v60  ;;  %v146_v6 = vadd.f32 %v145_v2, %v42_v20  ;;  %v213_v8 = vmax.f32 %v144_v0, 0.0 }
  0xe3   :  { %v303_v5 = vpack.c.bf16 %v212_v63, %v211_v61  ;;  %v199_v7 = vadd.f32 %v198_v3, %v50_v21  ;;  %v215_v9 = vmax.f32 %v197_v1, 0.0 }
  0xe4   :  { %269 = vst [vmem:[%s400_s3 + $0x20] sm:$0xff] %v302_v4  ;;  %v214_v10 = vmax.f32 %v146_v6, 0.0 }
  0xe5   :  { %270 = vst [vmem:[%s400_s3 + $0x28] sm:$0xff] %v303_v5  ;;  %v216_v11 = vmax.f32 %v199_v7, 0.0 }
  0xe6   :  { %v304_v12 = vpack.c.bf16 %v214_v10, %v213_v8 }
  0xe7   :  { %v305_v13 = vpack.c.bf16 %v216_v11, %v215_v9 }
  0xe8   :  { %271 = vst [vmem:[%s400_s3 + $0x30] sm:$0xff] %v304_v12 }
  0xe9   :  { %272 = vst [vmem:[%s400_s3 + $0x38] sm:$0xff] %v305_v13 }
  0xea   :  { %277 = vsyncpa [#allocation3], 1 }

// kernel: forward.5
= control target key start
LH: loop header
LB: loop body
LE: loop exit
PB: predicated region body
PF: predicated region fallthrough
CT: control target
= control target key end

     0   :  { %s1323_s20 = smov 0   ;;  %s1473_s0 = inlined_call_operand.<no memory space> [shape: s32[1], index: 0, kind: input, shape index: {}]   ;;  %s1474_s1 = inlined_call_operand.vmem [shape: bf16[16,2,512], index: 1, kind: input, shape index: {}]   ;;  %s1475_s2 = inlined_call_operand.vmem [shape: bf16[2,256], index: 2, kind: input, shape index: {}]   ;;  %s1476_s3 = inlined_call_operand.vmem [shape: bf16[3,256,512], index: 3, kind: input, shape index: {}]   ;;  %s1477_s4 = inlined_call_operand.vmem [shape: f32[3,1,512], index: 4, kind: input, shape index: {}]   ;;  %s1478_s5 = inlined_call_operand.vmem [shape: f32[3,2,2], index: 5, kind: output, shape index: {}]  }
   0x1   :  { %10 = sst [smem:[#allocation3]] %s1473_s0 }
   0x2 LB: > { %s1329_s21 = sadd.s32 4294967295, %s1285_s20   ;;  %p1084_p0 = scmp.ge.s32.totalorder %s1285_s20, 1  ;;  %s1285_s20 = sphi %s1323_s20, %s16_s20  }
   0x3   : > { %p194_p1 = scmp.lt.s32.totalorder %s1285_s20, 4 }
   0x5   : > { %p195_p2 = pnand %p1084_p0, %p194_p1 }
   0x6   : > { %p240_p3 = scmp.lt.s32.totalorder (!%p195_p2), %s1329_s21, 2  ;;  %s230_s28 = sld [smem:[#allocation3]] (!%p195_p2) }
   0x7   : > { %198 = sbr.rel (%p195_p2) target bundleno = 811 (0x32b), region = 36 }
   0xc   : > { %v261_v0 = vlaneseq  ;;  %v1337_v1 = vld.sshfl [vmem:[%s1475_s2] sm:$0x11 pattern:$0x75316420]  ;;  %s1340_s23 = scalar_select %p240_p3, %s1329_s21, 2  ;;  %vm278_vm0 = vcmask 1041408  }
   0xd   : > { %v1287_v3 = vmov 1966171168   ;;  %v437_v5 = vcombine.high %v1337_v1, %v1337_v1  ;;  %s231_s29 = sadd.s32 1, %s230_s28  ;;  %v1288_v47 = vmov 1983009808   ;;  %vm1001_vm1 = vcmask 9216  }
   0xe   : > { %v1342_v2 = vshrl.u32 %v261_v0, 7  ;;  %v439_v4 = vunpack.c.l.s4 %v1287_v3  ;;  %s1157_s24 = sshll.u32 %s1340_s23, 9  ;;  %s232_s30 = sadd.s32 %s1329_s21, %s231_s29  ;;  %v259_v48 = vunpack.c.l.s4 %v1288_v47 }
   0xf   : > { %s1350_s27 = scalar_lea.vmem %s1476_s3, %s1157_s24  ;;  %p233_p4 = scmp.lt.s32.totalorder %s232_s30, 15 }
  0x10   : > { %v440_v6 = vunpack.c.0.s8 %v439_v4  ;;  %v1169_v7 = vld [vmem:[%s1350_s27 + $0xe4] ss:$16 sps:$4 sm:$0xff]   ;;  %v1171_v9 = vld [vmem:[%s1350_s27 + $0xec] ss:$16 sps:$4 sm:$0xff]   ;;  %v1173_v10 = vld [vmem:[%s1350_s27 + $0xe0] ss:$16 sps:$4 sm:$0xff]   ;;  %v260_v53 = vunpack.c.0.s8 %v259_v48 }
  0x11   : > { %774 = vmatprep.subr.bf16.mxu0 %v1169_v7  ;;  %v1174_v11 = vld [vmem:[%s1350_s27 + $0xe8] ss:$16 sps:$4 sm:$0xff]   ;;  %815 = vmatprep.subr.bf16.mxu1 %v1171_v9  ;;  %v1175_v13 = vld [vmem:[%s1350_s27 + $0xc4] ss:$16 sps:$4 sm:$0xff]   ;;  %v1177_v14 = vld [vmem:[%s1350_s27 + $0xcc] ss:$16 sps:$4 sm:$0xff]  }
  0x12   : > { %v1354_v8 = vsub.s32 %v440_v6, %v1342_v2  ;;  %775 = vmatpush1.bf16.msra.mxu0 %v1173_v10  ;;  %816 = vmatpush1.bf16.msra.mxu1 %v1174_v11  ;;  %v1179_v15 = vld [vmem:[%s1350_s27 + $0xc0] ss:$16 sps:$4 sm:$0xff]   ;;  %v1180_v16 = vld [vmem:[%s1350_s27 + $0xc8] ss:$16 sps:$4 sm:$0xff]   ;;  %v1181_v17 = vld [vmem:[%s1350_s27 + $0xa4] ss:$16 sps:$4 sm:$0xff]   ;;  %v1407_v58 = vsub.s32 %v260_v53, %v1342_v2 }
  0x13   : > { %776 = vmatprep.subr.bf16.mxu0 %v1175_v13  ;;  %817 = vmatprep.subr.bf16.mxu1 %v1177_v14  ;;  %v1183_v18 = vld [vmem:[%s1350_s27 + $0xac] ss:$16 sps:$4 sm:$0xff]   ;;  %v1185_v19 = vld [vmem:[%s1350_s27 + $0xa0] ss:$16 sps:$4 sm:$0xff]   ;;  %v1186_v20 = vld [vmem:[%s1350_s27 + $0xa8] ss:$16 sps:$4 sm:$0xff]  }
  0x14   : > { %v451_v12 = vrot.slane %v437_v5, %v1354_v8  ;;  %v1187_v21 = vld [vmem:[%s1350_s27 + $0x84] ss:$16 sps:$4 sm:$0xff]   ;;  %v1189_v22 = vld [vmem:[%s1350_s27 + $0x8c] ss:$16 sps:$4 sm:$0xff]   ;;  %v1191_v23 = vld [vmem:[%s1350_s27 + $0x80] ss:$16 sps:$4 sm:$0xff]  }
  0x15   : > { %v1192_v24 = vld [vmem:[%s1350_s27 + $0x88] ss:$16 sps:$4 sm:$0xff]   ;;  %v1193_v25 = vld [vmem:[%s1350_s27 + $0x64] ss:$16 sps:$4 sm:$0xff]   ;;  %v1195_v26 = vld [vmem:[%s1350_s27 + $0x6c] ss:$16 sps:$4 sm:$0xff]  }
  0x16   : > { %806 = vmatprep.mubr.bf16.mxu0 %v451_v12  ;;  %847 = vmatprep.mubr.bf16.mxu1 %v451_v12  ;;  %v1197_v27 = vld [vmem:[%s1350_s27 + $0x60] ss:$16 sps:$4 sm:$0xff]   ;;  %v1198_v28 = vld [vmem:[%s1350_s27 + $0x68] ss:$16 sps:$4 sm:$0xff]   ;;  %v1199_v29 = vld [vmem:[%s1350_s27 + $0x44] ss:$16 sps:$4 sm:$0xff]  }
  0x17   : > { %777 = vmatpush1.bf16.msra.mxu0 %v1179_v15  ;;  %818 = vmatpush1.bf16.msra.mxu1 %v1180_v16  ;;  %v1201_v30 = vld [vmem:[%s1350_s27 + $0x4c] ss:$16 sps:$4 sm:$0xff]   ;;  %v1203_v31 = vld [vmem:[%s1350_s27 + $0x40] ss:$16 sps:$4 sm:$0xff]   ;;  %v1204_v32 = vld [vmem:[%s1350_s27 + $0x48] ss:$16 sps:$4 sm:$0xff]  }
  0x18   : > { %778 = vmatprep.subr.bf16.mxu0 %v1181_v17  ;;  %819 = vmatprep.subr.bf16.mxu1 %v1183_v18  ;;  %v1205_v33 = vld [vmem:[%s1350_s27 + $0x24] ss:$16 sps:$4 sm:$0xff]   ;;  %v1207_v34 = vld [vmem:[%s1350_s27 + $0x2c] ss:$16 sps:$4 sm:$0xff]   ;;  %v1209_v35 = vld [vmem:[%s1350_s27 + $0x20] ss:$16 sps:$4 sm:$0xff]  }
  0x19   : > { %v1210_v36 = vld [vmem:[%s1350_s27 + $0x28] ss:$16 sps:$4 sm:$0xff]   ;;  %v1211_v37 = vld [vmem:[%s1350_s27 + $0x4] ss:$16 sps:$4 sm:$0xff]   ;;  %v1213_v38 = vld [vmem:[%s1350_s27 + $0xc] ss:$16 sps:$4 sm:$0xff]  }
  0x1a   : > { %v1215_v39 = vld [vmem:[%s1350_s27] ss:$16 sps:$4 sm:$0xff]   ;;  %v1216_v40 = vld [vmem:[%s1350_s27 + $0x8] ss:$16 sps:$4 sm:$0xff]   ;;  %v1217_v41 = vld [vmem:[%s1350_s27 + $0x1e4] ss:$16 sps:$4 sm:$0xff]  }
  0x1b   : > { %779 = vmatpush1.bf16.msra.mxu0 %v1185_v19  ;;  %820 = vmatpush1.bf16.msra.mxu1 %v1186_v20  ;;  %v1219_v42 = vld [vmem:[%s1350_s27 + $0x1ec] ss:$16 sps:$4 sm:$0xff]   ;;  %v1221_v43 = vld [vmem:[%s1350_s27 + $0x1e0] ss:$16 sps:$4 sm:$0xff]   ;;  %v1222_v44 = vld [vmem:[%s1350_s27 + $0x1e8] ss:$16 sps:$4 sm:$0xff]  }
  0x1c   : > { %780 = vmatprep.subr.bf16.mxu0 %v1187_v21  ;;  %821 = vmatprep.subr.bf16.mxu1 %v1189_v22  ;;  %v1223_v45 = vld [vmem:[%s1350_s27 + $0x1c4] ss:$16 sps:$4 sm:$0xff]   ;;  %s1480_s30 = smov (!%p233_p4, %s232_s30), 15  ;;  %v1225_v46 = vld [vmem:[%s1350_s27 + $0x1cc] ss:$16 sps:$4 sm:$0xff]   ;;  %s1088_s10 = sshll.u32 %s1340_s23, 2 }
  0x1d   : > { %v1227_v49 = vld [vmem:[%s1350_s27 + $0x1c0] ss:$16 sps:$4 sm:$0xff]   ;;  %v1228_v50 = vld [vmem:[%s1350_s27 + $0x1c8] ss:$16 sps:$4 sm:$0xff]   ;;  %v1229_v51 = vld [vmem:[%s1350_s27 + $0x1a4] ss:$16 sps:$4 sm:$0xff]   ;;  %s248_s13 = scalar_lea.vmem %s1477_s4, %s1088_s10 }
  0x1e   : > { %s1085_s6 = sshll.u32 %s1480_s30, 2  ;;  %v1231_v52 = vld [vmem:[%s1350_s27 + $0x1ac] ss:$16 sps:$4 sm:$0xff]   ;;  %v1233_v54 = vld [vmem:[%s1350_s27 + $0x1a0] ss:$16 sps:$4 sm:$0xff]   ;;  %v415_v53 = vsub.s32 1, %v1342_v2 }
  0x1f   : > { %781 = vmatpush1.bf16.msra.mxu0 %v1191_v23  ;;  %822 = vmatpush1.bf16.msra.mxu1 %v1192_v24  ;;  %v1234_v55 = vld [vmem:[%s1350_s27 + $0x1a8] ss:$16 sps:$4 sm:$0xff]   ;;  %s236_s9 = scalar_lea.vmem %s1474_s1, %s1085_s6  ;;  %v1235_v56 = vld [vmem:[%s1350_s27 + $0x184] ss:$16 sps:$4 sm:$0xff]   ;;  %v1237_v57 = vld [vmem:[%s1350_s27 + $0x18c] ss:$16 sps:$4 sm:$0xff]  }
  0x20   : > { %782 = vmatprep.subr.bf16.mxu0 %v1193_v25  ;;  %823 = vmatprep.subr.bf16.mxu1 %v1195_v26  ;;  %v254_v59 = vld [vmem:[%s236_s9] sm:$0xf]  ;;  %v1240_v62 = vld [vmem:[%s1350_s27 + $0x188] ss:$16 sps:$4 sm:$0xff]   ;;  %v1241_v63 = vld [vmem:[%s1350_s27 + $0x164] ss:$16 sps:$4 sm:$0xff]  }
  0x21   : > { %v1409_v60 = vunpack.c.l.bf16 %v254_v59  ;;  %v1239_v61 = vld [vmem:[%s1350_s27 + $0x180] ss:$16 sps:$4 sm:$0xff]   ;;  %v1243_v0 = vld [vmem:[%s1350_s27 + $0x16c] ss:$16 sps:$4 sm:$0xff]   ;;  %v1246_v10 = vld [vmem:[%s1350_s27 + $0x168] ss:$16 sps:$4 sm:$0xff]  }
  0x22   : > { %v1245_v9 = vld [vmem:[%s1350_s27 + $0x160] ss:$16 sps:$4 sm:$0xff]   ;;  %v1247_v11 = vld [vmem:[%s1350_s27 + $0x144] ss:$16 sps:$4 sm:$0xff]   ;;  %v1249_v12 = vld [vmem:[%s1350_s27 + $0x14c] ss:$16 sps:$4 sm:$0xff]  }
  0x23   : > { %783 = vmatpush1.bf16.msra.mxu0 %v1197_v27  ;;  %824 = vmatpush1.bf16.msra.mxu1 %v1198_v28  ;;  %v257_v3 = vcombine.high %v1409_v60, %v1409_v60  ;;  %v264_v4 = vrot.slane %v1409_v60, %v1407_v58  ;;  %v1251_v18 = vld [vmem:[%s1350_s27 + $0x140] ss:$16 sps:$4 sm:$0xff]   ;;  %v1252_v19 = vld [vmem:[%s1350_s27 + $0x148] ss:$16 sps:$4 sm:$0xff]   ;;  %v1253_v21 = vld [vmem:[%s1350_s27 + $0x124] ss:$16 sps:$4 sm:$0xff]  }
  0x24   : > { %784 = vmatprep.subr.bf16.mxu0 %v1199_v29  ;;  %825 = vmatprep.subr.bf16.mxu1 %v1201_v30  ;;  %v1255_v22 = vld [vmem:[%s1350_s27 + $0x12c] ss:$16 sps:$4 sm:$0xff]   ;;  %v1257_v24 = vld [vmem:[%s1350_s27 + $0x120] ss:$16 sps:$4 sm:$0xff]   ;;  %v1258_v25 = vld [vmem:[%s1350_s27 + $0x128] ss:$16 sps:$4 sm:$0xff]   ;;  %v444_v30 = vrot.slane %v1337_v1, %v1354_v8 }
  0x25   : > { %v271_v5 = vrot.slane %v257_v3, %v1407_v58  ;;  %v272_v6 = vcombine.high %v264_v4, %v264_v4  ;;  %v279_v7 = vsel %vm278_vm0, %v264_v4, -inf  ;;  %v1259_v26 = vld [vmem:[%s1350_s27 + $0x104] ss:$16 sps:$4 sm:$0xff]   ;;  %v1261_v27 = vld [vmem:[%s1350_s27 + $0x10c] ss:$16 sps:$4 sm:$0xff]   ;;  %s1089_s14 = sshll.u32 %s1340_s23, 1 }
  0x26   : > { %v1263_v28 = vld [vmem:[%s1350_s27 + $0x100] ss:$16 sps:$4 sm:$0xff]   ;;  %v1264_v29 = vld [vmem:[%s1350_s27 + $0x108] ss:$16 sps:$4 sm:$0xff]   ;;  %s252_s17 = scalar_lea.vmem %s1478_s5, %s1089_s14 }
  0x27   : > { %785 = vmatpush1.bf16.msra.mxu0 %v1203_v31  ;;  %826 = vmatpush1.bf16.msra.mxu1 %v1204_v32  ;;  %v273_v13 = vcombine.high %v271_v5, %v271_v5  ;;  %v280_v14 = vsel %vm278_vm0, %v272_v6, -inf  ;;  %v281_v15 = vsel %vm278_vm0, %v271_v5, -inf  ;;  %v1289_v31 = vmov 269488144  }
  0x28   : > { %786 = vmatprep.subr.bf16.mxu0 %v1205_v33  ;;  %827 = vmatprep.subr.bf16.mxu1 %v1207_v34  ;;  %v283_v16 = vmax.f32 %v279_v7, %v280_v14  ;;  %v290_v32 = vunpack.c.l.s4 %v1289_v31 }
  0x29   : > { %v282_v17 = vsel %vm278_vm0, %v273_v13, -inf }
  0x2a   : > { %v284_v20 = vmax.f32 %v281_v15, %v282_v17  ;;  %v291_v33 = vunpack.c.0.s8 %v290_v32 }
  0x2b   : > { %787 = vmatpush1.bf16.msra.mxu0 %v1209_v35  ;;  %828 = vmatpush1.bf16.msra.mxu1 %v1210_v36 }
  0x2c   : > { %788 = vmatprep.subr.bf16.mxu0 %v1211_v37  ;;  %829 = vmatprep.subr.bf16.mxu1 %v1213_v38  ;;  %v285_v23 = vmax.f32 %v283_v16, %v284_v20  ;;  %v294_v34 = vsub.s32 %v291_v33, %v1342_v2 }
  0x2e   : > { %286 = vmax.xlane.f32.xlu0 %v285_v23 }
  0x2f   : > { %789 = vmatpush1.bf16.msra.mxu0 %v1215_v39  ;;  %830 = vmatpush1.bf16.msra.mxu1 %v1216_v40 }
  0x30   : > { %790 = vmatprep.subr.bf16.mxu0 %v1217_v41  ;;  %831 = vmatprep.subr.bf16.mxu1 %v1219_v42 }
  0x33   : > { %791 = vmatpush2.bf16.msra.mxu0 %v1221_v43  ;;  %832 = vmatpush2.bf16.msra.mxu1 %v1222_v44 }
  0x34   : > { %792 = vmatprep.subr.bf16.mxu0 %v1223_v45  ;;  %833 = vmatprep.subr.bf16.mxu1 %v1225_v46 }
  0x37   : > { %793 = vmatpush2.bf16.msra.mxu0 %v1227_v49  ;;  %834 = vmatpush2.bf16.msra.mxu1 %v1228_v50  ;;  %v411_v50 = vsub.s32 0, %v1342_v2 }
  0x38   : > { %794 = vmatprep.subr.bf16.mxu0 %v1229_v51  ;;  %835 = vmatprep.subr.bf16.mxu1 %v1231_v52  ;;  %v419_v51 = vsub.s32 2, %v1342_v2  ;;  %v407_v52 = vld [vmem:[%s248_s13] sm:$0xf] }
  0x3b   : > { %795 = vmatpush2.bf16.msra.mxu0 %v1233_v54  ;;  %836 = vmatpush2.bf16.msra.mxu1 %v1234_v55  ;;  %v423_v54 = vsub.s32 3, %v1342_v2  ;;  %v412_v55 = vrot.slane %v407_v52, %v411_v50 }
  0x3c   : > { %796 = vmatprep.subr.bf16.mxu0 %v1235_v56  ;;  %837 = vmatprep.subr.bf16.mxu1 %v1237_v57  ;;  %v420_v56 = vrot.slane %v407_v52, %v419_v51  ;;  %v416_v57 = vrot.slane %v407_v52, %v415_v53 }
  0x3d   : > { %v424_v59 = vrot.slane %v407_v52, %v423_v54 }
  0x3f   : > { %797 = vmatpush2.bf16.msra.mxu0 %v1239_v61  ;;  %838 = vmatpush2.bf16.msra.mxu1 %v1240_v62 }
  0x40   : > { %798 = vmatprep.subr.bf16.mxu0 %v1241_v63  ;;  %839 = vmatprep.subr.bf16.mxu1 %v1243_v0 }
  0x43   : > { %799 = vmatpush2.bf16.msra.mxu0 %v1245_v9  ;;  %840 = vmatpush2.bf16.msra.mxu1 %v1246_v10 }
  0x44   : > { %800 = vmatprep.subr.bf16.mxu0 %v1247_v11  ;;  %841 = vmatprep.subr.bf16.mxu1 %v1249_v12 }
  0x47   : > { %801 = vmatpush2.bf16.msra.mxu0 %v1251_v18  ;;  %842 = vmatpush2.bf16.msra.mxu1 %v1252_v19 }
  0x48   : > { %802 = vmatprep.subr.bf16.mxu0 %v1253_v21  ;;  %843 = vmatprep.subr.bf16.mxu1 %v1255_v22 }
  0x4b   : > { %803 = vmatpush2.bf16.msra.mxu0 %v1257_v24  ;;  %844 = vmatpush2.bf16.msra.mxu1 %v1258_v25 }
  0x4c   : > { %804 = vmatprep.subr.bf16.mxu0 %v1259_v26  ;;  %845 = vmatprep.subr.bf16.mxu1 %v1261_v27 }
  0x4f   : > { %805 = vmatpush2.bf16.msra.mxu0 %v1263_v28  ;;  %846 = vmatpush2.bf16.msra.mxu1 %v1264_v29 }
  0x52   : > { %807 = vmatmul.mubr.bf16.vlgmr.msra.gmra.mxu0 %v444_v30  ;;  %848 = vmatmul.mubr.bf16.vlgmr.msra.gmra.mxu1 %v444_v30 }
  0xb7   : > { %v287_v35 = vpop.xlane.xlu0 %286 }
  0xb8   : > { %v295_v36 = vrot.slane %v287_v35, %v294_v34 }
  0xba   : > { %v297_v37 = vsub.f32 %v1409_v60, %v295_v36 }
  0xbc   : > { %v298_v38 = vmul.f32 1.442695, %v297_v37 }
  0xbe   : > { %1265 = vpow2.f32 %v298_v38 }
  0xcb   : > { %v1266_v39 = vpop.eup %1265 }
  0xcc   : > { %v301_v40 = vcombine.high %v1266_v39, %v1266_v39  ;;  %v308_v1 = vrot.slane %v1266_v39, %v1407_v58 }
  0xce   : > { %v315_v8 = vrot.slane %v301_v40, %v1407_v58  ;;  %v316_v41 = vcombine.high %v308_v1, %v308_v1  ;;  %v322_v42 = vsel %vm278_vm0, %v308_v1, 0.0 }
  0xd0   : > { %v317_v43 = vcombine.high %v315_v8, %v315_v8  ;;  %v323_v44 = vsel %vm278_vm0, %v316_v41, 0.0  ;;  %v325_v45 = vsel %vm278_vm0, %v315_v8, 0.0 }
  0xd1   : > { %v324_v46 = vadd.f32 %v323_v44, %v322_v42 }
  0xd2   : > { %v327_v47 = vsel %vm278_vm0, %v317_v43, 0.0 }
  0xd3   : > { %v326_v48 = vadd.f32 %v325_v45, %v324_v46 }
  0xd5   : > { %v328_v49 = vadd.f32 %v327_v47, %v326_v48 }
  0xd7   : > { %329 = vadd.xlane.f32.xlu1 %v328_v49 }
 0x112   : > { %v808_v60 = vpop.f32.mrf.mxu0  ;;  %v849_v61 = vpop.f32.mrf.mxu1 }
 0x113   : > { %v809_v62 = vadd.f32 %v808_v60, %v412_v55  ;;  %v850_v63 = vadd.f32 %v849_v61, %v420_v56 }
 0x114   : > { %v810_v0 = vpop.f32.mrf.mxu0  ;;  %v851_v3 = vpop.f32.mrf.mxu1 }
 0x115   : > { %v811_v4 = vadd.f32 %v810_v0, %v416_v57  ;;  %v852_v5 = vadd.f32 %v851_v3, %v424_v59  ;;  %v856_v9 = vsel %vm278_vm0, %v809_v62, -inf  ;;  %v858_v10 = vsel %vm278_vm0, %v850_v63, -inf }
 0x116   : > { %v812_v6 = vpop.f32.mrf.mxu0  ;;  %v853_v7 = vpop.f32.mrf.mxu1 }
 0x117   : > { %v857_v2 = vsel %vm278_vm0, %v811_v4, -inf  ;;  %v859_v11 = vsel %vm278_vm0, %v852_v5, -inf }
 0x118   : > { %v813_v12 = vpop.f32.mrf.mxu0  ;;  %v854_v13 = vpop.f32.mrf.mxu1  ;;  %v860_v14 = vmax.f32 %v856_v9, %v857_v2  ;;  %v861_v15 = vmax.f32 %v858_v10, %v859_v11 }
 0x11a   : > { %v862_v16 = vmax.f32 %v860_v14, %v861_v15 }
 0x11c   : > { %863 = vmax.xlane.f32.xlu0 %v862_v16 }
 0x160   : > { %v330_v17 = vpop.xlane.xlu1 %329 }
 0x161   : > { %1267 = vrcp.f32 %v330_v17 }
 0x16e   : > { %v1268_v18 = vpop.eup %1267 }
 0x16f   : > { %v339_v19 = vrot.slane %v1268_v18, %v294_v34 }
 0x171   : > { %v341_v20 = vmul.f32 %v1266_v39, %v339_v19 }
 0x173   : > { %v899_v21 = vrot.slane %v341_v20, %v1407_v58  ;;  %v892_v22 = vcombine.high %v341_v20, %v341_v20 }
 0x175   : > { %v907_v23 = vcombine.high %v899_v21, %v899_v21  ;;  %v906_v24 = vrot.slane %v892_v22, %v1407_v58  ;;  %v913_v55 = vpack.c.bf16 %v899_v21, %v899_v21 }
 0x177   : > { %v914_v25 = vpack.c.bf16 %v907_v23, %v907_v23  ;;  %v908_v26 = vcombine.high %v906_v24, %v906_v24  ;;  %v915_v56 = vpack.c.bf16 %v906_v24, %v906_v24 }
 0x179   : > { %953 = vmatprep.mubr.bf16.mxu0 %v914_v25  ;;  %v916_v27 = vpack.c.bf16 %v908_v26, %v908_v26 }
 0x17b   : > { %993 = vmatprep.mubr.bf16.mxu1 %v916_v27 }
 0x1a5   : > { %v864_v28 = vpop.xlane.xlu0 %863 }
 0x1a6   : > { %v865_v29 = vsub.f32 %v809_v62, %v864_v28  ;;  %v866_v30 = vsub.f32 %v811_v4, %v864_v28  ;;  %v867_v31 = vsub.f32 %v850_v63, %v864_v28  ;;  %v868_v32 = vsub.f32 %v852_v5, %v864_v28 }
 0x1a8   : > { %v869_v33 = vmul.f32 1.442695, %v865_v29  ;;  %v871_v35 = vmul.f32 1.442695, %v866_v30  ;;  %v873_v34 = vmul.f32 1.442695, %v867_v31 }
 0x1a9   : > { %v875_v36 = vmul.f32 1.442695, %v868_v32 }
 0x1aa   : > { %1269 = vpow2.f32 %v869_v33 }
 0x1ab   : > { %1271 = vpow2.f32 %v871_v35 }
 0x1ac   : > { %1273 = vpow2.f32 %v873_v34 }
 0x1ad   : > { %1275 = vpow2.f32 %v875_v36 }
 0x1b7   : > { %v1270_v37 = vpop.eup %1269 }
 0x1b8   : > { %v1272_v58 = vpop.eup %1271  ;;  %v877_v38 = vsel %vm278_vm0, %v1270_v37, 0.0 }
 0x1b9   : > { %v1274_v39 = vpop.eup %1273  ;;  %v878_v40 = vsel %vm278_vm0, %v1272_v58, 0.0 }
 0x1ba   : > { %v1276_v1 = vpop.eup %1275  ;;  %v879_v8 = vadd.f32 %v878_v40, %v877_v38  ;;  %v880_v41 = vsel %vm278_vm0, %v1274_v39, 0.0 }
 0x1bb   : > { %v882_v43 = vsel %vm278_vm0, %v1276_v1, 0.0 }
 0x1bc   : > { %v881_v42 = vadd.f32 %v880_v41, %v879_v8 }
 0x1be   : > { %v883_v44 = vadd.f32 %v882_v43, %v881_v42 }
 0x1c0   : > { %884 = vadd.xlane.f32.xlu1 %v883_v44 }
 0x249   : > { %v885_v45 = vpop.xlane.xlu1 %884 }
 0x24a   : > { %1277 = vrcp.f32 %v885_v45 }
 0x257   : > { %v1278_v46 = vpop.eup %1277 }
 0x258   : > { %v888_v47 = vmul.f32 %v1278_v46, %v1272_v58  ;;  %v890_v48 = vmul.f32 %v1278_v46, %v1276_v1  ;;  %v887_v49 = vmul.f32 %v1278_v46, %v1270_v37  ;;  %v889_v50 = vmul.f32 %v1278_v46, %v1274_v39 }
 0x25a   : > { %v918_v51 = vpack.c.bf16 %v888_v47, %v888_v47  ;;  %v920_v52 = vpack.c.bf16 %v890_v48, %v890_v48  ;;  %v917_v53 = vpack.c.bf16 %v887_v49, %v887_v49  ;;  %v919_v54 = vpack.c.bf16 %v889_v50, %v889_v50 }
 0x25c   : > { %935 = vmatprep.subr.bf16.mxu0 %v918_v51  ;;  %975 = vmatprep.subr.bf16.mxu1 %v920_v52 }
 0x25d   : > { %936 = vmatpush1.bf16.xpose.msra.mxu0 %v917_v53  ;;  %976 = vmatpush1.bf16.xpose.msra.mxu1 %v919_v54 }
 0x264   : > { %954 = vmatmul.mubr.bf16.vlgmr.msra.gmra.mxu0 %v913_v55  ;;  %994 = vmatmul.mubr.bf16.vlgmr.msra.gmra.mxu1 %v915_v56 }
 0x324   : > { %v955_v57 = vpop.f32.mrf.mxu0  ;;  %v995_v59 = vpop.f32.mrf.mxu1 }
 0x325   : > { %v996_v60 = vadd.f32 %v995_v59, %v955_v57 }
 0x326   : > { %v957_v61 = vpop.f32.mrf.mxu0  ;;  %v997_v62 = vpop.f32.mrf.mxu1 }
 0x327   : > { %1002 = vst.msk [vmem:[%s252_s17] sm:$0x3] %vm1001_vm1, %v996_v60 }
 0x328   : > { %v958_v63 = vpop.f32.mrf.mxu0  ;;  %v998_v0 = vpop.f32.mrf.mxu1 }
 0x32a   : > { %v959_v3 = vpop.f32.mrf.mxu0  ;;  %v999_v4 = vpop.f32.mrf.mxu1 }
 0x32b PF: > { %s16_s20 = sadd.s32 1, %s1285_s20  }
 0x32c   : > { %p13_p5 = scmp.ge.s32.totalorder %s16_s20, 5  }
 0x32e   :  { %15 = sbr.rel (!%p13_p5) target bundleno = 2 (0x2), region = 72 }

// kernel: forward.4
= control target key start
LH: loop header
LB: loop body
LE: loop exit
PB: predicated region body
PF: predicated region fallthrough
CT: control target
= control target key end

     0   :  { %s5144_s26 = smov 0   ;;  %s8341_s0 = inlined_call_operand.<no memory space> [shape: s32[1], index: 0, kind: input, shape index: {}]   ;;  %s8342_s1 = inlined_call_operand.vmem [shape: bf16[32,512], index: 1, kind: input, shape index: {}]   ;;  %s8343_s2 = inlined_call_operand.vmem [shape: f32[2,256], index: 2, kind: input, shape index: {}]   ;;  %s8344_s3 = inlined_call_operand.vmem [shape: bf16[512,768], index: 3, kind: input, shape index: {}]   ;;  %s8345_s4 = inlined_call_operand.vmem [shape: f32[1,768], index: 4, kind: input, shape index: {}]   ;;  %s8346_s5 = inlined_call_operand.vmem [shape: bf16[256,768], index: 5, kind: input, shape index: {}]   ;;  %s8347_s6 = inlined_call_operand.vmem [shape: f32[1,768], index: 6, kind: input, shape index: {}]   ;;  %s8348_s7 = inlined_call_operand.vmem [shape: f32[2,256], index: 7, kind: output, shape index: {}]  }
   0x1   :  { %12 = sst [smem:[#allocation4]] %s8341_s0 }
   0x2 LB: > { %s5150_s27 = sadd.s32 4294967295, %s5098_s26   ;;  %p3957_p0 = scmp.ge.s32.totalorder %s5098_s26, 1  ;;  %s5098_s26 = sphi %s5144_s26, %s18_s26  }
   0x3   : > { %p211_p1 = scmp.lt.s32.totalorder %s5098_s26, 3 }
   0x5   : > { %p212_p2 = pnand %p3957_p0, %p211_p1 }
   0x6   : > { %s3958_s28 = sshll.u32 (!%p212_p2), %s5150_s27, 1  ;;  %s5156_s0 = sshll.u32 (!%p212_p2), %s5150_s27, 3 }
   0x7   : > { %215 = sbr.rel (%p212_p2) target bundleno = 2613 (0xa35), region = 44  ;;  %p238_p3 = scmp.lt.s32.totalorder (!%p212_p2), %s3958_s28, 3 }
   0x8   : > { %s5158_s29 = sld [smem:[#allocation4]] (!%p212_p2)  ;;  %p3962_p4 = scmp.ne.s32.totalorder (!%p212_p2), %s5150_s27, 0 }
   0xc   : > { %s8999_s28 = smov (!%p238_p3, %s3958_s28), 3  ;;  %249 = sbr.rel (%p3962_p4) target bundleno = 19 (0x13), region = 48 }
   0xd   : > { %s4292_s30 = sshll.u32 %s8999_s28, 4 }
   0xe   : > { %s5163_s10 = scalar_lea.vmem %s8342_s1, %s4292_s30 }
  0x11   : > { %v250_v0 = vld [vmem:[%s8343_s2] sm:$0xf] }
  0x12   : > { %251 = vst [vmem:[#allocation2] sm:$0xf] %v250_v0 }
  0x13 PF: > { %p3963_p5 = scmp.gt.s32.totalorder %s5156_s0, %s5158_s29 }
  0x15   : > { %255 = sbr.rel (%p3963_p5) target bundleno = 2604 (0xa2c), region = 52 }
  0x1a   : > { %v4302_v1 = vld [vmem:[%s8344_s3 + $0x154] ss:$24 sps:$4 sm:$0xff]   ;;  %v4306_v3 = vld [vmem:[%s8344_s3 + $0x150] ss:$24 sps:$4 sm:$0xff]   ;;  %v4308_v5 = vld [vmem:[%s8344_s3 + $0x124] ss:$24 sps:$4 sm:$0xff]  }
  0x1b   : > { %v4304_v2 = vld [vmem:[%s8344_s3 + $0x454] ss:$24 sps:$4 sm:$0xff]   ;;  %1464 = vmatprep.subr.bf16.mxu0 %v4302_v1  ;;  %v4307_v4 = vld [vmem:[%s8344_s3 + $0x450] ss:$24 sps:$4 sm:$0xff]   ;;  %v4310_v6 = vld [vmem:[%s8344_s3 + $0x424] ss:$24 sps:$4 sm:$0xff]  }
  0x1c   : > { %1507 = vmatprep.subr.bf16.mxu1 %v4304_v2  ;;  %1465 = vmatpush1.bf16.msra.mxu0 %v4306_v3  ;;  %v4312_v7 = vld [vmem:[%s8344_s3 + $0x120] ss:$24 sps:$4 sm:$0xff]   ;;  %v4314_v9 = vld [vmem:[%s8344_s3 + $0xf4] ss:$24 sps:$4 sm:$0xff]   ;;  %v4318_v11 = vld [vmem:[%s8344_s3 + $0xf0] ss:$24 sps:$4 sm:$0xff]  }
  0x1d   : > { %1508 = vmatpush1.bf16.msra.mxu1 %v4307_v4  ;;  %1466 = vmatprep.subr.bf16.mxu0 %v4308_v5  ;;  %v4313_v8 = vld [vmem:[%s8344_s3 + $0x420] ss:$24 sps:$4 sm:$0xff]   ;;  %v4316_v10 = vld [vmem:[%s8344_s3 + $0x3f4] ss:$24 sps:$4 sm:$0xff]   ;;  %v4319_v12 = vld [vmem:[%s8344_s3 + $0x3f0] ss:$24 sps:$4 sm:$0xff]  }
  0x1e   : > { %1509 = vmatprep.subr.bf16.mxu1 %v4310_v6  ;;  %v4320_v13 = vld [vmem:[%s8344_s3 + $0xc4] ss:$24 sps:$4 sm:$0xff]   ;;  %v4324_v15 = vld [vmem:[%s8344_s3 + $0xc0] ss:$24 sps:$4 sm:$0xff]   ;;  %v4326_v17 = vld [vmem:[%s8344_s3 + $0x94] ss:$24 sps:$4 sm:$0xff]  }
  0x1f   : > { %v4322_v14 = vld [vmem:[%s8344_s3 + $0x3c4] ss:$24 sps:$4 sm:$0xff]   ;;  %v4325_v16 = vld [vmem:[%s8344_s3 + $0x3c0] ss:$24 sps:$4 sm:$0xff]   ;;  %v4328_v18 = vld [vmem:[%s8344_s3 + $0x394] ss:$24 sps:$4 sm:$0xff]  }
  0x20   : > { %1467 = vmatpush1.bf16.msra.mxu0 %v4312_v7  ;;  %v4330_v19 = vld [vmem:[%s8344_s3 + $0x90] ss:$24 sps:$4 sm:$0xff]   ;;  %v4332_v21 = vld [vmem:[%s8344_s3 + $0x64] ss:$24 sps:$4 sm:$0xff]   ;;  %v4336_v23 = vld [vmem:[%s8344_s3 + $0x60] ss:$24 sps:$4 sm:$0xff]  }
  0x21   : > { %1510 = vmatpush1.bf16.msra.mxu1 %v4313_v8  ;;  %1468 = vmatprep.subr.bf16.mxu0 %v4314_v9  ;;  %v4331_v20 = vld [vmem:[%s8344_s3 + $0x390] ss:$24 sps:$4 sm:$0xff]   ;;  %v4334_v22 = vld [vmem:[%s8344_s3 + $0x364] ss:$24 sps:$4 sm:$0xff]   ;;  %v4337_v24 = vld [vmem:[%s8344_s3 + $0x360] ss:$24 sps:$4 sm:$0xff]  }
  0x22   : > { %1511 = vmatprep.subr.bf16.mxu1 %v4316_v10  ;;  %v4338_v25 = vld [vmem:[%s8344_s3 + $0x34] ss:$24 sps:$4 sm:$0xff]   ;;  %v4342_v27 = vld [vmem:[%s8344_s3 + $0x30] ss:$24 sps:$4 sm:$0xff]   ;;  %v4344_v29 = vld [vmem:[%s8344_s3 + $0x4] ss:$24 sps:$4 sm:$0xff]  }
  0x23   : > { %v4340_v26 = vld [vmem:[%s8344_s3 + $0x334] ss:$24 sps:$4 sm:$0xff]   ;;  %v4343_v28 = vld [vmem:[%s8344_s3 + $0x330] ss:$24 sps:$4 sm:$0xff]   ;;  %v4346_v30 = vld [vmem:[%s8344_s3 + $0x304] ss:$24 sps:$4 sm:$0xff]  }
  0x24   : > { %1469 = vmatpush1.bf16.msra.mxu0 %v4318_v11  ;;  %v4348_v31 = vld [vmem:[%s8344_s3] ss:$24 sps:$4 sm:$0xff]   ;;  %v4350_v33 = vld [vmem:[%s8344_s3 + $0x2d4] ss:$24 sps:$4 sm:$0xff]   ;;  %v4354_v35 = vld [vmem:[%s8344_s3 + $0x2d0] ss:$24 sps:$4 sm:$0xff]  }
  0x25   : > { %1512 = vmatpush1.bf16.msra.mxu1 %v4319_v12  ;;  %1470 = vmatprep.subr.bf16.mxu0 %v4320_v13  ;;  %v4349_v32 = vld [vmem:[%s8344_s3 + $0x300] ss:$24 sps:$4 sm:$0xff]   ;;  %v4352_v34 = vld [vmem:[%s8344_s3 + $0x5d4] ss:$24 sps:$4 sm:$0xff]   ;;  %v4355_v36 = vld [vmem:[%s8344_s3 + $0x5d0] ss:$24 sps:$4 sm:$0xff]  }
  0x26   : > { %1513 = vmatprep.subr.bf16.mxu1 %v4322_v14  ;;  %v4356_v37 = vld [vmem:[%s8344_s3 + $0x2a4] ss:$24 sps:$4 sm:$0xff]   ;;  %v4360_v39 = vld [vmem:[%s8344_s3 + $0x2a0] ss:$24 sps:$4 sm:$0xff]   ;;  %v4362_v41 = vld [vmem:[%s8344_s3 + $0x274] ss:$24 sps:$4 sm:$0xff]  }
  0x27   : > { %v4358_v38 = vld [vmem:[%s8344_s3 + $0x5a4] ss:$24 sps:$4 sm:$0xff]   ;;  %v4361_v40 = vld [vmem:[%s8344_s3 + $0x5a0] ss:$24 sps:$4 sm:$0xff]   ;;  %v4364_v42 = vld [vmem:[%s8344_s3 + $0x574] ss:$24 sps:$4 sm:$0xff]  }
  0x28   : > { %1471 = vmatpush1.bf16.msra.mxu0 %v4324_v15  ;;  %v4366_v43 = vld [vmem:[%s8344_s3 + $0x270] ss:$24 sps:$4 sm:$0xff]   ;;  %v4368_v45 = vld [vmem:[%s8344_s3 + $0x244] ss:$24 sps:$4 sm:$0xff]   ;;  %v4372_v47 = vld [vmem:[%s8344_s3 + $0x240] ss:$24 sps:$4 sm:$0xff]  }
  0x29   : > { %1514 = vmatpush1.bf16.msra.mxu1 %v4325_v16  ;;  %1472 = vmatprep.subr.bf16.mxu0 %v4326_v17  ;;  %v4367_v44 = vld [vmem:[%s8344_s3 + $0x570] ss:$24 sps:$4 sm:$0xff]   ;;  %v4370_v46 = vld [vmem:[%s8344_s3 + $0x544] ss:$24 sps:$4 sm:$0xff]   ;;  %v4373_v48 = vld [vmem:[%s8344_s3 + $0x540] ss:$24 sps:$4 sm:$0xff]  }
  0x2a   : > { %1515 = vmatprep.subr.bf16.mxu1 %v4328_v18  ;;  %v4374_v49 = vld [vmem:[%s8344_s3 + $0x214] ss:$24 sps:$4 sm:$0xff]   ;;  %v4378_v53 = vld [vmem:[%s8344_s3 + $0x210] ss:$24 sps:$4 sm:$0xff]   ;;  %v4380_v55 = vld [vmem:[%s8344_s3 + $0x1e4] ss:$24 sps:$4 sm:$0xff]  }
  0x2b   : > { %v5319_v50 = vld [vmem:[%s5163_s10 + $0x4] ss:$16 sps:$4 sm:$0xff]   ;;  %v5322_v51 = vld [vmem:[%s5163_s10 + $0xc] ss:$16 sps:$4 sm:$0xff]   ;;  %v4379_v54 = vld [vmem:[%s8344_s3 + $0x510] ss:$24 sps:$4 sm:$0xff]  }
  0x2c   : > { %1473 = vmatpush1.bf16.msra.mxu0 %v4330_v19  ;;  %v4376_v52 = vld [vmem:[%s8344_s3 + $0x514] ss:$24 sps:$4 sm:$0xff]   ;;  %1496 = vmatprep.mubr.bf16.mxu0 %v5319_v50  ;;  %v4382_v56 = vld [vmem:[%s8344_s3 + $0x4e4] ss:$24 sps:$4 sm:$0xff]   ;;  %v4384_v57 = vld [vmem:[%s8344_s3 + $0x1e0] ss:$24 sps:$4 sm:$0xff]  }
  0x2d   : > { %1516 = vmatpush1.bf16.msra.mxu1 %v4331_v20  ;;  %1474 = vmatprep.subr.bf16.mxu0 %v4332_v21  ;;  %v4385_v58 = vld [vmem:[%s8344_s3 + $0x4e0] ss:$24 sps:$4 sm:$0xff]   ;;  %v4386_v59 = vld [vmem:[%s8344_s3 + $0x1b4] ss:$24 sps:$4 sm:$0xff]   ;;  %v4390_v61 = vld [vmem:[%s8344_s3 + $0x1b0] ss:$24 sps:$4 sm:$0xff]  }
  0x2e   : > { %1517 = vmatprep.subr.bf16.mxu1 %v4334_v22  ;;  %1539 = vmatprep.mubr.bf16.mxu1 %v5322_v51  ;;  %v4388_v60 = vld [vmem:[%s8344_s3 + $0x4b4] ss:$24 sps:$4 sm:$0xff]   ;;  %v4391_v62 = vld [vmem:[%s8344_s3 + $0x4b0] ss:$24 sps:$4 sm:$0xff]   ;;  %v4392_v63 = vld [vmem:[%s8344_s3 + $0x184] ss:$24 sps:$4 sm:$0xff]  }
  0x2f   : > { %v4394_v0 = vld [vmem:[%s8344_s3 + $0x484] ss:$24 sps:$4 sm:$0xff]   ;;  %v4396_v1 = vld [vmem:[%s8344_s3 + $0x180] ss:$24 sps:$4 sm:$0xff]   ;;  %s2904_s12 = sadd.s32 2, %s5156_s0  ;;  %s3108_s16 = sadd.s32 3, %s5156_s0 }
  0x30   : > { %1475 = vmatpush1.bf16.msra.mxu0 %v4336_v23  ;;  %v4397_v2 = vld [vmem:[%s8344_s3 + $0x480] ss:$24 sps:$4 sm:$0xff]   ;;  %v4405_v3 = vld [vmem:[%s8344_s3 + $0x15c] ss:$24 sps:$4 sm:$0xff]   ;;  %v4412_v9 = vld [vmem:[%s8344_s3 + $0x12c] ss:$24 sps:$4 sm:$0xff]   ;;  %p2905_p7 = scmp.le.s32.totalorder %s2904_s12, %s5158_s29  ;;  %p3109_p8 = scmp.le.s32.totalorder %s3108_s16, %s5158_s29 }
  0x31   : > { %1518 = vmatpush1.bf16.msra.mxu1 %v4337_v24  ;;  %1476 = vmatprep.subr.bf16.mxu0 %v4338_v25  ;;  %v4408_v4 = vld [vmem:[%s8344_s3 + $0x45c] ss:$24 sps:$4 sm:$0xff]   ;;  %v5378_v5 = vld [vmem:[%s5163_s10] ss:$16 sps:$4 sm:$0xff]   ;;  %v5387_v8 = vld [vmem:[%s5163_s10 + $0x8] ss:$16 sps:$4 sm:$0xff]  }
  0x32   : > { %1519 = vmatprep.subr.bf16.mxu1 %v4340_v26  ;;  %v4403_v6 = vld [vmem:[%s8344_s3 + $0x158] ss:$24 sps:$4 sm:$0xff]   ;;  %v4415_v10 = vld [vmem:[%s8344_s3 + $0x42c] ss:$24 sps:$4 sm:$0xff]   ;;  %v4410_v11 = vld [vmem:[%s8344_s3 + $0x128] ss:$24 sps:$4 sm:$0xff]  }
  0x33   : > { %v4406_v7 = vld [vmem:[%s8344_s3 + $0x458] ss:$24 sps:$4 sm:$0xff]   ;;  %v4413_v12 = vld [vmem:[%s8344_s3 + $0x428] ss:$24 sps:$4 sm:$0xff]   ;;  %v4418_v13 = vld [vmem:[%s8344_s3 + $0xfc] ss:$24 sps:$4 sm:$0xff]  }
  0x34   : > { %1477 = vmatpush1.bf16.msra.mxu0 %v4342_v27  ;;  %v4421_v14 = vld [vmem:[%s8344_s3 + $0x3fc] ss:$24 sps:$4 sm:$0xff]   ;;  %v4416_v15 = vld [vmem:[%s8344_s3 + $0xf8] ss:$24 sps:$4 sm:$0xff]   ;;  %v4424_v17 = vld [vmem:[%s8344_s3 + $0xcc] ss:$24 sps:$4 sm:$0xff]  }
  0x35   : > { %1520 = vmatpush1.bf16.msra.mxu1 %v4343_v28  ;;  %1478 = vmatprep.subr.bf16.mxu0 %v4344_v29  ;;  %v4419_v16 = vld [vmem:[%s8344_s3 + $0x3f8] ss:$24 sps:$4 sm:$0xff]   ;;  %v4427_v18 = vld [vmem:[%s8344_s3 + $0x3cc] ss:$24 sps:$4 sm:$0xff]   ;;  %v4422_v19 = vld [vmem:[%s8344_s3 + $0xc8] ss:$24 sps:$4 sm:$0xff]  }
  0x36   : > { %1521 = vmatprep.subr.bf16.mxu1 %v4346_v30  ;;  %v4425_v20 = vld [vmem:[%s8344_s3 + $0x3c8] ss:$24 sps:$4 sm:$0xff]   ;;  %v4430_v21 = vld [vmem:[%s8344_s3 + $0x9c] ss:$24 sps:$4 sm:$0xff]   ;;  %v4428_v23 = vld [vmem:[%s8344_s3 + $0x98] ss:$24 sps:$4 sm:$0xff]  }
  0x37   : > { %v4433_v22 = vld [vmem:[%s8344_s3 + $0x39c] ss:$24 sps:$4 sm:$0xff]   ;;  %v4431_v24 = vld [vmem:[%s8344_s3 + $0x398] ss:$24 sps:$4 sm:$0xff]   ;;  %v4436_v25 = vld [vmem:[%s8344_s3 + $0x6c] ss:$24 sps:$4 sm:$0xff]  }
  0x38   : > { %1479 = vmatpush1.bf16.msra.mxu0 %v4348_v31  ;;  %v4439_v26 = vld [vmem:[%s8344_s3 + $0x36c] ss:$24 sps:$4 sm:$0xff]   ;;  %v4434_v27 = vld [vmem:[%s8344_s3 + $0x68] ss:$24 sps:$4 sm:$0xff]   ;;  %v4442_v29 = vld [vmem:[%s8344_s3 + $0x3c] ss:$24 sps:$4 sm:$0xff]  }
  0x39   : > { %1522 = vmatpush1.bf16.msra.mxu1 %v4349_v32  ;;  %1480 = vmatprep.subr.bf16.mxu0 %v4350_v33  ;;  %v4437_v28 = vld [vmem:[%s8344_s3 + $0x368] ss:$24 sps:$4 sm:$0xff]   ;;  %v4445_v30 = vld [vmem:[%s8344_s3 + $0x33c] ss:$24 sps:$4 sm:$0xff]   ;;  %v4440_v31 = vld [vmem:[%s8344_s3 + $0x38] ss:$24 sps:$4 sm:$0xff]  }
  0x3a   : > { %1523 = vmatprep.subr.bf16.mxu1 %v4352_v34  ;;  %v4443_v32 = vld [vmem:[%s8344_s3 + $0x338] ss:$24 sps:$4 sm:$0xff]   ;;  %v4448_v33 = vld [vmem:[%s8344_s3 + $0xc] ss:$24 sps:$4 sm:$0xff]   ;;  %s2700_s10 = sadd.s32 1, %s5156_s0  ;;  %s3294_s20 = sadd.s32 4, %s5156_s0 }
  0x3b   : > { %v4451_v34 = vld [vmem:[%s8344_s3 + $0x30c] ss:$24 sps:$4 sm:$0xff]   ;;  %p2701_p6 = scmp.le.s32.totalorder %s2700_s10, %s5158_s29  ;;  %p3295_p9 = scmp.le.s32.totalorder %s3294_s20, %s5158_s29 }
  0x3c   : > { %1481 = vmatpush2.bf16.msra.mxu0 %v4354_v35  ;;  %v4446_v35 = vld [vmem:[%s8344_s3 + $0x8] ss:$24 sps:$4 sm:$0xff]   ;;  %s2906_s13 = scalar_select %p2905_p7, 1, 0 }
  0x3d   : > { %1524 = vmatpush2.bf16.msra.mxu1 %v4355_v36  ;;  %1482 = vmatprep.subr.bf16.mxu0 %v4356_v37  ;;  %v4449_v36 = vld [vmem:[%s8344_s3 + $0x308] ss:$24 sps:$4 sm:$0xff]   ;;  %v4454_v37 = vld [vmem:[%s8344_s3 + $0x2dc] ss:$24 sps:$4 sm:$0xff]   ;;  %s2702_s22 = scalar_select %p2701_p6, 1, 0 }
  0x3e   : > { %1525 = vmatprep.subr.bf16.mxu1 %v4358_v38  ;;  %v4457_v38 = vld [vmem:[%s8344_s3 + $0x5dc] ss:$24 sps:$4 sm:$0xff]   ;;  %s3110_s17 = scalar_select %p3109_p8, 1, 0 }
  0x3f   : > { %s3296_s21 = scalar_select %p3295_p9, 1, 0 }
  0x40   : > { %1483 = vmatpush2.bf16.msra.mxu0 %v4360_v39  ;;  %v4452_v39 = vld [vmem:[%s8344_s3 + $0x2d8] ss:$24 sps:$4 sm:$0xff]   ;;  %s3492_s9 = sadd.s32 5, %s5156_s0  ;;  %s3696_s14 = sadd.s32 6, %s5156_s0 }
  0x41   : > { %1526 = vmatpush2.bf16.msra.mxu1 %v4361_v40  ;;  %1484 = vmatprep.subr.bf16.mxu0 %v4362_v41  ;;  %v4455_v40 = vld [vmem:[%s8344_s3 + $0x5d8] ss:$24 sps:$4 sm:$0xff]   ;;  %v4460_v41 = vld [vmem:[%s8344_s3 + $0x2ac] ss:$24 sps:$4 sm:$0xff]   ;;  %p3493_p10 = scmp.le.s32.totalorder %s3492_s9, %s5158_s29  ;;  %p3697_p11 = scmp.le.s32.totalorder %s3696_s14, %s5158_s29 }
  0x42   : > { %1527 = vmatprep.subr.bf16.mxu1 %v4364_v42  ;;  %v4463_v42 = vld [vmem:[%s8344_s3 + $0x5ac] ss:$24 sps:$4 sm:$0xff]   ;;  %s3900_s16 = sadd.s32 7, %s5156_s0 }
  0x43   : > { %s3494_s11 = scalar_select %p3493_p10, 1, 0 }
  0x44   : > { %1485 = vmatpush2.bf16.msra.mxu0 %v4366_v43  ;;  %v4458_v43 = vld [vmem:[%s8344_s3 + $0x2a8] ss:$24 sps:$4 sm:$0xff]   ;;  %s3698_s15 = scalar_select %p3697_p11, 1, 0 }
  0x45   : > { %1528 = vmatpush2.bf16.msra.mxu1 %v4367_v44  ;;  %1486 = vmatprep.subr.bf16.mxu0 %v4368_v45  ;;  %v4461_v44 = vld [vmem:[%s8344_s3 + $0x5a8] ss:$24 sps:$4 sm:$0xff]   ;;  %v4466_v45 = vld [vmem:[%s8344_s3 + $0x27c] ss:$24 sps:$4 sm:$0xff]   ;;  %p3901_p12 = scmp.le.s32.totalorder %s3900_s16, %s5158_s29 }
  0x46   : > { %1529 = vmatprep.subr.bf16.mxu1 %v4370_v46  ;;  %v4469_v46 = vld [vmem:[%s8344_s3 + $0x57c] ss:$24 sps:$4 sm:$0xff]  }
  0x48   : > { %1487 = vmatpush2.bf16.msra.mxu0 %v4372_v47  ;;  %v4464_v47 = vld [vmem:[%s8344_s3 + $0x278] ss:$24 sps:$4 sm:$0xff]  }
  0x49   : > { %1530 = vmatpush2.bf16.msra.mxu1 %v4373_v48  ;;  %1488 = vmatprep.subr.bf16.mxu0 %v4374_v49  ;;  %v4467_v48 = vld [vmem:[%s8344_s3 + $0x578] ss:$24 sps:$4 sm:$0xff]   ;;  %v4472_v49 = vld [vmem:[%s8344_s3 + $0x24c] ss:$24 sps:$4 sm:$0xff]  }
  0x4a   : > { %1531 = vmatprep.subr.bf16.mxu1 %v4376_v52  ;;  %v4475_v52 = vld [vmem:[%s8344_s3 + $0x54c] ss:$24 sps:$4 sm:$0xff]  }
  0x4c   : > { %1489 = vmatpush2.bf16.msra.mxu0 %v4378_v53  ;;  %v4470_v53 = vld [vmem:[%s8344_s3 + $0x248] ss:$24 sps:$4 sm:$0xff]  }
  0x4d   : > { %1532 = vmatpush2.bf16.msra.mxu1 %v4379_v54  ;;  %1490 = vmatprep.subr.bf16.mxu0 %v4380_v55  ;;  %v4473_v54 = vld [vmem:[%s8344_s3 + $0x548] ss:$24 sps:$4 sm:$0xff]   ;;  %v4478_v55 = vld [vmem:[%s8344_s3 + $0x21c] ss:$24 sps:$4 sm:$0xff]  }
  0x4e   : > { %1533 = vmatprep.subr.bf16.mxu1 %v4382_v56  ;;  %v4481_v56 = vld [vmem:[%s8344_s3 + $0x51c] ss:$24 sps:$4 sm:$0xff]  }
  0x50   : > { %1491 = vmatpush2.bf16.msra.mxu0 %v4384_v57  ;;  %v4476_v57 = vld [vmem:[%s8344_s3 + $0x218] ss:$24 sps:$4 sm:$0xff]  }
  0x51   : > { %1534 = vmatpush2.bf16.msra.mxu1 %v4385_v58  ;;  %1492 = vmatprep.subr.bf16.mxu0 %v4386_v59  ;;  %v4479_v58 = vld [vmem:[%s8344_s3 + $0x518] ss:$24 sps:$4 sm:$0xff]   ;;  %v4484_v59 = vld [vmem:[%s8344_s3 + $0x1ec] ss:$24 sps:$4 sm:$0xff]  }
  0x52   : > { %1535 = vmatprep.subr.bf16.mxu1 %v4388_v60  ;;  %v4487_v60 = vld [vmem:[%s8344_s3 + $0x4ec] ss:$24 sps:$4 sm:$0xff]  }
  0x54   : > { %1493 = vmatpush2.bf16.msra.mxu0 %v4390_v61  ;;  %v4482_v61 = vld [vmem:[%s8344_s3 + $0x1e8] ss:$24 sps:$4 sm:$0xff]  }
  0x55   : > { %1536 = vmatpush2.bf16.msra.mxu1 %v4391_v62  ;;  %1494 = vmatprep.subr.bf16.mxu0 %v4392_v63  ;;  %v4485_v62 = vld [vmem:[%s8344_s3 + $0x4e8] ss:$24 sps:$4 sm:$0xff]   ;;  %v4490_v63 = vld [vmem:[%s8344_s3 + $0x1bc] ss:$24 sps:$4 sm:$0xff]  }
  0x56   : > { %1537 = vmatprep.subr.bf16.mxu1 %v4394_v0  ;;  %v4493_v0 = vld [vmem:[%s8344_s3 + $0x4bc] ss:$24 sps:$4 sm:$0xff]  }
  0x58   : > { %1495 = vmatpush2.bf16.msra.mxu0 %v4396_v1  ;;  %v4488_v1 = vld [vmem:[%s8344_s3 + $0x1b8] ss:$24 sps:$4 sm:$0xff]  }
  0x59   : > { %1538 = vmatpush2.bf16.msra.mxu1 %v4397_v2  ;;  %1550 = vmatprep.subr.bf16.mxu0 %v4405_v3  ;;  %v4491_v2 = vld [vmem:[%s8344_s3 + $0x4b8] ss:$24 sps:$4 sm:$0xff]   ;;  %v4496_v3 = vld [vmem:[%s8344_s3 + $0x18c] ss:$24 sps:$4 sm:$0xff]  }
  0x5a   : > { %1593 = vmatprep.subr.bf16.mxu1 %v4408_v4  ;;  %v4499_v4 = vld [vmem:[%s8344_s3 + $0x48c] ss:$24 sps:$4 sm:$0xff]  }
  0x5b   : > { %1497 = vmatmul.mubr.bf16.vlgmr.msra.gmra.mxu0 %v5378_v5 }
  0x5c   : > { %1540 = vmatmul.mubr.bf16.vlgmr.msra.gmra.mxu1 %v5387_v8  ;;  %1551 = vmatpush1.bf16.msra.mxu0 %v4403_v6  ;;  %v4494_v6 = vld [vmem:[%s8344_s3 + $0x188] ss:$24 sps:$4 sm:$0xff]  }
  0x5d   : > { %1594 = vmatpush1.bf16.msra.mxu1 %v4406_v7  ;;  %1552 = vmatprep.subr.bf16.mxu0 %v4412_v9  ;;  %v4497_v7 = vld [vmem:[%s8344_s3 + $0x488] ss:$24 sps:$4 sm:$0xff]   ;;  %v4502_v9 = vld [vmem:[%s8344_s3 + $0x164] ss:$24 sps:$4 sm:$0xff]  }
  0x5e   : > { %1595 = vmatprep.subr.bf16.mxu1 %v4415_v10  ;;  %1582 = vmatprep.mubr.bf16.mxu0 %v5319_v50  ;;  %v4505_v10 = vld [vmem:[%s8344_s3 + $0x464] ss:$24 sps:$4 sm:$0xff]  }
  0x5f   : > { %1625 = vmatprep.mubr.bf16.mxu1 %v5322_v51 }
  0x60   : > { %1553 = vmatpush1.bf16.msra.mxu0 %v4410_v11  ;;  %v4500_v11 = vld [vmem:[%s8344_s3 + $0x160] ss:$24 sps:$4 sm:$0xff]  }
  0x61   : > { %1596 = vmatpush1.bf16.msra.mxu1 %v4413_v12  ;;  %1554 = vmatprep.subr.bf16.mxu0 %v4418_v13  ;;  %v4503_v12 = vld [vmem:[%s8344_s3 + $0x460] ss:$24 sps:$4 sm:$0xff]   ;;  %v4508_v13 = vld [vmem:[%s8344_s3 + $0x134] ss:$24 sps:$4 sm:$0xff]  }
  0x62   : > { %1597 = vmatprep.subr.bf16.mxu1 %v4421_v14  ;;  %v4511_v14 = vld [vmem:[%s8344_s3 + $0x434] ss:$24 sps:$4 sm:$0xff]  }
  0x64   : > { %1555 = vmatpush1.bf16.msra.mxu0 %v4416_v15  ;;  %v4506_v15 = vld [vmem:[%s8344_s3 + $0x130] ss:$24 sps:$4 sm:$0xff]  }
  0x65   : > { %1598 = vmatpush1.bf16.msra.mxu1 %v4419_v16  ;;  %1556 = vmatprep.subr.bf16.mxu0 %v4424_v17  ;;  %v4509_v16 = vld [vmem:[%s8344_s3 + $0x430] ss:$24 sps:$4 sm:$0xff]   ;;  %v4514_v17 = vld [vmem:[%s8344_s3 + $0x104] ss:$24 sps:$4 sm:$0xff]  }
  0x66   : > { %1599 = vmatprep.subr.bf16.mxu1 %v4427_v18  ;;  %v4517_v18 = vld [vmem:[%s8344_s3 + $0x404] ss:$24 sps:$4 sm:$0xff]  }
  0x68   : > { %1557 = vmatpush1.bf16.msra.mxu0 %v4422_v19  ;;  %v4512_v19 = vld [vmem:[%s8344_s3 + $0x100] ss:$24 sps:$4 sm:$0xff]  }
  0x69   : > { %1600 = vmatpush1.bf16.msra.mxu1 %v4425_v20  ;;  %1558 = vmatprep.subr.bf16.mxu0 %v4430_v21  ;;  %v4515_v20 = vld [vmem:[%s8344_s3 + $0x400] ss:$24 sps:$4 sm:$0xff]   ;;  %v4520_v21 = vld [vmem:[%s8344_s3 + $0xd4] ss:$24 sps:$4 sm:$0xff]  }
  0x6a   : > { %1601 = vmatprep.subr.bf16.mxu1 %v4433_v22  ;;  %v4521_v22 = vld [vmem:[%s8344_s3 + $0x3d0] ss:$24 sps:$4 sm:$0xff]  }
  0x6c   : > { %1559 = vmatpush1.bf16.msra.mxu0 %v4428_v23  ;;  %v4526_v23 = vld [vmem:[%s8344_s3 + $0xa4] ss:$24 sps:$4 sm:$0xff]  }
  0x6d   : > { %1602 = vmatpush1.bf16.msra.mxu1 %v4431_v24  ;;  %1560 = vmatprep.subr.bf16.mxu0 %v4436_v25  ;;  %v4529_v24 = vld [vmem:[%s8344_s3 + $0x3a4] ss:$24 sps:$4 sm:$0xff]   ;;  %v4524_v25 = vld [vmem:[%s8344_s3 + $0xa0] ss:$24 sps:$4 sm:$0xff]  }
  0x6e   : > { %1603 = vmatprep.subr.bf16.mxu1 %v4439_v26  ;;  %v4527_v26 = vld [vmem:[%s8344_s3 + $0x3a0] ss:$24 sps:$4 sm:$0xff]  }
  0x70   : > { %1561 = vmatpush1.bf16.msra.mxu0 %v4434_v27  ;;  %v4532_v27 = vld [vmem:[%s8344_s3 + $0x74] ss:$24 sps:$4 sm:$0xff]  }
  0x71   : > { %1604 = vmatpush1.bf16.msra.mxu1 %v4437_v28  ;;  %1562 = vmatprep.subr.bf16.mxu0 %v4442_v29  ;;  %v4535_v28 = vld [vmem:[%s8344_s3 + $0x374] ss:$24 sps:$4 sm:$0xff]   ;;  %v4530_v29 = vld [vmem:[%s8344_s3 + $0x70] ss:$24 sps:$4 sm:$0xff]  }
  0x72   : > { %1605 = vmatprep.subr.bf16.mxu1 %v4445_v30  ;;  %v4533_v30 = vld [vmem:[%s8344_s3 + $0x370] ss:$24 sps:$4 sm:$0xff]  }
  0x74   : > { %1563 = vmatpush1.bf16.msra.mxu0 %v4440_v31  ;;  %v4538_v31 = vld [vmem:[%s8344_s3 + $0x44] ss:$24 sps:$4 sm:$0xff]  }
  0x75   : > { %1606 = vmatpush1.bf16.msra.mxu1 %v4443_v32  ;;  %1564 = vmatprep.subr.bf16.mxu0 %v4448_v33  ;;  %v4541_v32 = vld [vmem:[%s8344_s3 + $0x344] ss:$24 sps:$4 sm:$0xff]   ;;  %v4536_v33 = vld [vmem:[%s8344_s3 + $0x40] ss:$24 sps:$4 sm:$0xff]  }
  0x76   : > { %1607 = vmatprep.subr.bf16.mxu1 %v4451_v34  ;;  %v4539_v34 = vld [vmem:[%s8344_s3 + $0x340] ss:$24 sps:$4 sm:$0xff]  }
  0x78   : > { %1565 = vmatpush1.bf16.msra.mxu0 %v4446_v35  ;;  %v4544_v35 = vld [vmem:[%s8344_s3 + $0x14] ss:$24 sps:$4 sm:$0xff]  }
  0x79   : > { %1608 = vmatpush1.bf16.msra.mxu1 %v4449_v36  ;;  %1566 = vmatprep.subr.bf16.mxu0 %v4454_v37  ;;  %v4547_v36 = vld [vmem:[%s8344_s3 + $0x314] ss:$24 sps:$4 sm:$0xff]   ;;  %v4542_v37 = vld [vmem:[%s8344_s3 + $0x10] ss:$24 sps:$4 sm:$0xff]  }
  0x7a   : > { %1609 = vmatprep.subr.bf16.mxu1 %v4457_v38  ;;  %v4545_v38 = vld [vmem:[%s8344_s3 + $0x310] ss:$24 sps:$4 sm:$0xff]  }
  0x7c   : > { %1567 = vmatpush2.bf16.msra.mxu0 %v4452_v39  ;;  %v4550_v39 = vld [vmem:[%s8344_s3 + $0x2e4] ss:$24 sps:$4 sm:$0xff]  }
  0x7d   : > { %1610 = vmatpush2.bf16.msra.mxu1 %v4455_v40  ;;  %1568 = vmatprep.subr.bf16.mxu0 %v4460_v41  ;;  %v4553_v40 = vld [vmem:[%s8344_s3 + $0x5e4] ss:$24 sps:$4 sm:$0xff]   ;;  %v4548_v41 = vld [vmem:[%s8344_s3 + $0x2e0] ss:$24 sps:$4 sm:$0xff]  }
  0x7e   : > { %1611 = vmatprep.subr.bf16.mxu1 %v4463_v42  ;;  %v4551_v42 = vld [vmem:[%s8344_s3 + $0x5e0] ss:$24 sps:$4 sm:$0xff]  }
  0x80   : > { %1569 = vmatpush2.bf16.msra.mxu0 %v4458_v43  ;;  %v4556_v43 = vld [vmem:[%s8344_s3 + $0x2b4] ss:$24 sps:$4 sm:$0xff]  }
  0x81   : > { %1612 = vmatpush2.bf16.msra.mxu1 %v4461_v44  ;;  %1570 = vmatprep.subr.bf16.mxu0 %v4466_v45  ;;  %v4559_v44 = vld [vmem:[%s8344_s3 + $0x5b4] ss:$24 sps:$4 sm:$0xff]   ;;  %v4554_v45 = vld [vmem:[%s8344_s3 + $0x2b0] ss:$24 sps:$4 sm:$0xff]  }
  0x82   : > { %1613 = vmatprep.subr.bf16.mxu1 %v4469_v46  ;;  %v4557_v46 = vld [vmem:[%s8344_s3 + $0x5b0] ss:$24 sps:$4 sm:$0xff]  }
  0x84   : > { %1571 = vmatpush2.bf16.msra.mxu0 %v4464_v47  ;;  %v4562_v47 = vld [vmem:[%s8344_s3 + $0x284] ss:$24 sps:$4 sm:$0xff]  }
  0x85   : > { %1614 = vmatpush2.bf16.msra.mxu1 %v4467_v48  ;;  %1572 = vmatprep.subr.bf16.mxu0 %v4472_v49  ;;  %v4565_v48 = vld [vmem:[%s8344_s3 + $0x584] ss:$24 sps:$4 sm:$0xff]   ;;  %v4560_v49 = vld [vmem:[%s8344_s3 + $0x280] ss:$24 sps:$4 sm:$0xff]  }
  0x86   : > { %1615 = vmatprep.subr.bf16.mxu1 %v4475_v52  ;;  %v4563_v52 = vld [vmem:[%s8344_s3 + $0x580] ss:$24 sps:$4 sm:$0xff]  }
  0x88   : > { %1573 = vmatpush2.bf16.msra.mxu0 %v4470_v53  ;;  %v4568_v53 = vld [vmem:[%s8344_s3 + $0x254] ss:$24 sps:$4 sm:$0xff]  }
  0x89   : > { %1616 = vmatpush2.bf16.msra.mxu1 %v4473_v54  ;;  %1574 = vmatprep.subr.bf16.mxu0 %v4478_v55  ;;  %v4571_v54 = vld [vmem:[%s8344_s3 + $0x554] ss:$24 sps:$4 sm:$0xff]   ;;  %v4566_v55 = vld [vmem:[%s8344_s3 + $0x250] ss:$24 sps:$4 sm:$0xff]  }
  0x8a   : > { %1617 = vmatprep.subr.bf16.mxu1 %v4481_v56  ;;  %v4569_v56 = vld [vmem:[%s8344_s3 + $0x550] ss:$24 sps:$4 sm:$0xff]  }
  0x8c   : > { %1575 = vmatpush2.bf16.msra.mxu0 %v4476_v57  ;;  %v4574_v57 = vld [vmem:[%s8344_s3 + $0x224] ss:$24 sps:$4 sm:$0xff]  }
  0x8d   : > { %1618 = vmatpush2.bf16.msra.mxu1 %v4479_v58  ;;  %1576 = vmatprep.subr.bf16.mxu0 %v4484_v59  ;;  %v4577_v58 = vld [vmem:[%s8344_s3 + $0x524] ss:$24 sps:$4 sm:$0xff]   ;;  %v4572_v59 = vld [vmem:[%s8344_s3 + $0x220] ss:$24 sps:$4 sm:$0xff]  }
  0x8e   : > { %1619 = vmatprep.subr.bf16.mxu1 %v4487_v60  ;;  %v4575_v60 = vld [vmem:[%s8344_s3 + $0x520] ss:$24 sps:$4 sm:$0xff]  }
  0x90   : > { %1577 = vmatpush2.bf16.msra.mxu0 %v4482_v61  ;;  %v4580_v61 = vld [vmem:[%s8344_s3 + $0x1f4] ss:$24 sps:$4 sm:$0xff]  }
  0x91   : > { %1620 = vmatpush2.bf16.msra.mxu1 %v4485_v62  ;;  %1578 = vmatprep.subr.bf16.mxu0 %v4490_v63  ;;  %v4583_v62 = vld [vmem:[%s8344_s3 + $0x4f4] ss:$24 sps:$4 sm:$0xff]   ;;  %v4578_v63 = vld [vmem:[%s8344_s3 + $0x1f0] ss:$24 sps:$4 sm:$0xff]  }
  0x92   : > { %1621 = vmatprep.subr.bf16.mxu1 %v4493_v0  ;;  %v4581_v0 = vld [vmem:[%s8344_s3 + $0x4f0] ss:$24 sps:$4 sm:$0xff]  }
  0x94   : > { %1579 = vmatpush2.bf16.msra.mxu0 %v4488_v1  ;;  %v4586_v1 = vld [vmem:[%s8344_s3 + $0x1c4] ss:$24 sps:$4 sm:$0xff]  }
  0x95   : > { %1622 = vmatpush2.bf16.msra.mxu1 %v4491_v2  ;;  %1580 = vmatprep.subr.bf16.mxu0 %v4496_v3  ;;  %v4589_v2 = vld [vmem:[%s8344_s3 + $0x4c4] ss:$24 sps:$4 sm:$0xff]   ;;  %v4584_v3 = vld [vmem:[%s8344_s3 + $0x1c0] ss:$24 sps:$4 sm:$0xff]  }
  0x96   : > { %1623 = vmatprep.subr.bf16.mxu1 %v4499_v4  ;;  %v4587_v4 = vld [vmem:[%s8344_s3 + $0x4c0] ss:$24 sps:$4 sm:$0xff]  }
  0x98   : > { %1581 = vmatpush2.bf16.msra.mxu0 %v4494_v6  ;;  %v4592_v6 = vld [vmem:[%s8344_s3 + $0x194] ss:$24 sps:$4 sm:$0xff]  }
  0x99   : > { %1624 = vmatpush2.bf16.msra.mxu1 %v4497_v7  ;;  %1636 = vmatprep.subr.bf16.mxu0 %v4502_v9  ;;  %v4595_v7 = vld [vmem:[%s8344_s3 + $0x494] ss:$24 sps:$4 sm:$0xff]   ;;  %v4590_v9 = vld [vmem:[%s8344_s3 + $0x190] ss:$24 sps:$4 sm:$0xff]  }
  0x9a   : > { %1679 = vmatprep.subr.bf16.mxu1 %v4505_v10  ;;  %v4593_v10 = vld [vmem:[%s8344_s3 + $0x490] ss:$24 sps:$4 sm:$0xff]  }
  0x9b   : > { %1583 = vmatmul.mubr.bf16.vlgmr.msra.gmra.mxu0 %v5378_v5 }
  0x9c   : > { %1626 = vmatmul.mubr.bf16.vlgmr.msra.gmra.mxu1 %v5387_v8  ;;  %1637 = vmatpush1.bf16.msra.mxu0 %v4500_v11  ;;  %v5769_v11 = vld.sshfl [vmem:[#allocation2] sm:$0x33 pattern:$0x76325410] }
  0x9d   : > { %1680 = vmatpush1.bf16.msra.mxu1 %v4503_v12  ;;  %1638 = vmatprep.subr.bf16.mxu0 %v4508_v13  ;;  %8603 = vst [vmem:[#allocation5_spill] sm:$0xff] %v5769_v11  ;;  %v5774_v12 = vld [vmem:[%s8346_s5 + $0x154] ss:$24 sps:$4 sm:$0xff]  }
  0x9e   : > { %1681 = vmatprep.subr.bf16.mxu1 %v4511_v14  ;;  %1668 = vmatprep.mubr.bf16.mxu0 %v5319_v50  ;;  %v4523_v50 = vld [vmem:[%s8344_s3 + $0x3d4] ss:$24 sps:$4 sm:$0xff]   ;;  %8604 = vst [vmem:[#allocation6_spill] sm:$0xff] %v5774_v12  ;;  %v5783_v14 = vcombine.high %v5769_v11, %v5769_v11 }
  0x9f   : > { %1711 = vmatprep.mubr.bf16.mxu1 %v5322_v51  ;;  %v4518_v51 = vld [vmem:[%s8344_s3 + $0xd0] ss:$24 sps:$4 sm:$0xff]   ;;  %v5779_v13 = vld [vmem:[%s8346_s5 + $0x15c] ss:$24 sps:$4 sm:$0xff]  }
  0xa0   : > { %1639 = vmatpush1.bf16.msra.mxu0 %v4506_v15  ;;  %8605 = vst [vmem:[#allocation7_spill] sm:$0xff] %v5779_v13  ;;  %8606 = vst [vmem:[#allocation8_spill] sm:$0xff] %v5783_v14  ;;  %v5788_v15 = vld [vmem:[%s8346_s5 + $0x150] ss:$24 sps:$4 sm:$0xff]  }
  0xa1   : > { %1682 = vmatpush1.bf16.msra.mxu1 %v4509_v16  ;;  %1640 = vmatprep.subr.bf16.mxu0 %v4514_v17  ;;  %8607 = vst [vmem:[#allocation9_spill] sm:$0xff] %v5788_v15  ;;  %v5793_v16 = vld [vmem:[%s8346_s5 + $0x158] ss:$24 sps:$4 sm:$0xff]   ;;  %v5798_v17 = vld [vmem:[%s8346_s5 + $0x124] ss:$24 sps:$4 sm:$0xff]  }
  0xa2   : > { %1683 = vmatprep.subr.bf16.mxu1 %v4517_v18  ;;  %8608 = vst [vmem:[#allocation10_spill] sm:$0xff] %v5793_v16  ;;  %8609 = vst [vmem:[#allocation11_spill] sm:$0xff] %v5798_v17  ;;  %v5805_v18 = vld [vmem:[%s8346_s5 + $0x12c] ss:$24 sps:$4 sm:$0xff]  }
  0xa3   : > { %8610 = vst [vmem:[#allocation12_spill] sm:$0xff] %v5805_v18 }
  0xa4   : > { %1641 = vmatpush1.bf16.msra.mxu0 %v4512_v19  ;;  %v5809_v19 = vpack.c.bf16 %v5783_v14, %v5783_v14  ;;  %v6149_v14 = vld [vmem:[%s8346_s5 + $0x18c] ss:$24 sps:$4 sm:$0xff]  }
  0xa5   : > { %1684 = vmatpush1.bf16.msra.mxu1 %v4515_v20  ;;  %1642 = vmatprep.subr.bf16.mxu0 %v4520_v21  ;;  %v5818_v20 = vld [vmem:[%s8346_s5 + $0x120] ss:$24 sps:$4 sm:$0xff]   ;;  %8640 = vst [vmem:[#allocation42_spill] sm:$0xff] %v6149_v14 }
  0xa6   : > { %1685 = vmatprep.subr.bf16.mxu1 %v4523_v50  ;;  %8611 = vst [vmem:[#allocation13_spill] sm:$0xff] %v5818_v20  ;;  %v5823_v21 = vld [vmem:[%s8346_s5 + $0x128] ss:$24 sps:$4 sm:$0xff]  }
  0xa7   : > { %v5844_v50 = vld [vmem:[%s8346_s5 + $0xf0] ss:$24 sps:$4 sm:$0xff]  }
  0xa8   : > { %1643 = vmatpush1.bf16.msra.mxu0 %v4518_v51  ;;  %v5849_v51 = vld [vmem:[%s8346_s5 + $0xf8] ss:$24 sps:$4 sm:$0xff]  }
  0xa9   : > { %1686 = vmatpush1.bf16.msra.mxu1 %v4521_v22  ;;  %1644 = vmatprep.subr.bf16.mxu0 %v4526_v23  ;;  %v5856_v22 = vld [vmem:[%s8346_s5 + $0xc4] ss:$24 sps:$4 sm:$0xff]  }
  0xaa   : > { %1687 = vmatprep.subr.bf16.mxu1 %v4529_v24  ;;  %v5861_v23 = vld [vmem:[%s8346_s5 + $0xcc] ss:$24 sps:$4 sm:$0xff]   ;;  %v5868_v24 = vld [vmem:[%s8346_s5 + $0xc0] ss:$24 sps:$4 sm:$0xff]  }
  0xac   : > { %1645 = vmatpush1.bf16.msra.mxu0 %v4524_v25  ;;  %v5873_v25 = vld [vmem:[%s8346_s5 + $0xc8] ss:$24 sps:$4 sm:$0xff]  }
  0xad   : > { %1688 = vmatpush1.bf16.msra.mxu1 %v4527_v26  ;;  %1646 = vmatprep.subr.bf16.mxu0 %v4532_v27  ;;  %8612 = vst [vmem:[#allocation14_spill] sm:$0xff] %v5873_v25  ;;  %v5880_v26 = vld [vmem:[%s8346_s5 + $0x94] ss:$24 sps:$4 sm:$0xff]  }
  0xae   : > { %1689 = vmatprep.subr.bf16.mxu1 %v4535_v28  ;;  %v5885_v27 = vld [vmem:[%s8346_s5 + $0x9c] ss:$24 sps:$4 sm:$0xff]   ;;  %v5892_v28 = vld [vmem:[%s8346_s5 + $0x90] ss:$24 sps:$4 sm:$0xff]  }
  0xaf   : > { %8613 = vst [vmem:[#allocation15_spill] sm:$0xff] %v5885_v27 }
  0xb0   : > { %1647 = vmatpush1.bf16.msra.mxu0 %v4530_v29  ;;  %v5897_v29 = vld [vmem:[%s8346_s5 + $0x98] ss:$24 sps:$4 sm:$0xff]  }
  0xb1   : > { %1690 = vmatpush1.bf16.msra.mxu1 %v4533_v30  ;;  %1648 = vmatprep.subr.bf16.mxu0 %v4538_v31  ;;  %8614 = vst [vmem:[#allocation16_spill] sm:$0xff] %v5897_v29  ;;  %v5904_v30 = vld [vmem:[%s8346_s5 + $0x64] ss:$24 sps:$4 sm:$0xff]  }
  0xb2   : > { %1691 = vmatprep.subr.bf16.mxu1 %v4541_v32  ;;  %v5909_v31 = vld [vmem:[%s8346_s5 + $0x6c] ss:$24 sps:$4 sm:$0xff]   ;;  %v5916_v32 = vld [vmem:[%s8346_s5 + $0x60] ss:$24 sps:$4 sm:$0xff]  }
  0xb3   : > { %8615 = vst [vmem:[#allocation17_spill] sm:$0xff] %v5909_v31 }
  0xb4   : > { %1649 = vmatpush1.bf16.msra.mxu0 %v4536_v33  ;;  %v5921_v33 = vld [vmem:[%s8346_s5 + $0x68] ss:$24 sps:$4 sm:$0xff]  }
  0xb5   : > { %1692 = vmatpush1.bf16.msra.mxu1 %v4539_v34  ;;  %1650 = vmatprep.subr.bf16.mxu0 %v4544_v35  ;;  %8616 = vst [vmem:[#allocation18_spill] sm:$0xff] %v5921_v33  ;;  %v5928_v34 = vld [vmem:[%s8346_s5 + $0x34] ss:$24 sps:$4 sm:$0xff]  }
  0xb6   : > { %1693 = vmatprep.subr.bf16.mxu1 %v4547_v36  ;;  %v5933_v35 = vld [vmem:[%s8346_s5 + $0x3c] ss:$24 sps:$4 sm:$0xff]   ;;  %v5940_v36 = vld [vmem:[%s8346_s5 + $0x30] ss:$24 sps:$4 sm:$0xff]  }
  0xb7   : > { %8617 = vst [vmem:[#allocation19_spill] sm:$0xff] %v5933_v35 }
  0xb8   : > { %1651 = vmatpush1.bf16.msra.mxu0 %v4542_v37  ;;  %v5945_v37 = vld [vmem:[%s8346_s5 + $0x38] ss:$24 sps:$4 sm:$0xff]  }
  0xb9   : > { %1694 = vmatpush1.bf16.msra.mxu1 %v4545_v38  ;;  %1652 = vmatprep.subr.bf16.mxu0 %v4550_v39  ;;  %8618 = vst [vmem:[#allocation20_spill] sm:$0xff] %v5945_v37  ;;  %v5952_v38 = vld [vmem:[%s8346_s5 + $0x4] ss:$24 sps:$4 sm:$0xff]  }
  0xba   : > { %1695 = vmatprep.subr.bf16.mxu1 %v4553_v40  ;;  %v5957_v39 = vld [vmem:[%s8346_s5 + $0xc] ss:$24 sps:$4 sm:$0xff]   ;;  %v5964_v40 = vld [vmem:[%s8346_s5] ss:$24 sps:$4 sm:$0xff]  }
  0xbb   : > { %8619 = vst [vmem:[#allocation21_spill] sm:$0xff] %v5957_v39 }
  0xbc   : > { %1653 = vmatpush2.bf16.msra.mxu0 %v4548_v41  ;;  %v5969_v41 = vld [vmem:[%s8346_s5 + $0x8] ss:$24 sps:$4 sm:$0xff]  }
  0xbd   : > { %1696 = vmatpush2.bf16.msra.mxu1 %v4551_v42  ;;  %1654 = vmatprep.subr.bf16.mxu0 %v4556_v43  ;;  %8620 = vst [vmem:[#allocation22_spill] sm:$0xff] %v5969_v41  ;;  %v5976_v42 = vld [vmem:[%s8346_s5 + $0x2d4] ss:$24 sps:$4 sm:$0xff]  }
  0xbe   : > { %1697 = vmatprep.subr.bf16.mxu1 %v4559_v44  ;;  %v5981_v43 = vld [vmem:[%s8346_s5 + $0x2dc] ss:$24 sps:$4 sm:$0xff]   ;;  %v5988_v44 = vld [vmem:[%s8346_s5 + $0x2d0] ss:$24 sps:$4 sm:$0xff]  }
  0xbf   : > { %8621 = vst [vmem:[#allocation23_spill] sm:$0xff] %v5981_v43 }
  0xc0   : > { %1655 = vmatpush2.bf16.msra.mxu0 %v4554_v45  ;;  %v5993_v45 = vld [vmem:[%s8346_s5 + $0x2d8] ss:$24 sps:$4 sm:$0xff]  }
  0xc1   : > { %1698 = vmatpush2.bf16.msra.mxu1 %v4557_v46  ;;  %1656 = vmatprep.subr.bf16.mxu0 %v4562_v47  ;;  %8622 = vst [vmem:[#allocation24_spill] sm:$0xff] %v5993_v45  ;;  %v6000_v46 = vld [vmem:[%s8346_s5 + $0x2a4] ss:$24 sps:$4 sm:$0xff]  }
  0xc2   : > { %1699 = vmatprep.subr.bf16.mxu1 %v4565_v48  ;;  %v6005_v47 = vld [vmem:[%s8346_s5 + $0x2ac] ss:$24 sps:$4 sm:$0xff]   ;;  %v6012_v48 = vld [vmem:[%s8346_s5 + $0x2a0] ss:$24 sps:$4 sm:$0xff]  }
  0xc3   : > { %8623 = vst [vmem:[#allocation25_spill] sm:$0xff] %v6005_v47 }
  0xc4   : > { %1657 = vmatpush2.bf16.msra.mxu0 %v4560_v49  ;;  %v6017_v49 = vld [vmem:[%s8346_s5 + $0x2a8] ss:$24 sps:$4 sm:$0xff]  }
  0xc5   : > { %1700 = vmatpush2.bf16.msra.mxu1 %v4563_v52  ;;  %1658 = vmatprep.subr.bf16.mxu0 %v4568_v53  ;;  %8624 = vst [vmem:[#allocation26_spill] sm:$0xff] %v6017_v49  ;;  %v6024_v52 = vld [vmem:[%s8346_s5 + $0x274] ss:$24 sps:$4 sm:$0xff]  }
  0xc6   : > { %1701 = vmatprep.subr.bf16.mxu1 %v4571_v54  ;;  %v6029_v53 = vld [vmem:[%s8346_s5 + $0x27c] ss:$24 sps:$4 sm:$0xff]   ;;  %v6036_v54 = vld [vmem:[%s8346_s5 + $0x270] ss:$24 sps:$4 sm:$0xff]  }
  0xc7   : > { %8625 = vst [vmem:[#allocation27_spill] sm:$0xff] %v6029_v53 }
  0xc8   : > { %1659 = vmatpush2.bf16.msra.mxu0 %v4566_v55  ;;  %v6041_v55 = vld [vmem:[%s8346_s5 + $0x278] ss:$24 sps:$4 sm:$0xff]  }
  0xc9   : > { %1702 = vmatpush2.bf16.msra.mxu1 %v4569_v56  ;;  %1660 = vmatprep.subr.bf16.mxu0 %v4574_v57  ;;  %8626 = vst [vmem:[#allocation28_spill] sm:$0xff] %v6041_v55  ;;  %v6048_v56 = vld [vmem:[%s8346_s5 + $0x244] ss:$24 sps:$4 sm:$0xff]  }
  0xca   : > { %1703 = vmatprep.subr.bf16.mxu1 %v4577_v58  ;;  %v6053_v57 = vld [vmem:[%s8346_s5 + $0x24c] ss:$24 sps:$4 sm:$0xff]   ;;  %v6060_v58 = vld [vmem:[%s8346_s5 + $0x240] ss:$24 sps:$4 sm:$0xff]  }
  0xcb   : > { %8627 = vst [vmem:[#allocation29_spill] sm:$0xff] %v6053_v57 }
  0xcc   : > { %1661 = vmatpush2.bf16.msra.mxu0 %v4572_v59  ;;  %v6065_v59 = vld [vmem:[%s8346_s5 + $0x248] ss:$24 sps:$4 sm:$0xff]  }
  0xcd   : > { %1704 = vmatpush2.bf16.msra.mxu1 %v4575_v60  ;;  %1662 = vmatprep.subr.bf16.mxu0 %v4580_v61  ;;  %8628 = vst [vmem:[#allocation30_spill] sm:$0xff] %v6065_v59  ;;  %v6072_v60 = vld [vmem:[%s8346_s5 + $0x214] ss:$24 sps:$4 sm:$0xff]  }
  0xce   : > { %1705 = vmatprep.subr.bf16.mxu1 %v4583_v62  ;;  %v6077_v61 = vld [vmem:[%s8346_s5 + $0x21c] ss:$24 sps:$4 sm:$0xff]   ;;  %v6084_v62 = vld [vmem:[%s8346_s5 + $0x210] ss:$24 sps:$4 sm:$0xff]  }
  0xcf   : > { %8629 = vst [vmem:[#allocation31_spill] sm:$0xff] %v6077_v61 }
  0xd0   : > { %1663 = vmatpush2.bf16.msra.mxu0 %v4578_v63  ;;  %v6089_v63 = vld [vmem:[%s8346_s5 + $0x218] ss:$24 sps:$4 sm:$0xff]  }
  0xd1   : > { %1706 = vmatpush2.bf16.msra.mxu1 %v4581_v0  ;;  %1664 = vmatprep.subr.bf16.mxu0 %v4586_v1  ;;  %8630 = vst [vmem:[#allocation32_spill] sm:$0xff] %v6089_v63  ;;  %v6096_v0 = vld [vmem:[%s8346_s5 + $0x1e4] ss:$24 sps:$4 sm:$0xff]  }
  0xd2   : > { %1707 = vmatprep.subr.bf16.mxu1 %v4589_v2  ;;  %8631 = vst [vmem:[#allocation33_spill] sm:$0xff] %v6096_v0  ;;  %v6101_v1 = vld [vmem:[%s8346_s5 + $0x1ec] ss:$24 sps:$4 sm:$0xff]   ;;  %v6108_v2 = vld [vmem:[%s8346_s5 + $0x1e0] ss:$24 sps:$4 sm:$0xff]  }
  0xd3   : > { %8632 = vst [vmem:[#allocation34_spill] sm:$0xff] %v6101_v1  ;;  %8633 = vst [vmem:[#allocation35_spill] sm:$0xff] %v6108_v2 }
  0xd4   : > { %1665 = vmatpush2.bf16.msra.mxu0 %v4584_v3  ;;  %v6113_v3 = vld [vmem:[%s8346_s5 + $0x1e8] ss:$24 sps:$4 sm:$0xff]  }
  0xd5   : > { %1708 = vmatpush2.bf16.msra.mxu1 %v4587_v4  ;;  %1666 = vmatprep.subr.bf16.mxu0 %v4592_v6  ;;  %8634 = vst [vmem:[#allocation36_spill] sm:$0xff] %v6113_v3  ;;  %v6120_v4 = vld [vmem:[%s8346_s5 + $0x1b4] ss:$24 sps:$4 sm:$0xff]  }
  0xd6   : > { %1709 = vmatprep.subr.bf16.mxu1 %v4595_v7  ;;  %8635 = vst [vmem:[#allocation37_spill] sm:$0xff] %v6120_v4  ;;  %v6125_v6 = vld [vmem:[%s8346_s5 + $0x1bc] ss:$24 sps:$4 sm:$0xff]   ;;  %v6132_v7 = vld [vmem:[%s8346_s5 + $0x1b0] ss:$24 sps:$4 sm:$0xff]  }
  0xd7   : > { %8636 = vst [vmem:[#allocation38_spill] sm:$0xff] %v6125_v6  ;;  %8637 = vst [vmem:[#allocation39_spill] sm:$0xff] %v6132_v7 }
  0xd8   : > { %1667 = vmatpush2.bf16.msra.mxu0 %v4590_v9  ;;  %v6137_v9 = vld [vmem:[%s8346_s5 + $0x1b8] ss:$24 sps:$4 sm:$0xff]  }
  0xd9   : > { %1710 = vmatpush2.bf16.msra.mxu1 %v4593_v10  ;;  %2344 = vmatprep.subr.bf16.mxu0 %v5774_v12  ;;  %8638 = vst [vmem:[#allocation40_spill] sm:$0xff] %v6137_v9  ;;  %v6144_v10 = vld [vmem:[%s8346_s5 + $0x184] ss:$24 sps:$4 sm:$0xff]  }
  0xda   : > { %2385 = vmatprep.subr.bf16.mxu1 %v5779_v13  ;;  %8639 = vst [vmem:[#allocation41_spill] sm:$0xff] %v6144_v10 }
  0xdb   : > { %1669 = vmatmul.mubr.bf16.vlgmr.msra.gmra.mxu0 %v5378_v5  ;;  %v5830_v5 = vld [vmem:[%s8346_s5 + $0xf4] ss:$24 sps:$4 sm:$0xff]  }
  0xdc   : > { %1712 = vmatmul.mubr.bf16.vlgmr.msra.gmra.mxu1 %v5387_v8  ;;  %2345 = vmatpush1.bf16.msra.mxu0 %v5788_v15  ;;  %v5835_v8 = vld [vmem:[%s8346_s5 + $0xfc] ss:$24 sps:$4 sm:$0xff]  }
  0xdd   : > { %2386 = vmatpush1.bf16.msra.mxu1 %v5793_v16  ;;  %2346 = vmatprep.subr.bf16.mxu0 %v5798_v17 }
  0xde   : > { %2387 = vmatprep.subr.bf16.mxu1 %v5805_v18  ;;  %2376 = vmatprep.mubr.bf16.mxu0 %v5809_v19 }
  0xdf   : > { %2417 = vmatprep.mubr.bf16.mxu1 %v5809_v19 }
  0xe0   : > { %2347 = vmatpush1.bf16.msra.mxu0 %v5818_v20 }
  0xe1   : > { %2388 = vmatpush1.bf16.msra.mxu1 %v5823_v21  ;;  %2348 = vmatprep.subr.bf16.mxu0 %v5830_v5 }
  0xe2   : > { %2389 = vmatprep.subr.bf16.mxu1 %v5835_v8 }
  0xe4   : > { %2349 = vmatpush1.bf16.msra.mxu0 %v5844_v50 }
  0xe5   : > { %2390 = vmatpush1.bf16.msra.mxu1 %v5849_v51  ;;  %2350 = vmatprep.subr.bf16.mxu0 %v5856_v22 }
  0xe6   : > { %2391 = vmatprep.subr.bf16.mxu1 %v5861_v23 }
  0xe8   : > { %2351 = vmatpush1.bf16.msra.mxu0 %v5868_v24 }
  0xe9   : > { %2392 = vmatpush1.bf16.msra.mxu1 %v5873_v25  ;;  %2352 = vmatprep.subr.bf16.mxu0 %v5880_v26 }
  0xea   : > { %2393 = vmatprep.subr.bf16.mxu1 %v5885_v27 }
  0xec   : > { %2353 = vmatpush1.bf16.msra.mxu0 %v5892_v28 }
  0xed   : > { %2394 = vmatpush1.bf16.msra.mxu1 %v5897_v29  ;;  %2354 = vmatprep.subr.bf16.mxu0 %v5904_v30 }
  0xee   : > { %2395 = vmatprep.subr.bf16.mxu1 %v5909_v31 }
  0xf0   : > { %2355 = vmatpush1.bf16.msra.mxu0 %v5916_v32 }
  0xf1   : > { %2396 = vmatpush1.bf16.msra.mxu1 %v5921_v33  ;;  %2356 = vmatprep.subr.bf16.mxu0 %v5928_v34 }
  0xf2   : > { %2397 = vmatprep.subr.bf16.mxu1 %v5933_v35 }
  0xf4   : > { %2357 = vmatpush1.bf16.msra.mxu0 %v5940_v36 }
  0xf5   : > { %2398 = vmatpush1.bf16.msra.mxu1 %v5945_v37  ;;  %2358 = vmatprep.subr.bf16.mxu0 %v5952_v38 }
  0xf6   : > { %2399 = vmatprep.subr.bf16.mxu1 %v5957_v39 }
  0xf8   : > { %2359 = vmatpush1.bf16.msra.mxu0 %v5964_v40 }
  0xf9   : > { %2400 = vmatpush1.bf16.msra.mxu1 %v5969_v41  ;;  %2360 = vmatprep.subr.bf16.mxu0 %v5976_v42 }
  0xfa   : > { %2401 = vmatprep.subr.bf16.mxu1 %v5981_v43 }
  0xfc   : > { %2361 = vmatpush2.bf16.msra.mxu0 %v5988_v44 }
  0xfd   : > { %2402 = vmatpush2.bf16.msra.mxu1 %v5993_v45  ;;  %2362 = vmatprep.subr.bf16.mxu0 %v6000_v46 }
  0xfe   : > { %2403 = vmatprep.subr.bf16.mxu1 %v6005_v47 }
 0x100   : > { %2363 = vmatpush2.bf16.msra.mxu0 %v6012_v48 }
 0x101   : > { %2404 = vmatpush2.bf16.msra.mxu1 %v6017_v49  ;;  %2364 = vmatprep.subr.bf16.mxu0 %v6024_v52 }
 0x102   : > { %2405 = vmatprep.subr.bf16.mxu1 %v6029_v53 }
 0x104   : > { %2365 = vmatpush2.bf16.msra.mxu0 %v6036_v54 }
 0x105   : > { %2406 = vmatpush2.bf16.msra.mxu1 %v6041_v55  ;;  %2366 = vmatprep.subr.bf16.mxu0 %v6048_v56 }
 0x106   : > { %2407 = vmatprep.subr.bf16.mxu1 %v6053_v57 }
 0x108   : > { %2367 = vmatpush2.bf16.msra.mxu0 %v6060_v58 }
 0x109   : > { %2408 = vmatpush2.bf16.msra.mxu1 %v6065_v59  ;;  %2368 = vmatprep.subr.bf16.mxu0 %v6072_v60  ;;  %v6181_v59 = vld [vmem:[%s8346_s5 + $0x160] ss:$24 sps:$4 sm:$0xff]  }
 0x10a   : > { %2409 = vmatprep.subr.bf16.mxu1 %v6077_v61  ;;  %v6174_v61 = vpack.c.bf16 %v5769_v11, %v5769_v11  ;;  %8645 = vst [vmem:[#allocation47_spill] sm:$0xff] %v6181_v59  ;;  %v6207_v11 = vld [vmem:[%s8346_s5 + $0x130] ss:$24 sps:$4 sm:$0xff]  }
 0x10b   : > { %8649 = vst [vmem:[#allocation51_spill] sm:$0xff] %v6207_v11 }
 0x10c   : > { %2369 = vmatpush2.bf16.msra.mxu0 %v6084_v62 }
 0x10d   : > { %2410 = vmatpush2.bf16.msra.mxu1 %v6089_v63  ;;  %2370 = vmatprep.subr.bf16.mxu0 %v6096_v0  ;;  %v6168_v63 = vld [vmem:[%s8346_s5 + $0x164] ss:$24 sps:$4 sm:$0xff]  }
 0x10e   : > { %2411 = vmatprep.subr.bf16.mxu1 %v6101_v1  ;;  %v6156_v1 = vld [vmem:[%s8346_s5 + $0x180] ss:$24 sps:$4 sm:$0xff]   ;;  %8643 = vst [vmem:[#allocation45_spill] sm:$0xff] %v6168_v63 }
 0x10f   : > { %8641 = vst [vmem:[#allocation43_spill] sm:$0xff] %v6156_v1 }
 0x110   : > { %2371 = vmatpush2.bf16.msra.mxu0 %v6108_v2 }
 0x111   : > { %2412 = vmatpush2.bf16.msra.mxu1 %v6113_v3  ;;  %2372 = vmatprep.subr.bf16.mxu0 %v6120_v4  ;;  %v454_v3 = vlaneseq }
 0x112   : > { %2413 = vmatprep.subr.bf16.mxu1 %v6125_v6  ;;  %v6161_v6 = vld [vmem:[%s8346_s5 + $0x188] ss:$24 sps:$4 sm:$0xff]  }
 0x113   : > { %8642 = vst [vmem:[#allocation44_spill] sm:$0xff] %v6161_v6 }
 0x114   : > { %2373 = vmatpush2.bf16.msra.mxu0 %v6132_v7 }
 0x115   : > { %2414 = vmatpush2.bf16.msra.mxu1 %v6137_v9  ;;  %2374 = vmatprep.subr.bf16.mxu0 %v6144_v10  ;;  %v6170_v9 = vshrl.u32 %v454_v3, 7  ;;  %v6187_v3 = vld [vmem:[%s8346_s5 + $0x134] ss:$24 sps:$4 sm:$0xff]  }
 0x116   : > { %2415 = vmatprep.subr.bf16.mxu1 %v6149_v14  ;;  %8646 = vst [vmem:[#allocation48_spill] sm:$0xff] %v6187_v3 }
 0x117   : > { %8644 = vst [vmem:[#allocation46_spill] sm:$0xff] %v6170_v9  ;;  %v8653_v55 = vsub.s32 0, %v6170_v9 }
 0x118   : > { %2375 = vmatpush2.bf16.msra.mxu0 %v6156_v1 }
 0x119   : > { %2416 = vmatpush2.bf16.msra.mxu1 %v6161_v6  ;;  %2426 = vmatprep.subr.bf16.mxu0 %v6168_v63  ;;  %v6194_v6 = vld [vmem:[%s8345_s4] sm:$0x3f] }
 0x11a   : > { %2511 = vmatprep.subr.bf16.mxu1 %v5774_v12 }
 0x11b   : > { %v6196_v14 = vpop.f32.mrf.mxu0  ;;  %2377 = vmatmul.mubr.bf16.vlgmr.msra.gmra.mxu0 %v6174_v61 }
 0x11c   : > { %8647 = vst [vmem:[#allocation49_spill] sm:$0xff] %v6196_v14  ;;  %2418 = vmatmul.mubr.bf16.vlgmr.msra.gmra.mxu1 %v6174_v61  ;;  %v6200_v57 = vpop.f32.mrf.mxu1  ;;  %2427 = vmatpush1.bf16.msra.mxu0 %v6181_v59  ;;  %v6224_v59 = vrot.slane %v6194_v6, %v8653_v55 }
 0x11d   : > { %8648 = vst [vmem:[#allocation50_spill] sm:$0xff] %v6200_v57  ;;  %2458 = vmatprep.mubr.bf16.mxu0 %v5809_v19  ;;  %v6210_v12 = vpop.f32.mrf.mxu0  ;;  %2428 = vmatprep.subr.bf16.mxu0 %v6187_v3  ;;  %v6218_v57 = vld [vmem:[%s8346_s5 + $0x104] ss:$24 sps:$4 sm:$0xff]  }
 0x11e   : > { %8650 = vst [vmem:[#allocation52_spill] sm:$0xff] %v6210_v12  ;;  %v6212_v14 = vpop.f32.mrf.mxu1  ;;  %8652 = vst [vmem:[#allocation54_spill] sm:$0xff] %v6218_v57  ;;  %2512 = vmatpush1.bf16.msra.mxu1 %v5788_v15  ;;  %v6237_v15 = vld [vmem:[%s8346_s5 + $0x100] ss:$24 sps:$4 sm:$0xff]  }
 0x11f   : > { %8651 = vst [vmem:[#allocation53_spill] sm:$0xff] %v6212_v14  ;;  %2513 = vmatprep.subr.bf16.mxu1 %v5798_v17  ;;  %v1502_v19 = vpop.f32.mrf.mxu0  ;;  %v8654_v14 = vsub.s32 1, %v6170_v9  ;;  %v6243_v17 = vld [vmem:[%s8346_s5 + $0xd4] ss:$24 sps:$4 sm:$0xff]  }
 0x120   : > { %v1545_v12 = vpop.f32.mrf.mxu1  ;;  %v1503_v53 = vadd.f32 %v1502_v19, %v6224_v59  ;;  %2429 = vmatpush1.bf16.msra.mxu0 %v6207_v11 }
 0x121   : > { %v6230_v3 = vrot.slane %v6194_v6, %v8654_v14  ;;  %v1504_v55 = vpop.f32.mrf.mxu0  ;;  %2430 = vmatprep.subr.bf16.mxu0 %v6218_v57  ;;  %v6256_v57 = vld [vmem:[%s8346_s5 + $0xd0] ss:$24 sps:$4 sm:$0xff]  }
 0x122   : > { %v1547_v49 = vpop.f32.mrf.mxu1  ;;  %2514 = vmatpush1.bf16.msra.mxu1 %v5818_v20  ;;  %v6247_v19 = vadd.f32 %v1545_v12, %v1503_v53  ;;  %v6262_v20 = vld [vmem:[%s8346_s5 + $0xa4] ss:$24 sps:$4 sm:$0xff]   ;;  %v6270_v12 = vld [vmem:[%s8346_s5 + $0xa0] ss:$24 sps:$4 sm:$0xff]   ;;  %v6284_v53 = vld [vmem:[%s8346_s5 + $0x70] ss:$24 sps:$4 sm:$0xff]  }
 0x123   : > { %v1505_v14 = vadd.f32 %v1504_v55, %v6230_v3  ;;  %2515 = vmatprep.subr.bf16.mxu1 %v5830_v5  ;;  %v6290_v55 = vld [vmem:[%s8346_s5 + $0x44] ss:$24 sps:$4 sm:$0xff]  }
 0x124   : > { %8655 = vst [vmem:[#allocation55_spill] sm:$0xff] %v6247_v19  ;;  %2431 = vmatpush1.bf16.msra.mxu0 %v6237_v15  ;;  %8657 = vst [vmem:[#allocation57_spill] sm:$0xff] %v6290_v55  ;;  %v6312_v19 = vld [vmem:[%s8346_s5 + $0x10] ss:$24 sps:$4 sm:$0xff]  }
 0x125   : > { %v6250_v11 = vadd.f32 %v1547_v49, %v1505_v14  ;;  %2432 = vmatprep.subr.bf16.mxu0 %v6243_v17  ;;  %v6276_v49 = vld [vmem:[%s8346_s5 + $0x74] ss:$24 sps:$4 sm:$0xff]   ;;  %v6298_v14 = vld [vmem:[%s8346_s5 + $0x40] ss:$24 sps:$4 sm:$0xff]   ;;  %8660 = vst [vmem:[#allocation60_spill] sm:$0xff] %v6312_v19 }
 0x126   : > { %2516 = vmatpush1.bf16.msra.mxu1 %v5844_v50  ;;  %8658 = vst [vmem:[#allocation58_spill] sm:$0xff] %v6298_v14 }
 0x127   : > { %8656 = vst [vmem:[#allocation56_spill] sm:$0xff] %v6250_v11  ;;  %2517 = vmatprep.subr.bf16.mxu1 %v5856_v22  ;;  %v6304_v11 = vld [vmem:[%s8346_s5 + $0x14] ss:$24 sps:$4 sm:$0xff]  }
 0x128   : > { %2433 = vmatpush1.bf16.msra.mxu0 %v6256_v57  ;;  %8659 = vst [vmem:[#allocation59_spill] sm:$0xff] %v6304_v11 }
 0x129   : > { %2434 = vmatprep.subr.bf16.mxu0 %v6262_v20 }
 0x12a   : > { %2518 = vmatpush1.bf16.msra.mxu1 %v5868_v24 }
 0x12b   : > { %2519 = vmatprep.subr.bf16.mxu1 %v5880_v26 }
 0x12c   : > { %2435 = vmatpush1.bf16.msra.mxu0 %v6270_v12 }
 0x12d   : > { %2436 = vmatprep.subr.bf16.mxu0 %v6276_v49 }
 0x12e   : > { %2520 = vmatpush1.bf16.msra.mxu1 %v5892_v28 }
 0x12f   : > { %2521 = vmatprep.subr.bf16.mxu1 %v5904_v30 }
 0x130   : > { %2437 = vmatpush1.bf16.msra.mxu0 %v6284_v53 }
 0x131   : > { %2438 = vmatprep.subr.bf16.mxu0 %v6290_v55  ;;  %v6318_v55 = vld [vmem:[%s8346_s5 + $0x2e4] ss:$24 sps:$4 sm:$0xff]  }
 0x132   : > { %2522 = vmatpush1.bf16.msra.mxu1 %v5916_v32  ;;  %8661 = vst [vmem:[#allocation61_spill] sm:$0xff] %v6318_v55 }
 0x133   : > { %2523 = vmatprep.subr.bf16.mxu1 %v5928_v34 }
 0x134   : > { %2439 = vmatpush1.bf16.msra.mxu0 %v6298_v14  ;;  %v6326_v14 = vld [vmem:[%s8346_s5 + $0x2e0] ss:$24 sps:$4 sm:$0xff]  }
 0x135   : > { %2440 = vmatprep.subr.bf16.mxu0 %v6304_v11  ;;  %8662 = vst [vmem:[#allocation62_spill] sm:$0xff] %v6326_v14  ;;  %v6332_v11 = vld [vmem:[%s8346_s5 + $0x2b4] ss:$24 sps:$4 sm:$0xff]  }
 0x136   : > { %2524 = vmatpush1.bf16.msra.mxu1 %v5940_v36  ;;  %8663 = vst [vmem:[#allocation63_spill] sm:$0xff] %v6332_v11 }
 0x137   : > { %2525 = vmatprep.subr.bf16.mxu1 %v5952_v38 }
 0x138   : > { %2441 = vmatpush1.bf16.msra.mxu0 %v6312_v19  ;;  %v6340_v19 = vld [vmem:[%s8346_s5 + $0x2b0] ss:$24 sps:$4 sm:$0xff]  }
 0x139   : > { %2442 = vmatprep.subr.bf16.mxu0 %v6318_v55  ;;  %8664 = vst [vmem:[#allocation64_spill] sm:$0xff] %v6340_v19  ;;  %v6346_v55 = vld [vmem:[%s8346_s5 + $0x284] ss:$24 sps:$4 sm:$0xff]  }
 0x13a   : > { %2526 = vmatpush1.bf16.msra.mxu1 %v5964_v40  ;;  %8665 = vst [vmem:[#allocation65_spill] sm:$0xff] %v6346_v55 }
 0x13b   : > { %2527 = vmatprep.subr.bf16.mxu1 %v5976_v42 }
 0x13c   : > { %2443 = vmatpush2.bf16.msra.mxu0 %v6326_v14  ;;  %v6354_v14 = vld [vmem:[%s8346_s5 + $0x280] ss:$24 sps:$4 sm:$0xff]  }
 0x13d   : > { %2444 = vmatprep.subr.bf16.mxu0 %v6332_v11  ;;  %8666 = vst [vmem:[#allocation66_spill] sm:$0xff] %v6354_v14  ;;  %v6360_v11 = vld [vmem:[%s8346_s5 + $0x254] ss:$24 sps:$4 sm:$0xff]  }
 0x13e   : > { %2528 = vmatpush2.bf16.msra.mxu1 %v5988_v44  ;;  %8667 = vst [vmem:[#allocation67_spill] sm:$0xff] %v6360_v11 }
 0x13f   : > { %2529 = vmatprep.subr.bf16.mxu1 %v6000_v46 }
 0x140   : > { %2445 = vmatpush2.bf16.msra.mxu0 %v6340_v19  ;;  %v6368_v19 = vld [vmem:[%s8346_s5 + $0x250] ss:$24 sps:$4 sm:$0xff]  }
 0x141   : > { %2446 = vmatprep.subr.bf16.mxu0 %v6346_v55  ;;  %8668 = vst [vmem:[#allocation68_spill] sm:$0xff] %v6368_v19  ;;  %v6374_v55 = vld [vmem:[%s8346_s5 + $0x224] ss:$24 sps:$4 sm:$0xff]  }
 0x142   : > { %2530 = vmatpush2.bf16.msra.mxu1 %v6012_v48  ;;  %8669 = vst [vmem:[#allocation69_spill] sm:$0xff] %v6374_v55 }
 0x143   : > { %2531 = vmatprep.subr.bf16.mxu1 %v6024_v52 }
 0x144   : > { %2447 = vmatpush2.bf16.msra.mxu0 %v6354_v14  ;;  %v6382_v14 = vld [vmem:[%s8346_s5 + $0x220] ss:$24 sps:$4 sm:$0xff]  }
 0x145   : > { %2448 = vmatprep.subr.bf16.mxu0 %v6360_v11  ;;  %8670 = vst [vmem:[#allocation70_spill] sm:$0xff] %v6382_v14  ;;  %v6388_v11 = vld [vmem:[%s8346_s5 + $0x1f4] ss:$24 sps:$4 sm:$0xff]  }
 0x146   : > { %2532 = vmatpush2.bf16.msra.mxu1 %v6036_v54  ;;  %8671 = vst [vmem:[#allocation71_spill] sm:$0xff] %v6388_v11 }
 0x147   : > { %2533 = vmatprep.subr.bf16.mxu1 %v6048_v56 }
 0x148   : > { %2449 = vmatpush2.bf16.msra.mxu0 %v6368_v19  ;;  %v6396_v19 = vld [vmem:[%s8346_s5 + $0x1f0] ss:$24 sps:$4 sm:$0xff]  }
 0x149   : > { %2450 = vmatprep.subr.bf16.mxu0 %v6374_v55  ;;  %8672 = vst [vmem:[#allocation72_spill] sm:$0xff] %v6396_v19  ;;  %v6402_v55 = vld [vmem:[%s8346_s5 + $0x1c4] ss:$24 sps:$4 sm:$0xff]  }
 0x14a   : > { %2534 = vmatpush2.bf16.msra.mxu1 %v6060_v58  ;;  %8673 = vst [vmem:[#allocation73_spill] sm:$0xff] %v6402_v55 }
 0x14b   : > { %2535 = vmatprep.subr.bf16.mxu1 %v6072_v60 }
 0x14c   : > { %2451 = vmatpush2.bf16.msra.mxu0 %v6382_v14  ;;  %v6410_v14 = vld [vmem:[%s8346_s5 + $0x1c0] ss:$24 sps:$4 sm:$0xff]  }
 0x14d   : > { %2452 = vmatprep.subr.bf16.mxu0 %v6388_v11  ;;  %8674 = vst [vmem:[#allocation74_spill] sm:$0xff] %v6410_v14  ;;  %v6416_v11 = vld [vmem:[%s8346_s5 + $0x194] ss:$24 sps:$4 sm:$0xff]  }
 0x14e   : > { %2536 = vmatpush2.bf16.msra.mxu1 %v6084_v62  ;;  %8675 = vst [vmem:[#allocation75_spill] sm:$0xff] %v6416_v11 }
 0x14f   : > { %2537 = vmatprep.subr.bf16.mxu1 %v6096_v0 }
 0x150   : > { %2453 = vmatpush2.bf16.msra.mxu0 %v6396_v19  ;;  %v6424_v19 = vld [vmem:[%s8346_s5 + $0x190] ss:$24 sps:$4 sm:$0xff]  }
 0x151   : > { %2454 = vmatprep.subr.bf16.mxu0 %v6402_v55  ;;  %8676 = vst [vmem:[#allocation76_spill] sm:$0xff] %v6424_v19 }
 0x152   : > { %2538 = vmatpush2.bf16.msra.mxu1 %v6108_v2 }
 0x153   : > { %2539 = vmatprep.subr.bf16.mxu1 %v6120_v4  ;;  %v8441_v4 = vsub.s32 2, %v6170_v9 }
 0x154   : > { %2455 = vmatpush2.bf16.msra.mxu0 %v6410_v14 }
 0x155   : > { %2456 = vmatprep.subr.bf16.mxu0 %v6416_v11 }
 0x156   : > { %2540 = vmatpush2.bf16.msra.mxu1 %v6132_v7  ;;  %v8442_v7 = vsub.s32 3, %v6170_v9 }
 0x157   : > { %2541 = vmatprep.subr.bf16.mxu1 %v6144_v10 }
 0x158   : > { %2457 = vmatpush2.bf16.msra.mxu0 %v6424_v19 }
 0x159   : > { %2552 = vmatprep.subr.bf16.mxu0 %v5779_v13 }
 0x15a   : > { %2542 = vmatpush2.bf16.msra.mxu1 %v6156_v1 }
 0x15b   : > { %2593 = vmatprep.subr.bf16.mxu1 %v6168_v63  ;;  %v6434_v14 = vpop.f32.mrf.mxu0  ;;  %2459 = vmatmul.mubr.bf16.vlgmr.msra.gmra.mxu0 %v6174_v61  ;;  %v6449_v63 = vrot.slane %v6194_v6, %v8441_v4  ;;  %v6454_v61 = vrot.slane %v6194_v6, %v8442_v7  ;;  %v8685_v7 = vld [vmem:[#allocation32_spill] sm:$0xff] }
 0x15c   : > { %v6437_v2 = vpop.f32.mrf.mxu1  ;;  %2553 = vmatpush1.bf16.msra.mxu0 %v5793_v16 }
 0x15d   : > { %v6441_v10 = vpop.f32.mrf.mxu0  ;;  %2554 = vmatprep.subr.bf16.mxu0 %v5805_v18 }
 0x15e   : > { %v6443_v19 = vpop.f32.mrf.mxu1 }
 0x15f   : > { %v1588_v1 = vpop.f32.mrf.mxu0 }
 0x160   : > { %v1631_v13 = vpop.f32.mrf.mxu1  ;;  %v1589_v16 = vadd.f32 %v1588_v1, %v6449_v63  ;;  %2555 = vmatpush1.bf16.msra.mxu0 %v5823_v21  ;;  %v8683_v1 = vld [vmem:[#allocation30_spill] sm:$0xff] }
 0x161   : > { %v1590_v11 = vpop.f32.mrf.mxu0  ;;  %2556 = vmatprep.subr.bf16.mxu0 %v5835_v8 }
 0x162   : > { %v1633_v55 = vpop.f32.mrf.mxu1  ;;  %v1591_v18 = vadd.f32 %v1590_v11, %v6454_v61  ;;  %v6460_v0 = vadd.f32 %v1631_v13, %v1589_v16  ;;  %v8679_v11 = vld [vmem:[#allocation26_spill] sm:$0xff]  ;;  %v8680_v13 = vld [vmem:[#allocation27_spill] sm:$0xff]  ;;  %v8681_v16 = vld [vmem:[#allocation28_spill] sm:$0xff] }
 0x164   : > { %8677 = vst [vmem:[#allocation77_spill] sm:$0xff] %v6460_v0  ;;  %v6462_v4 = vadd.f32 %v1633_v55, %v1591_v18  ;;  %2557 = vmatpush1.bf16.msra.mxu0 %v5849_v51  ;;  %v8682_v18 = vld [vmem:[#allocation29_spill] sm:$0xff]  ;;  %v8684_v55 = vld [vmem:[#allocation31_spill] sm:$0xff]  ;;  %v8687_v0 = vld [vmem:[#allocation36_spill] sm:$0xff] }
 0x165   : > { %2558 = vmatprep.subr.bf16.mxu0 %v5861_v23 }
 0x166   : > { %8678 = vst [vmem:[#allocation78_spill] sm:$0xff] %v6462_v4  ;;  %v8686_v4 = vld [vmem:[#allocation34_spill] sm:$0xff] }
 0x168   : > { %2559 = vmatpush1.bf16.msra.mxu0 %v5873_v25 }
 0x169   : > { %2560 = vmatprep.subr.bf16.mxu0 %v5885_v27 }
 0x16c   : > { %2561 = vmatpush1.bf16.msra.mxu0 %v5897_v29 }
 0x16d   : > { %2562 = vmatprep.subr.bf16.mxu0 %v5909_v31 }
 0x170   : > { %2563 = vmatpush1.bf16.msra.mxu0 %v5921_v33 }
 0x171   : > { %2564 = vmatprep.subr.bf16.mxu0 %v5933_v35 }
 0x174   : > { %2565 = vmatpush1.bf16.msra.mxu0 %v5945_v37 }
 0x175   : > { %2566 = vmatprep.subr.bf16.mxu0 %v5957_v39 }
 0x178   : > { %2567 = vmatpush1.bf16.msra.mxu0 %v5969_v41 }
 0x179   : > { %2568 = vmatprep.subr.bf16.mxu0 %v5981_v43 }
 0x17c   : > { %2569 = vmatpush2.bf16.msra.mxu0 %v5993_v45  ;;  %v8688_v45 = vld [vmem:[#allocation38_spill] sm:$0xff] }
 0x17d   : > { %2570 = vmatprep.subr.bf16.mxu0 %v6005_v47  ;;  %v8689_v47 = vld [vmem:[#allocation40_spill] sm:$0xff] }
 0x180   : > { %2571 = vmatpush2.bf16.msra.mxu0 %v8679_v11  ;;  %v8452_v11 = vsub.s32 4, %v6170_v9 }
 0x181   : > { %2572 = vmatprep.subr.bf16.mxu0 %v8680_v13  ;;  %v8690_v13 = vld [vmem:[#allocation42_spill] sm:$0xff] }
 0x184   : > { %2573 = vmatpush2.bf16.msra.mxu0 %v8681_v16 }
 0x185   : > { %2574 = vmatprep.subr.bf16.mxu0 %v8682_v18  ;;  %v8456_v18 = vsub.s32 5, %v6170_v9 }
 0x188   : > { %2575 = vmatpush2.bf16.msra.mxu0 %v8683_v1  ;;  %v8691_v1 = vld [vmem:[#allocation44_spill] sm:$0xff] }
 0x189   : > { %2576 = vmatprep.subr.bf16.mxu0 %v8684_v55  ;;  %v473_v55 = vrot.slane %v6194_v6, %v8452_v11 }
 0x18c   : > { %2577 = vmatpush2.bf16.msra.mxu0 %v8685_v7  ;;  %v8692_v7 = vld [vmem:[#allocation6_spill] sm:$0xff] }
 0x18d   : > { %2578 = vmatprep.subr.bf16.mxu0 %v8686_v4 }
 0x190   : > { %2579 = vmatpush2.bf16.msra.mxu0 %v8687_v0 }
 0x191   : > { %2580 = vmatprep.subr.bf16.mxu0 %v8688_v45  ;;  %v477_v45 = vrot.slane %v6194_v6, %v8456_v18 }
 0x194   : > { %2581 = vmatpush2.bf16.msra.mxu0 %v8689_v47 }
 0x195   : > { %2582 = vmatprep.subr.bf16.mxu0 %v8690_v13 }
 0x198   : > { %2583 = vmatpush2.bf16.msra.mxu0 %v8691_v1 }
 0x199   : > { %2715 = vmatprep.subr.bf16.mxu0 %v8692_v7 }
 0x19b   : > { %v1670_v0 = vpop.f32.mrf.mxu0 }
 0x19c   : > { %v1713_v4 = vpop.f32.mrf.mxu1  ;;  %v1671_v16 = vadd.f32 %v1670_v0, %v473_v55 }
 0x19d   : > { %v1672_v47 = vpop.f32.mrf.mxu0 }
 0x19e   : > { %v1715_v43 = vpop.f32.mrf.mxu1  ;;  %v1673_v13 = vadd.f32 %v1672_v47, %v477_v45  ;;  %v6500_v41 = vadd.f32 %v1713_v4, %v1671_v16 }
 0x19f   : > { %v1674_v39 = vpop.f32.mrf.mxu0 }
 0x1a0   : > { %8693 = vst [vmem:[#allocation6_spill] sm:$0xff] %v6500_v41  ;;  %v1717_v37 = vpop.f32.mrf.mxu1  ;;  %v1675_v35 = vadd.f32 %v1674_v39, %v473_v55  ;;  %v6502_v11 = vadd.f32 %v1715_v43, %v1673_v13  ;;  %v1818_v39 = vld [vmem:[%s8347_s6] sm:$0x3f]  ;;  %v8697_v43 = vsub.s32 0, %v6170_v9 }
 0x1a1   : > { %v1676_v1 = vpop.f32.mrf.mxu0 }
 0x1a2   : > { %8694 = vst [vmem:[#allocation79_spill] sm:$0xff] %v6502_v11  ;;  %v1719_v33 = vpop.f32.mrf.mxu1  ;;  %v1677_v7 = vadd.f32 %v1676_v1, %v477_v45  ;;  %v6504_v31 = vadd.f32 %v1717_v37, %v1675_v35  ;;  %v6513_v13 = vrot.slane %v1818_v39, %v8697_v43  ;;  %v8698_v35 = vld [vmem:[#allocation49_spill] sm:$0xff]  ;;  %v8699_v37 = vsub.s32 1, %v6170_v9 }
 0x1a4   : > { %8695 = vst [vmem:[#allocation80_spill] sm:$0xff] %v6504_v31  ;;  %v6506_v29 = vadd.f32 %v1719_v33, %v1677_v7  ;;  %v1499_v33 = vadd.f32 %v8698_v35, %v6224_v59  ;;  %v6519_v45 = vrot.slane %v1818_v39, %v8699_v37  ;;  %v8701_v7 = vld [vmem:[#allocation50_spill] sm:$0xff]  ;;  %v8703_v37 = vsub.s32 2, %v6170_v9 }
 0x1a6   : > { %8696 = vst [vmem:[#allocation81_spill] sm:$0xff] %v6506_v29  ;;  %v6535_v31 = vrot.slane %v1818_v39, %v8703_v37  ;;  %v8706_v37 = vsub.s32 5, %v6170_v9 }
 0x1db   : > { %v2378_v6 = vpop.f32.mrf.mxu0 }
 0x1dc   : > { %v2419_v18 = vpop.f32.mrf.mxu1  ;;  %v2379_v55 = vadd.f32 %v2378_v6, %v6513_v13  ;;  %v1585_v6 = vadd.f32 %v6434_v14, %v6449_v63 }
 0x1dd   : > { %v2380_v0 = vpop.f32.mrf.mxu0 }
 0x1de   : > { %v2421_v27 = vpop.f32.mrf.mxu1 }
 0x1df   : > { %v2382_v25 = vpop.f32.mrf.mxu0 }
 0x1e0   : > { %v2423_v47 = vpop.f32.mrf.mxu1  ;;  %v8700_v25 = vld [vmem:[#allocation52_spill] sm:$0xff] }
 0x1e1   : > { %v2383_v4 = vpop.f32.mrf.mxu0  ;;  %v1501_v1 = vadd.f32 %v8700_v25, %v6230_v3  ;;  %v6525_v47 = vadd.f32 %v8701_v7, %v1499_v33  ;;  %v8704_v33 = vsub.s32 3, %v6170_v9 }
 0x1e2   : > { %v2424_v16 = vpop.f32.mrf.mxu1  ;;  %v2381_v4 = vadd.f32 %v2380_v0, %v6519_v45  ;;  %v1587_v0 = vadd.f32 %v6441_v10, %v6454_v61 }
 0x1e3   : > { %v8702_v16 = vld [vmem:[#allocation53_spill] sm:$0xff]  ;;  %v2467_v29 = vadd.f32 %v2379_v55, %v6525_v47  ;;  %v6541_v25 = vrot.slane %v1818_v39, %v8704_v33 }
 0x1e4   : > { %v6529_v43 = vadd.f32 %v8702_v16, %v1501_v1  ;;  %v2420_v1 = vadd.f32 %v2419_v18, %v6535_v31  ;;  %v6551_v7 = vadd.f32 %v6443_v19, %v1587_v0 }
 0x1e5   : > { %v4257_v35 = vmul.f32 -1.442695, %v2467_v29  ;;  %v6547_v29 = vadd.f32 %v6437_v2, %v1585_v6  ;;  %v2422_v55 = vadd.f32 %v2421_v27, %v6541_v25  ;;  %v8705_v27 = vsub.s32 4, %v6170_v9 }
 0x1e6   : > { %v2468_v59 = vadd.f32 %v2381_v4, %v6529_v43 }
 0x1e7   : > { %4740 = vpow2.f32 %v4257_v35  ;;  %v2481_v63 = vadd.f32 %v2420_v1, %v6547_v29  ;;  %v2482_v14 = vadd.f32 %v2422_v55, %v6551_v7  ;;  %v6557_v35 = vrot.slane %v1818_v39, %v8705_v27 }
 0x1e8   : > { %v4258_v3 = vmul.f32 -1.442695, %v2468_v59 }
 0x1e9   : > { %v4259_v4 = vmul.f32 -1.442695, %v2481_v63  ;;  %v4260_v16 = vmul.f32 -1.442695, %v2482_v14 }
 0x1ea   : > { %4742 = vpow2.f32 %v4258_v3  ;;  %v6561_v3 = vrot.slane %v1818_v39, %v8706_v37 }
 0x1eb   : > { %4744 = vpow2.f32 %v4259_v4 }
 0x1ec   : > { %4746 = vpow2.f32 %v4260_v16  ;;  %8707 = vst [vmem:[#allocation49_spill] sm:$0xff] %v6561_v3 }
 0x1f4   : > { %v4741_v59 = vpop.eup %4740 }
 0x1f5   : > { %v2475_v61 = vadd.f32 1.0, %v4741_v59 }
 0x1f7   : > { %v4743_v10 = vpop.eup %4742  ;;  %4748 = vrcp.f32 %v2475_v61 }
 0x1f8   : > { %v2476_v18 = vadd.f32 1.0, %v4743_v10  ;;  %v4745_v2 = vpop.eup %4744 }
 0x1f9   : > { %v4747_v19 = vpop.eup %4746  ;;  %v2489_v6 = vadd.f32 1.0, %v4745_v2 }
 0x1fa   : > { %4750 = vrcp.f32 %v2476_v18  ;;  %v2490_v0 = vadd.f32 1.0, %v4747_v19 }
 0x1fb   : > { %4752 = vrcp.f32 %v2489_v6 }
 0x1fc   : > { %4754 = vrcp.f32 %v2490_v0 }
 0x204   : > { %v4749_v55 = vpop.eup %4748 }
 0x207   : > { %v4751_v16 = vpop.eup %4750 }
 0x208   : > { %v4753_v2 = vpop.eup %4752 }
 0x209   : > { %v4755_v27 = vpop.eup %4754  ;;  %v2501_v19 = vsub.f32 1.0, %v4753_v2 }
 0x21b   : > { %v2460_v33 = vpop.f32.mrf.mxu0 }
 0x21c   : > { %v2461_v1 = vadd.f32 %v2460_v33, %v6557_v35  ;;  %v2502_v33 = vsub.f32 1.0, %v4755_v27 }
 0x21d   : > { %v2462_v63 = vpop.f32.mrf.mxu0 }
 0x21e   : > { %v2495_v14 = vmul.f32 %v4749_v55, %v2461_v1  ;;  %v2463_v4 = vadd.f32 %v2462_v63, %v6561_v3  ;;  %v8708_v55 = vld [vmem:[#allocation5_spill] sm:$0xff] }
 0x21f   : > { %v2464_v59 = vpop.f32.mrf.mxu0  ;;  %v2505_v63 = vmul.f32 %v4753_v2, %v8708_v55  ;;  %v8715_v2 = vld [vmem:[#allocation54_spill] sm:$0xff]  ;;  %v8744_v55 = vld [vmem:[#allocation45_spill] sm:$0xff] }
 0x220   : > { %v2497_v10 = vadd.f32 %v2495_v14, %v6500_v41  ;;  %v2496_v61 = vmul.f32 %v4751_v16, %v2463_v4  ;;  %v8709_v59 = vld [vmem:[#allocation8_spill] sm:$0xff] }
 0x221   : > { %v2465_v18 = vpop.f32.mrf.mxu0  ;;  %v2506_v0 = vmul.f32 %v4755_v27, %v8709_v59  ;;  %v8716_v27 = vld [vmem:[#allocation13_spill] sm:$0xff]  ;;  %v8746_v59 = vld [vmem:[#allocation12_spill] sm:$0xff] }
 0x222   : > { %4756 = vtanh.f32 %v2497_v10  ;;  %v2498_v39 = vadd.f32 %v2496_v61, %v6502_v11  ;;  %v8710_v10 = vld [vmem:[#allocation47_spill] sm:$0xff]  ;;  %v8711_v61 = vld [vmem:[#allocation48_spill] sm:$0xff] }
 0x223   : > { %v8713_v18 = vld [vmem:[#allocation11_spill] sm:$0xff] }
 0x224   : > { %4758 = vtanh.f32 %v2498_v39  ;;  %v8714_v39 = vld [vmem:[#allocation51_spill] sm:$0xff] }
 0x22f   : > { %v4757_v37 = vpop.eup %4756 }
 0x230   : > { %v2503_v6 = vmul.f32 %v4757_v37, %v2501_v19  ;;  %v8736_v19 = vld [vmem:[#allocation37_spill] sm:$0xff]  ;;  %v8737_v37 = vld [vmem:[#allocation74_spill] sm:$0xff] }
 0x231   : > { %v4759_v1 = vpop.eup %4758 }
 0x232   : > { %v2504_v9 = vmul.f32 %v4759_v1, %v2502_v33  ;;  %v6569_v3 = vadd.f32 %v2505_v63, %v2503_v6  ;;  %v8740_v33 = vld [vmem:[#allocation41_spill] sm:$0xff]  ;;  %v8741_v6 = vld [vmem:[#allocation76_spill] sm:$0xff]  ;;  %v8743_v1 = vld [vmem:[#allocation43_spill] sm:$0xff] }
 0x233   : > { %v8745_v63 = vld [vmem:[#allocation10_spill] sm:$0xff] }
 0x234   : > { %v6571_v14 = vadd.f32 %v2506_v0, %v2504_v9  ;;  %v6577_v16 = vpack.c.bf16 %v6569_v3, %v6569_v3  ;;  %v8712_v9 = vld [vmem:[#allocation9_spill] sm:$0xff]  ;;  %v8747_v0 = vld [vmem:[#allocation14_spill] sm:$0xff] }
 0x236   : > { %v2510_v4 = vpack.c.bf16 %v6571_v14, %v6571_v14 }
 0x238   : > { %2543 = vmatprep.mubr.bf16.mxu1 %v2510_v4  ;;  %2584 = vmatprep.mubr.bf16.mxu0 %v2510_v4 }
 0x239   : > { %2544 = vmatmul.mubr.bf16.vlgmr.msra.gmra.mxu1 %v6577_v16  ;;  %2585 = vmatmul.mubr.bf16.vlgmr.msra.gmra.mxu0 %v6577_v16 }
 0x23a   : > { %2594 = vmatpush1.bf16.msra.mxu1 %v8710_v10  ;;  %2625 = vmatprep.mubr.bf16.mxu1 %v2510_v4  ;;  %v8748_v4 = vld [vmem:[#allocation15_spill] sm:$0xff] }
 0x23b   : > { %2595 = vmatprep.subr.bf16.mxu1 %v8711_v61  ;;  %2716 = vmatpush1.bf16.msra.mxu0 %v8712_v9  ;;  %v8749_v9 = vld [vmem:[#allocation16_spill] sm:$0xff] }
 0x23c   : > { %2717 = vmatprep.subr.bf16.mxu0 %v8713_v18  ;;  %v8750_v18 = vld [vmem:[#allocation17_spill] sm:$0xff] }
 0x23e   : > { %2596 = vmatpush1.bf16.msra.mxu1 %v8714_v39 }
 0x23f   : > { %2597 = vmatprep.subr.bf16.mxu1 %v8715_v2  ;;  %2718 = vmatpush1.bf16.msra.mxu0 %v8716_v27  ;;  %v8752_v27 = vld [vmem:[#allocation19_spill] sm:$0xff] }
 0x240   : > { %2719 = vmatprep.subr.bf16.mxu0 %v5830_v5  ;;  %v8717_v5 = vld [vmem:[#allocation57_spill] sm:$0xff] }
 0x242   : > { %2598 = vmatpush1.bf16.msra.mxu1 %v6237_v15 }
 0x243   : > { %2599 = vmatprep.subr.bf16.mxu1 %v6243_v17  ;;  %2720 = vmatpush1.bf16.msra.mxu0 %v5844_v50  ;;  %v8718_v50 = vld [vmem:[#allocation58_spill] sm:$0xff] }
 0x244   : > { %2721 = vmatprep.subr.bf16.mxu0 %v5856_v22  ;;  %v8719_v22 = vld [vmem:[#allocation59_spill] sm:$0xff] }
 0x246   : > { %2600 = vmatpush1.bf16.msra.mxu1 %v6256_v57 }
 0x247   : > { %2601 = vmatprep.subr.bf16.mxu1 %v6262_v20  ;;  %2722 = vmatpush1.bf16.msra.mxu0 %v5868_v24  ;;  %v8720_v24 = vld [vmem:[#allocation60_spill] sm:$0xff] }
 0x248   : > { %2723 = vmatprep.subr.bf16.mxu0 %v5880_v26  ;;  %v8721_v26 = vld [vmem:[#allocation61_spill] sm:$0xff] }
 0x24a   : > { %2602 = vmatpush1.bf16.msra.mxu1 %v6270_v12 }
 0x24b   : > { %2603 = vmatprep.subr.bf16.mxu1 %v6276_v49  ;;  %2724 = vmatpush1.bf16.msra.mxu0 %v5892_v28  ;;  %v8722_v28 = vld [vmem:[#allocation62_spill] sm:$0xff] }
 0x24c   : > { %2725 = vmatprep.subr.bf16.mxu0 %v5904_v30  ;;  %v8723_v30 = vld [vmem:[#allocation63_spill] sm:$0xff] }
 0x24e   : > { %2604 = vmatpush1.bf16.msra.mxu1 %v6284_v53 }
 0x24f   : > { %2605 = vmatprep.subr.bf16.mxu1 %v8717_v5  ;;  %2726 = vmatpush1.bf16.msra.mxu0 %v5916_v32  ;;  %v8724_v32 = vld [vmem:[#allocation64_spill] sm:$0xff] }
 0x250   : > { %2727 = vmatprep.subr.bf16.mxu0 %v5928_v34  ;;  %v8725_v34 = vld [vmem:[#allocation65_spill] sm:$0xff] }
 0x252   : > { %2606 = vmatpush1.bf16.msra.mxu1 %v8718_v50 }
 0x253   : > { %2607 = vmatprep.subr.bf16.mxu1 %v8719_v22  ;;  %2728 = vmatpush1.bf16.msra.mxu0 %v5940_v36  ;;  %v8726_v36 = vld [vmem:[#allocation66_spill] sm:$0xff] }
 0x254   : > { %2729 = vmatprep.subr.bf16.mxu0 %v5952_v38  ;;  %v8727_v38 = vld [vmem:[#allocation67_spill] sm:$0xff] }
 0x256   : > { %2608 = vmatpush1.bf16.msra.mxu1 %v8720_v24 }
 0x257   : > { %2609 = vmatprep.subr.bf16.mxu1 %v8721_v26  ;;  %2730 = vmatpush1.bf16.msra.mxu0 %v5964_v40  ;;  %v8728_v40 = vld [vmem:[#allocation68_spill] sm:$0xff] }
 0x258   : > { %2731 = vmatprep.subr.bf16.mxu0 %v5976_v42  ;;  %v8729_v42 = vld [vmem:[#allocation69_spill] sm:$0xff] }
 0x25a   : > { %2610 = vmatpush2.bf16.msra.mxu1 %v8722_v28 }
 0x25b   : > { %2611 = vmatprep.subr.bf16.mxu1 %v8723_v30  ;;  %2732 = vmatpush2.bf16.msra.mxu0 %v5988_v44  ;;  %v8730_v44 = vld [vmem:[#allocation70_spill] sm:$0xff] }
 0x25c   : > { %2733 = vmatprep.subr.bf16.mxu0 %v6000_v46  ;;  %v8731_v46 = vld [vmem:[#allocation71_spill] sm:$0xff] }
 0x25e   : > { %2612 = vmatpush2.bf16.msra.mxu1 %v8724_v32 }
 0x25f   : > { %2613 = vmatprep.subr.bf16.mxu1 %v8725_v34  ;;  %2734 = vmatpush2.bf16.msra.mxu0 %v6012_v48  ;;  %v8732_v48 = vld [vmem:[#allocation33_spill] sm:$0xff] }
 0x260   : > { %2735 = vmatprep.subr.bf16.mxu0 %v6024_v52  ;;  %v8733_v52 = vld [vmem:[#allocation72_spill] sm:$0xff] }
 0x262   : > { %2614 = vmatpush2.bf16.msra.mxu1 %v8726_v36 }
 0x263   : > { %2615 = vmatprep.subr.bf16.mxu1 %v8727_v38  ;;  %2736 = vmatpush2.bf16.msra.mxu0 %v6036_v54  ;;  %v8734_v54 = vld [vmem:[#allocation73_spill] sm:$0xff] }
 0x264   : > { %2737 = vmatprep.subr.bf16.mxu0 %v6048_v56  ;;  %v8735_v56 = vld [vmem:[#allocation35_spill] sm:$0xff] }
 0x266   : > { %2616 = vmatpush2.bf16.msra.mxu1 %v8728_v40 }
 0x267   : > { %2617 = vmatprep.subr.bf16.mxu1 %v8729_v42  ;;  %2738 = vmatpush2.bf16.msra.mxu0 %v6060_v58  ;;  %v8738_v58 = vld [vmem:[#allocation75_spill] sm:$0xff] }
 0x268   : > { %2739 = vmatprep.subr.bf16.mxu0 %v6072_v60  ;;  %v8739_v60 = vld [vmem:[#allocation39_spill] sm:$0xff] }
 0x26a   : > { %2618 = vmatpush2.bf16.msra.mxu1 %v8730_v44 }
 0x26b   : > { %2619 = vmatprep.subr.bf16.mxu1 %v8731_v46  ;;  %2740 = vmatpush2.bf16.msra.mxu0 %v6084_v62  ;;  %v8742_v62 = vld [vmem:[#allocation7_spill] sm:$0xff] }
 0x26c   : > { %2741 = vmatprep.subr.bf16.mxu0 %v8732_v48  ;;  %v8753_v48 = vld [vmem:[#allocation20_spill] sm:$0xff] }
 0x26e   : > { %2620 = vmatpush2.bf16.msra.mxu1 %v8733_v52 }
 0x26f   : > { %2621 = vmatprep.subr.bf16.mxu1 %v8734_v54  ;;  %2742 = vmatpush2.bf16.msra.mxu0 %v8735_v56  ;;  %v8758_v56 = vld [vmem:[#allocation25_spill] sm:$0xff] }
 0x270   : > { %2743 = vmatprep.subr.bf16.mxu0 %v8736_v19  ;;  %v8759_v19 = vld [vmem:[#allocation26_spill] sm:$0xff] }
 0x272   : > { %2622 = vmatpush2.bf16.msra.mxu1 %v8737_v37 }
 0x273   : > { %2623 = vmatprep.subr.bf16.mxu1 %v8738_v58  ;;  %2744 = vmatpush2.bf16.msra.mxu0 %v8739_v60  ;;  %v8760_v60 = vld [vmem:[#allocation27_spill] sm:$0xff] }
 0x274   : > { %2745 = vmatprep.subr.bf16.mxu0 %v8740_v33  ;;  %v8761_v33 = vld [vmem:[#allocation28_spill] sm:$0xff] }
 0x276   : > { %2624 = vmatpush2.bf16.msra.mxu1 %v8741_v6 }
 0x277   : > { %2756 = vmatprep.subr.bf16.mxu1 %v8742_v62  ;;  %2746 = vmatpush2.bf16.msra.mxu0 %v8743_v1  ;;  %v8762_v62 = vld [vmem:[#allocation29_spill] sm:$0xff]  ;;  %v8763_v1 = vld [vmem:[#allocation30_spill] sm:$0xff] }
 0x278   : > { %2797 = vmatprep.subr.bf16.mxu0 %v8744_v55  ;;  %v8764_v55 = vld [vmem:[#allocation31_spill] sm:$0xff] }
 0x279   : > { %2626 = vmatmul.mubr.bf16.vlgmr.msra.gmra.mxu1 %v6577_v16  ;;  %v8751_v16 = vld [vmem:[#allocation18_spill] sm:$0xff] }
 0x27a   : > { %2757 = vmatpush1.bf16.msra.mxu1 %v8745_v63  ;;  %v8765_v63 = vld [vmem:[#allocation32_spill] sm:$0xff] }
 0x27b   : > { %2758 = vmatprep.subr.bf16.mxu1 %v8746_v59  ;;  %v8766_v59 = vld [vmem:[#allocation34_spill] sm:$0xff] }
 0x27e   : > { %2759 = vmatpush1.bf16.msra.mxu1 %v5823_v21  ;;  %v8754_v21 = vld [vmem:[#allocation21_spill] sm:$0xff] }
 0x27f   : > { %2760 = vmatprep.subr.bf16.mxu1 %v5835_v8  ;;  %v8755_v8 = vld [vmem:[#allocation22_spill] sm:$0xff] }
 0x282   : > { %2761 = vmatpush1.bf16.msra.mxu1 %v5849_v51  ;;  %v8756_v51 = vld [vmem:[#allocation23_spill] sm:$0xff] }
 0x283   : > { %2762 = vmatprep.subr.bf16.mxu1 %v5861_v23  ;;  %v8757_v23 = vld [vmem:[#allocation24_spill] sm:$0xff] }
 0x286   : > { %2763 = vmatpush1.bf16.msra.mxu1 %v8747_v0  ;;  %v8767_v0 = vld [vmem:[#allocation36_spill] sm:$0xff] }
 0x287   : > { %2764 = vmatprep.subr.bf16.mxu1 %v8748_v4  ;;  %v8768_v4 = vld [vmem:[#allocation38_spill] sm:$0xff] }
 0x28a   : > { %2765 = vmatpush1.bf16.msra.mxu1 %v8749_v9  ;;  %v8769_v9 = vld [vmem:[#allocation40_spill] sm:$0xff] }
 0x28b   : > { %2766 = vmatprep.subr.bf16.mxu1 %v8750_v18  ;;  %v8770_v18 = vld [vmem:[#allocation42_spill] sm:$0xff] }
 0x28e   : > { %2767 = vmatpush1.bf16.msra.mxu1 %v8751_v16  ;;  %v8771_v16 = vld [vmem:[#allocation44_spill] sm:$0xff] }
 0x28f   : > { %2768 = vmatprep.subr.bf16.mxu1 %v8752_v27  ;;  %v6680_v27 = vld [vmem:[%s8346_s5 + $0x154] ss:$24 sps:$4 sm:$0xff]  }
 0x290   : > { %8772 = vst [vmem:[#allocation52_spill] sm:$0xff] %v6680_v27 }
 0x292   : > { %2769 = vmatpush1.bf16.msra.mxu1 %v8753_v48 }
 0x293   : > { %2770 = vmatprep.subr.bf16.mxu1 %v8754_v21 }
 0x296   : > { %2771 = vmatpush1.bf16.msra.mxu1 %v8755_v8 }
 0x297   : > { %2772 = vmatprep.subr.bf16.mxu1 %v8756_v51 }
 0x29a   : > { %2773 = vmatpush2.bf16.msra.mxu1 %v8757_v23 }
 0x29b   : > { %2774 = vmatprep.subr.bf16.mxu1 %v8758_v56 }
 0x29e   : > { %2775 = vmatpush2.bf16.msra.mxu1 %v8759_v19 }
 0x29f   : > { %2776 = vmatprep.subr.bf16.mxu1 %v8760_v60 }
 0x2a2   : > { %2777 = vmatpush2.bf16.msra.mxu1 %v8761_v33 }
 0x2a3   : > { %2778 = vmatprep.subr.bf16.mxu1 %v8762_v62 }
 0x2a6   : > { %2779 = vmatpush2.bf16.msra.mxu1 %v8763_v1 }
 0x2a7   : > { %2780 = vmatprep.subr.bf16.mxu1 %v8764_v55 }
 0x2aa   : > { %2781 = vmatpush2.bf16.msra.mxu1 %v8765_v63 }
 0x2ab   : > { %2782 = vmatprep.subr.bf16.mxu1 %v8766_v59 }
 0x2ae   : > { %2783 = vmatpush2.bf16.msra.mxu1 %v8767_v0 }
 0x2af   : > { %2784 = vmatprep.subr.bf16.mxu1 %v8768_v4 }
 0x2b2   : > { %2785 = vmatpush2.bf16.msra.mxu1 %v8769_v9 }
 0x2b3   : > { %2786 = vmatprep.subr.bf16.mxu1 %v8770_v18 }
 0x2b6   : > { %2787 = vmatpush2.bf16.msra.mxu1 %v8771_v16 }
 0x2b7   : > { %2919 = vmatprep.subr.bf16.mxu1 %v6680_v27 }
 0x2f9   : > { %v2545_v48 = vpop.f32.mrf.mxu1  ;;  %v2586_v21 = vpop.f32.mrf.mxu0 }
 0x2fa   : > { %v2546_v33 = vadd.f32 %v2545_v48, %v6513_v13  ;;  %v2587_v4 = vadd.f32 %v2586_v21, %v6535_v31 }
 0x2fb   : > { %v2547_v8 = vpop.f32.mrf.mxu1  ;;  %v2588_v51 = vpop.f32.mrf.mxu0 }
 0x2fc   : > { %v2548_v62 = vadd.f32 %v2547_v8, %v6519_v45  ;;  %v2636_v1 = vrot.slane %v2546_v33, 6  ;;  %v2589_v18 = vadd.f32 %v2588_v51, %v6541_v25  ;;  %v2656_v16 = vrot.slane %v2587_v4, 6 }
 0x2fd   : > { %v2549_v23 = vpop.f32.mrf.mxu1  ;;  %v2590_v56 = vpop.f32.mrf.mxu0 }
 0x2fe   : > { %v2637_v55 = vrot.slane %v2548_v62, 6  ;;  %v2640_v63 = vadd.f32 %v2636_v1, %v6525_v47  ;;  %v2657_v23 = vrot.slane %v2589_v18, 6  ;;  %v2660_v48 = vadd.f32 %v2656_v16, %v6547_v29  ;;  %v8773_v18 = vld [vmem:[#allocation49_spill] sm:$0xff] }
 0x2ff   : > { %v2550_v19 = vpop.f32.mrf.mxu1  ;;  %v2591_v60 = vpop.f32.mrf.mxu0 }
 0x300   : > { %v2641_v59 = vadd.f32 %v2637_v55, %v6529_v43  ;;  %v4261_v0 = vmul.f32 -1.442695, %v2640_v63  ;;  %v2661_v8 = vadd.f32 %v2657_v23, %v6551_v7  ;;  %v4263_v56 = vmul.f32 -1.442695, %v2660_v48 }
 0x302   : > { %v4262_v9 = vmul.f32 -1.442695, %v2641_v59  ;;  %4760 = vpow2.f32 %v4261_v0  ;;  %v4264_v19 = vmul.f32 -1.442695, %v2661_v8 }
 0x304   : > { %4762 = vpow2.f32 %v4262_v9 }
 0x305   : > { %4764 = vpow2.f32 %v4263_v56 }
 0x306   : > { %4766 = vpow2.f32 %v4264_v19 }
 0x30f   : > { %v4761_v60 = vpop.eup %4760 }
 0x310   : > { %v2648_v62 = vadd.f32 1.0, %v4761_v60 }
 0x311   : > { %v4763_v33 = vpop.eup %4762 }
 0x312   : > { %v2649_v1 = vadd.f32 1.0, %v4763_v33  ;;  %4768 = vrcp.f32 %v2648_v62  ;;  %v4765_v21 = vpop.eup %4764 }
 0x313   : > { %v4767_v55 = vpop.eup %4766  ;;  %v2668_v63 = vadd.f32 1.0, %v4765_v21 }
 0x314   : > { %4770 = vrcp.f32 %v2649_v1  ;;  %v2669_v4 = vadd.f32 1.0, %v4767_v55 }
 0x315   : > { %4772 = vrcp.f32 %v2668_v63  ;;  %v2703_v63 = vstv %s2702_s22 }
 0x316   : > { %4774 = vrcp.f32 %v2669_v4  ;;  %vm2704_vm0 = vcmp.eq.s32.totalorder %v2703_v63, 1  ;;  %v6950_v63 = vld [vmem:[%s8346_s5 + $0x12c] ss:$24 sps:$4 sm:$0xff]  }
 0x317   : > { %8791 = vst [vmem:[#allocation63_spill] sm:$0xff] %v6950_v63 }
 0x31f   : > { %v4769_v23 = vpop.eup %4768 }
 0x321   : > { %v4771_v19 = vpop.eup %4770 }
 0x322   : > { %v4773_v21 = vpop.eup %4772 }
 0x323   : > { %v4775_v55 = vpop.eup %4774 }
 0x324   : > { %v2687_v4 = vsub.f32 1.0, %v4775_v55 }
 0x339   : > { %v2627_v51 = vpop.f32.mrf.mxu1 }
 0x33a   : > { %v2628_v59 = vadd.f32 %v2627_v51, %v6557_v35  ;;  %v2692_v51 = vrot.slane %v6569_v3, 6 }
 0x33b   : > { %v2629_v0 = vpop.f32.mrf.mxu1 }
 0x33c   : > { %v2676_v9 = vrot.slane %v2628_v59, 6  ;;  %v2630_v16 = vadd.f32 %v2629_v0, %v8773_v18  ;;  %v2686_v59 = vsub.f32 1.0, %v4773_v21 }
 0x33d   : > { %v2631_v48 = vpop.f32.mrf.mxu1 }
 0x33e   : > { %v2680_v8 = vmul.f32 %v4769_v23, %v2676_v9  ;;  %v2677_v56 = vrot.slane %v2630_v16, 6  ;;  %v2693_v9 = vrot.slane %v6571_v14, 6  ;;  %v2696_v23 = vmul.f32 %v4773_v21, %v2692_v51  ;;  %v6716_v21 = vld [vmem:[%s8346_s5 + $0x150] ss:$24 sps:$4 sm:$0xff]  }
 0x33f   : > { %v2632_v60 = vpop.f32.mrf.mxu1 }
 0x340   : > { %v2682_v33 = vadd.f32 %v2680_v8, %v6500_v41  ;;  %v2681_v62 = vmul.f32 %v4771_v19, %v2677_v56  ;;  %v2697_v56 = vmul.f32 %v4775_v55, %v2693_v9  ;;  %v6722_v55 = vld [vmem:[%s8346_s5 + $0x124] ss:$24 sps:$4 sm:$0xff]  }
 0x342   : > { %4776 = vtanh.f32 %v2682_v33  ;;  %v2683_v1 = vadd.f32 %v2681_v62, %v6502_v11 }
 0x344   : > { %4778 = vtanh.f32 %v2683_v1 }
 0x34f   : > { %v4777_v0 = vpop.eup %4776 }
 0x350   : > { %v2688_v16 = vmul.f32 %v4777_v0, %v2686_v59  ;;  %v6956_v59 = vld [vmem:[%s8346_s5 + $0x128] ss:$24 sps:$4 sm:$0xff]   ;;  %v6968_v0 = vld [vmem:[%s8346_s5 + $0xf8] ss:$24 sps:$4 sm:$0xff]  }
 0x351   : > { %v4779_v48 = vpop.eup %4778  ;;  %8792 = vst [vmem:[#allocation64_spill] sm:$0xff] %v6956_v59  ;;  %8794 = vst [vmem:[#allocation66_spill] sm:$0xff] %v6968_v0 }
 0x352   : > { %v2689_v8 = vmul.f32 %v4779_v48, %v2687_v4  ;;  %v2698_v19 = vadd.f32 %v2696_v23, %v2688_v16  ;;  %v6980_v4 = vld [vmem:[%s8346_s5 + $0xc8] ss:$24 sps:$4 sm:$0xff]   ;;  %v6986_v16 = vld [vmem:[%s8346_s5 + $0x9c] ss:$24 sps:$4 sm:$0xff]   ;;  %v6992_v23 = vld [vmem:[%s8346_s5 + $0x98] ss:$24 sps:$4 sm:$0xff]  }
 0x353   : > { %8796 = vst [vmem:[#allocation68_spill] sm:$0xff] %v6980_v4  ;;  %8797 = vst [vmem:[#allocation69_spill] sm:$0xff] %v6986_v16  ;;  %v6998_v48 = vld [vmem:[%s8346_s5 + $0x6c] ss:$24 sps:$4 sm:$0xff]  }
 0x354   : > { %v2699_v60 = vadd.f32 %v2697_v56, %v2689_v8  ;;  %v6699_v33 = vsel %vm2704_vm0, %v2698_v19, %v2692_v51  ;;  %v6937_v51 = vld [vmem:[%s8346_s5 + $0x164] ss:$24 sps:$4 sm:$0xff]   ;;  %8798 = vst [vmem:[#allocation70_spill] sm:$0xff] %v6992_v23  ;;  %8799 = vst [vmem:[#allocation71_spill] sm:$0xff] %v6998_v48  ;;  %v7004_v8 = vld [vmem:[%s8346_s5 + $0x68] ss:$24 sps:$4 sm:$0xff]  }
 0x355   : > { %v2707_v3 = vpack.c.bf16 %v6699_v33, %v6699_v33  ;;  %8789 = vst [vmem:[#allocation61_spill] sm:$0xff] %v6937_v51  ;;  %8800 = vst [vmem:[#allocation33_spill] sm:$0xff] %v7004_v8  ;;  %v7010_v56 = vld [vmem:[%s8346_s5 + $0x3c] ss:$24 sps:$4 sm:$0xff]   ;;  %v7016_v19 = vld [vmem:[%s8346_s5 + $0x38] ss:$24 sps:$4 sm:$0xff]  }
 0x356   : > { %v6701_v62 = vsel %vm2704_vm0, %v2699_v60, %v2693_v9  ;;  %v6974_v9 = vld [vmem:[%s8346_s5 + $0xcc] ss:$24 sps:$4 sm:$0xff]   ;;  %8801 = vst [vmem:[#allocation72_spill] sm:$0xff] %v7010_v56  ;;  %8802 = vst [vmem:[#allocation73_spill] sm:$0xff] %v7016_v19 }
 0x357   : > { %v2708_v1 = vpack.c.bf16 %v6701_v62, %v6701_v62  ;;  %v6707_v11 = vrot.slane %v2707_v3, 1  ;;  %8795 = vst [vmem:[#allocation67_spill] sm:$0xff] %v6974_v9  ;;  %v7022_v60 = vld [vmem:[%s8346_s5 + $0xc] ss:$24 sps:$4 sm:$0xff]   ;;  %v7028_v3 = vld [vmem:[%s8346_s5 + $0x8] ss:$24 sps:$4 sm:$0xff]  }
 0x358   : > { %8803 = vst [vmem:[#allocation35_spill] sm:$0xff] %v7022_v60  ;;  %8804 = vst [vmem:[#allocation37_spill] sm:$0xff] %v7028_v3 }
 0x359   : > { %v2712_v14 = vrot.slane %v2708_v1, 1  ;;  %v7034_v1 = vld [vmem:[%s8346_s5 + $0x2dc] ss:$24 sps:$4 sm:$0xff]  }
 0x35a   : > { %8805 = vst [vmem:[#allocation74_spill] sm:$0xff] %v7034_v1 }
 0x35b   : > { %2747 = vmatprep.mubr.bf16.mxu0 %v2712_v14  ;;  %2788 = vmatprep.mubr.bf16.mxu1 %v2712_v14 }
 0x35c   : > { %2748 = vmatmul.mubr.bf16.vlgmr.msra.gmra.mxu0 %v6707_v11  ;;  %2789 = vmatmul.mubr.bf16.vlgmr.msra.gmra.mxu1 %v6707_v11 }
 0x35d   : > { %2798 = vmatpush1.bf16.msra.mxu0 %v8710_v10  ;;  %2829 = vmatprep.mubr.bf16.mxu0 %v2712_v14  ;;  %v6730_v10 = vld [vmem:[%s8346_s5 + $0x120] ss:$24 sps:$4 sm:$0xff]  }
 0x35e   : > { %2799 = vmatprep.subr.bf16.mxu0 %v8711_v61  ;;  %2920 = vmatpush1.bf16.msra.mxu1 %v6716_v21  ;;  %v6736_v61 = vld [vmem:[%s8346_s5 + $0xf4] ss:$24 sps:$4 sm:$0xff]   ;;  %v7040_v14 = vld [vmem:[%s8346_s5 + $0x2d8] ss:$24 sps:$4 sm:$0xff]  }
 0x35f   : > { %2921 = vmatprep.subr.bf16.mxu1 %v6722_v55  ;;  %8806 = vst [vmem:[#allocation75_spill] sm:$0xff] %v7040_v14 }
 0x361   : > { %2800 = vmatpush1.bf16.msra.mxu0 %v8714_v39  ;;  %v6744_v39 = vld [vmem:[%s8346_s5 + $0xf0] ss:$24 sps:$4 sm:$0xff]  }
 0x362   : > { %2801 = vmatprep.subr.bf16.mxu0 %v8715_v2  ;;  %2922 = vmatpush1.bf16.msra.mxu1 %v6730_v10  ;;  %v6750_v2 = vld [vmem:[%s8346_s5 + $0xc4] ss:$24 sps:$4 sm:$0xff]  }
 0x363   : > { %2923 = vmatprep.subr.bf16.mxu1 %v6736_v61 }
 0x365   : > { %2802 = vmatpush1.bf16.msra.mxu0 %v6237_v15  ;;  %v6758_v15 = vld [vmem:[%s8346_s5 + $0xc0] ss:$24 sps:$4 sm:$0xff]  }
 0x366   : > { %2803 = vmatprep.subr.bf16.mxu0 %v6243_v17  ;;  %2924 = vmatpush1.bf16.msra.mxu1 %v6744_v39  ;;  %v6764_v17 = vld [vmem:[%s8346_s5 + $0x94] ss:$24 sps:$4 sm:$0xff]  }
 0x367   : > { %2925 = vmatprep.subr.bf16.mxu1 %v6750_v2 }
 0x369   : > { %2804 = vmatpush1.bf16.msra.mxu0 %v6256_v57  ;;  %v6778_v57 = vld [vmem:[%s8346_s5 + $0x64] ss:$24 sps:$4 sm:$0xff]  }
 0x36a   : > { %2805 = vmatprep.subr.bf16.mxu0 %v6262_v20  ;;  %2926 = vmatpush1.bf16.msra.mxu1 %v6758_v15  ;;  %v6772_v20 = vld [vmem:[%s8346_s5 + $0x90] ss:$24 sps:$4 sm:$0xff]  }
 0x36b   : > { %2927 = vmatprep.subr.bf16.mxu1 %v6764_v17 }
 0x36d   : > { %2806 = vmatpush1.bf16.msra.mxu0 %v6270_v12  ;;  %v6786_v12 = vld [vmem:[%s8346_s5 + $0x60] ss:$24 sps:$4 sm:$0xff]  }
 0x36e   : > { %2807 = vmatprep.subr.bf16.mxu0 %v6276_v49  ;;  %2928 = vmatpush1.bf16.msra.mxu1 %v6772_v20  ;;  %v6792_v49 = vld [vmem:[%s8346_s5 + $0x34] ss:$24 sps:$4 sm:$0xff]  }
 0x36f   : > { %2929 = vmatprep.subr.bf16.mxu1 %v6778_v57 }
 0x371   : > { %2808 = vmatpush1.bf16.msra.mxu0 %v6284_v53  ;;  %v6800_v53 = vld [vmem:[%s8346_s5 + $0x30] ss:$24 sps:$4 sm:$0xff]  }
 0x372   : > { %2809 = vmatprep.subr.bf16.mxu0 %v8717_v5  ;;  %2930 = vmatpush1.bf16.msra.mxu1 %v6786_v12  ;;  %v6806_v5 = vld [vmem:[%s8346_s5 + $0x4] ss:$24 sps:$4 sm:$0xff]  }
 0x373   : > { %2931 = vmatprep.subr.bf16.mxu1 %v6792_v49 }
 0x375   : > { %2810 = vmatpush1.bf16.msra.mxu0 %v8718_v50  ;;  %v6814_v50 = vld [vmem:[%s8346_s5] ss:$24 sps:$4 sm:$0xff]  }
 0x376   : > { %2811 = vmatprep.subr.bf16.mxu0 %v8719_v22  ;;  %2932 = vmatpush1.bf16.msra.mxu1 %v6800_v53  ;;  %v6820_v22 = vld [vmem:[%s8346_s5 + $0x2d4] ss:$24 sps:$4 sm:$0xff]  }
 0x377   : > { %2933 = vmatprep.subr.bf16.mxu1 %v6806_v5  ;;  %8774 = vst [vmem:[#allocation50_spill] sm:$0xff] %v6820_v22 }
 0x379   : > { %2812 = vmatpush1.bf16.msra.mxu0 %v8720_v24  ;;  %v6828_v24 = vld [vmem:[%s8346_s5 + $0x2d0] ss:$24 sps:$4 sm:$0xff]  }
 0x37a   : > { %2813 = vmatprep.subr.bf16.mxu0 %v8721_v26  ;;  %2934 = vmatpush1.bf16.msra.mxu1 %v6814_v50  ;;  %v6834_v26 = vld [vmem:[%s8346_s5 + $0x2a4] ss:$24 sps:$4 sm:$0xff]  }
 0x37b   : > { %2935 = vmatprep.subr.bf16.mxu1 %v6820_v22  ;;  %8775 = vst [vmem:[#allocation53_spill] sm:$0xff] %v6834_v26 }
 0x37d   : > { %2814 = vmatpush2.bf16.msra.mxu0 %v8722_v28  ;;  %v6842_v28 = vld [vmem:[%s8346_s5 + $0x2a0] ss:$24 sps:$4 sm:$0xff]  }
 0x37e   : > { %2815 = vmatprep.subr.bf16.mxu0 %v8723_v30  ;;  %2936 = vmatpush2.bf16.msra.mxu1 %v6828_v24  ;;  %v6848_v30 = vld [vmem:[%s8346_s5 + $0x274] ss:$24 sps:$4 sm:$0xff]  }
 0x37f   : > { %2937 = vmatprep.subr.bf16.mxu1 %v6834_v26  ;;  %8776 = vst [vmem:[#allocation5_spill] sm:$0xff] %v6848_v30 }
 0x381   : > { %2816 = vmatpush2.bf16.msra.mxu0 %v8724_v32  ;;  %v6856_v32 = vld [vmem:[%s8346_s5 + $0x270] ss:$24 sps:$4 sm:$0xff]  }
 0x382   : > { %2817 = vmatprep.subr.bf16.mxu0 %v8725_v34  ;;  %2938 = vmatpush2.bf16.msra.mxu1 %v6842_v28  ;;  %8777 = vst [vmem:[#allocation8_spill] sm:$0xff] %v6856_v32  ;;  %v6862_v34 = vld [vmem:[%s8346_s5 + $0x244] ss:$24 sps:$4 sm:$0xff]  }
 0x383   : > { %2939 = vmatprep.subr.bf16.mxu1 %v6848_v30  ;;  %8778 = vst [vmem:[#allocation47_spill] sm:$0xff] %v6862_v34 }
 0x385   : > { %2818 = vmatpush2.bf16.msra.mxu0 %v8726_v36  ;;  %v6870_v36 = vld [vmem:[%s8346_s5 + $0x240] ss:$24 sps:$4 sm:$0xff]  }
 0x386   : > { %2819 = vmatprep.subr.bf16.mxu0 %v8727_v38  ;;  %2940 = vmatpush2.bf16.msra.mxu1 %v6856_v32  ;;  %8779 = vst [vmem:[#allocation48_spill] sm:$0xff] %v6870_v36  ;;  %v6876_v38 = vld [vmem:[%s8346_s5 + $0x214] ss:$24 sps:$4 sm:$0xff]  }
 0x387   : > { %2941 = vmatprep.subr.bf16.mxu1 %v6862_v34  ;;  %8780 = vst [vmem:[#allocation9_spill] sm:$0xff] %v6876_v38 }
 0x389   : > { %2820 = vmatpush2.bf16.msra.mxu0 %v8728_v40  ;;  %v6884_v40 = vld [vmem:[%s8346_s5 + $0x210] ss:$24 sps:$4 sm:$0xff]  }
 0x38a   : > { %2821 = vmatprep.subr.bf16.mxu0 %v8729_v42  ;;  %2942 = vmatpush2.bf16.msra.mxu1 %v6870_v36  ;;  %8781 = vst [vmem:[#allocation11_spill] sm:$0xff] %v6884_v40  ;;  %v6890_v42 = vld [vmem:[%s8346_s5 + $0x1e4] ss:$24 sps:$4 sm:$0xff]  }
 0x38b   : > { %2943 = vmatprep.subr.bf16.mxu1 %v6876_v38  ;;  %8782 = vst [vmem:[#allocation51_spill] sm:$0xff] %v6890_v42 }
 0x38d   : > { %2822 = vmatpush2.bf16.msra.mxu0 %v8730_v44  ;;  %v6898_v44 = vld [vmem:[%s8346_s5 + $0x1e0] ss:$24 sps:$4 sm:$0xff]  }
 0x38e   : > { %2823 = vmatprep.subr.bf16.mxu0 %v8731_v46  ;;  %2944 = vmatpush2.bf16.msra.mxu1 %v6884_v40  ;;  %8783 = vst [vmem:[#allocation54_spill] sm:$0xff] %v6898_v44  ;;  %v6904_v46 = vld [vmem:[%s8346_s5 + $0x1b4] ss:$24 sps:$4 sm:$0xff]  }
 0x38f   : > { %2945 = vmatprep.subr.bf16.mxu1 %v6890_v42  ;;  %8784 = vst [vmem:[#allocation13_spill] sm:$0xff] %v6904_v46 }
 0x391   : > { %2824 = vmatpush2.bf16.msra.mxu0 %v8733_v52  ;;  %v6912_v52 = vld [vmem:[%s8346_s5 + $0x1b0] ss:$24 sps:$4 sm:$0xff]  }
 0x392   : > { %2825 = vmatprep.subr.bf16.mxu0 %v8734_v54  ;;  %2946 = vmatpush2.bf16.msra.mxu1 %v6898_v44  ;;  %8785 = vst [vmem:[#allocation57_spill] sm:$0xff] %v6912_v52  ;;  %v6918_v54 = vld [vmem:[%s8346_s5 + $0x184] ss:$24 sps:$4 sm:$0xff]  }
 0x393   : > { %2947 = vmatprep.subr.bf16.mxu1 %v6904_v46  ;;  %8786 = vst [vmem:[#allocation58_spill] sm:$0xff] %v6918_v54 }
 0x395   : > { %2826 = vmatpush2.bf16.msra.mxu0 %v8737_v37  ;;  %v6925_v37 = vld [vmem:[%s8346_s5 + $0x15c] ss:$24 sps:$4 sm:$0xff]  }
 0x396   : > { %2827 = vmatprep.subr.bf16.mxu0 %v8738_v58  ;;  %2948 = vmatpush2.bf16.msra.mxu1 %v6912_v52  ;;  %8787 = vst [vmem:[#allocation59_spill] sm:$0xff] %v6925_v37  ;;  %v6931_v58 = vld [vmem:[%s8346_s5 + $0x180] ss:$24 sps:$4 sm:$0xff]  }
 0x397   : > { %2949 = vmatprep.subr.bf16.mxu1 %v6918_v54  ;;  %8788 = vst [vmem:[#allocation60_spill] sm:$0xff] %v6931_v58 }
 0x399   : > { %2828 = vmatpush2.bf16.msra.mxu0 %v8741_v6  ;;  %v6944_v6 = vld [vmem:[%s8346_s5 + $0x158] ss:$24 sps:$4 sm:$0xff]  }
 0x39a   : > { %2960 = vmatprep.subr.bf16.mxu0 %v6925_v37  ;;  %2950 = vmatpush2.bf16.msra.mxu1 %v6931_v58  ;;  %8790 = vst [vmem:[#allocation62_spill] sm:$0xff] %v6944_v6 }
 0x39b   : > { %3001 = vmatprep.subr.bf16.mxu1 %v6937_v51 }
 0x39c   : > { %2830 = vmatmul.mubr.bf16.vlgmr.msra.gmra.mxu0 %v6707_v11  ;;  %v6962_v11 = vld [vmem:[%s8346_s5 + $0xfc] ss:$24 sps:$4 sm:$0xff]  }
 0x39d   : > { %2961 = vmatpush1.bf16.msra.mxu0 %v6944_v6  ;;  %8793 = vst [vmem:[#allocation65_spill] sm:$0xff] %v6962_v11 }
 0x39e   : > { %2962 = vmatprep.subr.bf16.mxu0 %v6950_v63 }
 0x3a1   : > { %2963 = vmatpush1.bf16.msra.mxu0 %v6956_v59 }
 0x3a2   : > { %2964 = vmatprep.subr.bf16.mxu0 %v6962_v11 }
 0x3a5   : > { %2965 = vmatpush1.bf16.msra.mxu0 %v6968_v0 }
 0x3a6   : > { %2966 = vmatprep.subr.bf16.mxu0 %v6974_v9 }
 0x3a9   : > { %2967 = vmatpush1.bf16.msra.mxu0 %v6980_v4 }
 0x3aa   : > { %2968 = vmatprep.subr.bf16.mxu0 %v6986_v16 }
 0x3ad   : > { %2969 = vmatpush1.bf16.msra.mxu0 %v6992_v23 }
 0x3ae   : > { %2970 = vmatprep.subr.bf16.mxu0 %v6998_v48 }
 0x3b1   : > { %2971 = vmatpush1.bf16.msra.mxu0 %v7004_v8 }
 0x3b2   : > { %2972 = vmatprep.subr.bf16.mxu0 %v7010_v56 }
 0x3b5   : > { %2973 = vmatpush1.bf16.msra.mxu0 %v7016_v19 }
 0x3b6   : > { %2974 = vmatprep.subr.bf16.mxu0 %v7022_v60  ;;  %v7046_v60 = vld [vmem:[%s8346_s5 + $0x2ac] ss:$24 sps:$4 sm:$0xff]  }
 0x3b7   : > { %8807 = vst [vmem:[#allocation39_spill] sm:$0xff] %v7046_v60 }
 0x3b9   : > { %2975 = vmatpush1.bf16.msra.mxu0 %v7028_v3  ;;  %v7052_v3 = vld [vmem:[%s8346_s5 + $0x2a8] ss:$24 sps:$4 sm:$0xff]  }
 0x3ba   : > { %2976 = vmatprep.subr.bf16.mxu0 %v7034_v1  ;;  %8808 = vst [vmem:[#allocation41_spill] sm:$0xff] %v7052_v3  ;;  %v7058_v1 = vld [vmem:[%s8346_s5 + $0x27c] ss:$24 sps:$4 sm:$0xff]  }
 0x3bb   : > { %8809 = vst [vmem:[#allocation76_spill] sm:$0xff] %v7058_v1 }
 0x3bd   : > { %2977 = vmatpush2.bf16.msra.mxu0 %v7040_v14  ;;  %v7064_v14 = vld [vmem:[%s8346_s5 + $0x278] ss:$24 sps:$4 sm:$0xff]  }
 0x3be   : > { %2978 = vmatprep.subr.bf16.mxu0 %v7046_v60  ;;  %8810 = vst [vmem:[#allocation7_spill] sm:$0xff] %v7064_v14  ;;  %v7070_v60 = vld [vmem:[%s8346_s5 + $0x24c] ss:$24 sps:$4 sm:$0xff]  }
 0x3bf   : > { %8811 = vst [vmem:[#allocation43_spill] sm:$0xff] %v7070_v60 }
 0x3c1   : > { %2979 = vmatpush2.bf16.msra.mxu0 %v7052_v3  ;;  %v7076_v3 = vld [vmem:[%s8346_s5 + $0x248] ss:$24 sps:$4 sm:$0xff]  }
 0x3c2   : > { %2980 = vmatprep.subr.bf16.mxu0 %v7058_v1  ;;  %8812 = vst [vmem:[#allocation45_spill] sm:$0xff] %v7076_v3  ;;  %v7082_v1 = vld [vmem:[%s8346_s5 + $0x21c] ss:$24 sps:$4 sm:$0xff]  }
 0x3c3   : > { %8813 = vst [vmem:[#allocation10_spill] sm:$0xff] %v7082_v1 }
 0x3c5   : > { %2981 = vmatpush2.bf16.msra.mxu0 %v7064_v14  ;;  %v7088_v14 = vld [vmem:[%s8346_s5 + $0x218] ss:$24 sps:$4 sm:$0xff]  }
 0x3c6   : > { %2982 = vmatprep.subr.bf16.mxu0 %v7070_v60  ;;  %8814 = vst [vmem:[#allocation12_spill] sm:$0xff] %v7088_v14  ;;  %v7094_v60 = vld [vmem:[%s8346_s5 + $0x1ec] ss:$24 sps:$4 sm:$0xff]  }
 0x3c7   : > { %8815 = vst [vmem:[#allocation14_spill] sm:$0xff] %v7094_v60 }
 0x3c9   : > { %2983 = vmatpush2.bf16.msra.mxu0 %v7076_v3  ;;  %v7100_v3 = vld [vmem:[%s8346_s5 + $0x1e8] ss:$24 sps:$4 sm:$0xff]  }
 0x3ca   : > { %2984 = vmatprep.subr.bf16.mxu0 %v7082_v1  ;;  %8816 = vst [vmem:[#allocation15_spill] sm:$0xff] %v7100_v3  ;;  %v7106_v1 = vld [vmem:[%s8346_s5 + $0x1bc] ss:$24 sps:$4 sm:$0xff]  }
 0x3cb   : > { %8817 = vst [vmem:[#allocation16_spill] sm:$0xff] %v7106_v1 }
 0x3cd   : > { %2985 = vmatpush2.bf16.msra.mxu0 %v7088_v14  ;;  %v7112_v14 = vld [vmem:[%s8346_s5 + $0x1b8] ss:$24 sps:$4 sm:$0xff]  }
 0x3ce   : > { %2986 = vmatprep.subr.bf16.mxu0 %v7094_v60  ;;  %8818 = vst [vmem:[#allocation17_spill] sm:$0xff] %v7112_v14  ;;  %v7118_v60 = vld [vmem:[%s8346_s5 + $0x18c] ss:$24 sps:$4 sm:$0xff]  }
 0x3cf   : > { %8819 = vst [vmem:[#allocation18_spill] sm:$0xff] %v7118_v60 }
 0x3d1   : > { %2987 = vmatpush2.bf16.msra.mxu0 %v7100_v3  ;;  %v7124_v3 = vld [vmem:[%s8346_s5 + $0x188] ss:$24 sps:$4 sm:$0xff]  }
 0x3d2   : > { %2988 = vmatprep.subr.bf16.mxu0 %v7106_v1  ;;  %8820 = vst [vmem:[#allocation19_spill] sm:$0xff] %v7124_v3 }
 0x3d5   : > { %2989 = vmatpush2.bf16.msra.mxu0 %v7112_v14 }
 0x3d6   : > { %2990 = vmatprep.subr.bf16.mxu0 %v7118_v60 }
 0x3d9   : > { %2991 = vmatpush2.bf16.msra.mxu0 %v7124_v3 }
 0x3da   : > { %3123 = vmatprep.subr.bf16.mxu0 %v6680_v27 }
 0x41c   : > { %v2749_v1 = vpop.f32.mrf.mxu0  ;;  %v2790_v19 = vpop.f32.mrf.mxu1 }
 0x41d   : > { %v2750_v4 = vadd.f32 %v2749_v1, %v6513_v13  ;;  %v2791_v27 = vadd.f32 %v2790_v19, %v6535_v31 }
 0x41e   : > { %v2751_v56 = vpop.f32.mrf.mxu0  ;;  %v2792_v14 = vpop.f32.mrf.mxu1 }
 0x41f   : > { %v2752_v60 = vadd.f32 %v2751_v56, %v6519_v45  ;;  %v2840_v9 = vrot.slane %v2750_v4, 4 }
 0x420   : > { %v2753_v8 = vpop.f32.mrf.mxu0  ;;  %v2794_v48 = vpop.f32.mrf.mxu1 }
 0x421   : > { %v2841_v0 = vrot.slane %v2752_v60, 4  ;;  %v2844_v11 = vadd.f32 %v2840_v9, %v6525_v47  ;;  %v2793_v8 = vadd.f32 %v2792_v14, %v6541_v25  ;;  %v2860_v48 = vrot.slane %v2791_v27, 4 }
 0x422   : > { %v2754_v23 = vpop.f32.mrf.mxu0  ;;  %v2795_v16 = vpop.f32.mrf.mxu1 }
 0x423   : > { %v2845_v3 = vadd.f32 %v2841_v0, %v6529_v43  ;;  %v4265_v59 = vmul.f32 -1.442695, %v2844_v11  ;;  %v2861_v16 = vrot.slane %v2793_v8, 4  ;;  %v2864_v23 = vadd.f32 %v2860_v48, %v6547_v29 }
 0x425   : > { %v4266_v63 = vmul.f32 -1.442695, %v2845_v3  ;;  %4780 = vpow2.f32 %v4265_v59  ;;  %v2865_v56 = vadd.f32 %v2861_v16, %v6551_v7  ;;  %v4267_v4 = vmul.f32 -1.442695, %v2864_v23 }
 0x427   : > { %4782 = vpow2.f32 %v4266_v63  ;;  %v4268_v60 = vmul.f32 -1.442695, %v2865_v56 }
 0x428   : > { %4784 = vpow2.f32 %v4267_v4 }
 0x429   : > { %4786 = vpow2.f32 %v4268_v60 }
 0x432   : > { %v4781_v1 = vpop.eup %4780 }
 0x433   : > { %v2852_v0 = vadd.f32 1.0, %v4781_v1 }
 0x434   : > { %v4783_v9 = vpop.eup %4782 }
 0x435   : > { %v2853_v11 = vadd.f32 1.0, %v4783_v9  ;;  %4788 = vrcp.f32 %v2852_v0  ;;  %v4785_v59 = vpop.eup %4784 }
 0x436   : > { %v4787_v19 = vpop.eup %4786  ;;  %v2872_v27 = vadd.f32 1.0, %v4785_v59  ;;  %v8821_v59 = vld [vmem:[#allocation79_spill] sm:$0xff] }
 0x437   : > { %4790 = vrcp.f32 %v2853_v11  ;;  %v2873_v8 = vadd.f32 1.0, %v4787_v19 }
 0x438   : > { %4792 = vrcp.f32 %v2872_v27  ;;  %v2907_v27 = vstv %s2906_s13 }
 0x439   : > { %4794 = vrcp.f32 %v2873_v8  ;;  %vm2908_vm1 = vcmp.eq.s32.totalorder %v2907_v27, 1  ;;  %v7187_v27 = vld [vmem:[%s8346_s5 + $0x100] ss:$24 sps:$4 sm:$0xff]  }
 0x442   : > { %v4789_v23 = vpop.eup %4788 }
 0x444   : > { %v4791_v1 = vpop.eup %4790 }
 0x445   : > { %v4793_v19 = vpop.eup %4792 }
 0x45c   : > { %v2831_v3 = vpop.f32.mrf.mxu0 }
 0x45d   : > { %v2832_v63 = vadd.f32 %v2831_v3, %v6557_v35 }
 0x45e   : > { %v2833_v14 = vpop.f32.mrf.mxu0 }
 0x45f   : > { %v2880_v48 = vrot.slane %v2832_v63, 4  ;;  %v2834_v16 = vadd.f32 %v2833_v14, %v8773_v18  ;;  %v4795_v63 = vpop.eup %4794  ;;  %v2896_v14 = vrot.slane %v6699_v33, 6 }
 0x460   : > { %v2835_v56 = vpop.f32.mrf.mxu0  ;;  %v2891_v8 = vsub.f32 1.0, %v4795_v63 }
 0x461   : > { %v2884_v4 = vmul.f32 %v4789_v23, %v2880_v48  ;;  %v2881_v60 = vrot.slane %v2834_v16, 4  ;;  %v2890_v48 = vsub.f32 1.0, %v4793_v19  ;;  %v2897_v23 = vrot.slane %v6701_v62, 6 }
 0x462   : > { %v2836_v9 = vpop.f32.mrf.mxu0 }
 0x463   : > { %v2886_v0 = vadd.f32 %v2884_v4, %v6500_v41  ;;  %v2885_v11 = vmul.f32 %v4791_v1, %v2881_v60  ;;  %v2900_v4 = vmul.f32 %v4793_v19, %v2896_v14  ;;  %v2901_v9 = vmul.f32 %v4795_v63, %v2897_v23  ;;  %v7159_v19 = vld [vmem:[%s8346_s5 + $0x160] ss:$24 sps:$4 sm:$0xff]   ;;  %v7173_v63 = vld [vmem:[%s8346_s5 + $0x130] ss:$24 sps:$4 sm:$0xff]  }
 0x465   : > { %4796 = vtanh.f32 %v2886_v0  ;;  %v2887_v3 = vadd.f32 %v2885_v11, %v8821_v59 }
 0x467   : > { %4798 = vtanh.f32 %v2887_v3 }
 0x472   : > { %v4797_v16 = vpop.eup %4796 }
 0x473   : > { %v2892_v56 = vmul.f32 %v4797_v16, %v2890_v48  ;;  %v7193_v48 = vld [vmem:[%s8346_s5 + $0xd4] ss:$24 sps:$4 sm:$0xff]   ;;  %v7201_v16 = vld [vmem:[%s8346_s5 + $0xd0] ss:$24 sps:$4 sm:$0xff]  }
 0x474   : > { %v4799_v60 = vpop.eup %4798 }
 0x475   : > { %v2893_v1 = vmul.f32 %v4799_v60, %v2891_v8  ;;  %v2902_v0 = vadd.f32 %v2900_v4, %v2892_v56  ;;  %v7215_v8 = vld [vmem:[%s8346_s5 + $0xa0] ss:$24 sps:$4 sm:$0xff]   ;;  %v7221_v56 = vld [vmem:[%s8346_s5 + $0x74] ss:$24 sps:$4 sm:$0xff]   ;;  %v7229_v4 = vld [vmem:[%s8346_s5 + $0x70] ss:$24 sps:$4 sm:$0xff]  }
 0x476   : > { %v7235_v60 = vld [vmem:[%s8346_s5 + $0x44] ss:$24 sps:$4 sm:$0xff]  }
 0x477   : > { %v2903_v11 = vadd.f32 %v2901_v9, %v2893_v1  ;;  %v7144_v3 = vsel %vm2908_vm1, %v2902_v0, %v2896_v14  ;;  %v7179_v14 = vld [vmem:[%s8346_s5 + $0x104] ss:$24 sps:$4 sm:$0xff]   ;;  %v7243_v1 = vld [vmem:[%s8346_s5 + $0x40] ss:$24 sps:$4 sm:$0xff]   ;;  %v7249_v9 = vld [vmem:[%s8346_s5 + $0x14] ss:$24 sps:$4 sm:$0xff]  }
 0x478   : > { %v2911_v33 = vpack.c.bf16 %v7144_v3, %v7144_v3  ;;  %v7257_v0 = vld [vmem:[%s8346_s5 + $0x10] ss:$24 sps:$4 sm:$0xff]  }
 0x479   : > { %v7146_v59 = vsel %vm2908_vm1, %v2903_v11, %v2897_v23  ;;  %v7207_v23 = vld [vmem:[%s8346_s5 + $0xa4] ss:$24 sps:$4 sm:$0xff]  }
 0x47a   : > { %v2912_v41 = vpack.c.bf16 %v7146_v59, %v7146_v59  ;;  %v7152_v18 = vrot.slane %v2911_v33, 2  ;;  %v7263_v11 = vld [vmem:[%s8346_s5 + $0x2e4] ss:$24 sps:$4 sm:$0xff]   ;;  %v7271_v33 = vld [vmem:[%s8346_s5 + $0x2e0] ss:$24 sps:$4 sm:$0xff]  }
 0x47b   : > { %8822 = vst [vmem:[#allocation20_spill] sm:$0xff] %v7271_v33 }
 0x47c   : > { %v2916_v62 = vrot.slane %v2912_v41, 2  ;;  %v7165_v41 = vld [vmem:[%s8346_s5 + $0x134] ss:$24 sps:$4 sm:$0xff]  }
 0x47e   : > { %2951 = vmatprep.mubr.bf16.mxu1 %v2916_v62  ;;  %2992 = vmatprep.mubr.bf16.mxu0 %v2916_v62 }
 0x47f   : > { %2952 = vmatmul.mubr.bf16.vlgmr.msra.gmra.mxu1 %v7152_v18  ;;  %2993 = vmatmul.mubr.bf16.vlgmr.msra.gmra.mxu0 %v7152_v18 }
 0x480   : > { %3002 = vmatpush1.bf16.msra.mxu1 %v7159_v19  ;;  %3033 = vmatprep.mubr.bf16.mxu1 %v2916_v62  ;;  %v7277_v62 = vld [vmem:[%s8346_s5 + $0x2b4] ss:$24 sps:$4 sm:$0xff]  }
 0x481   : > { %3003 = vmatprep.subr.bf16.mxu1 %v7165_v41  ;;  %3124 = vmatpush1.bf16.msra.mxu0 %v6716_v21 }
 0x482   : > { %3125 = vmatprep.subr.bf16.mxu0 %v6722_v55 }
 0x484   : > { %3004 = vmatpush1.bf16.msra.mxu1 %v7173_v63 }
 0x485   : > { %3005 = vmatprep.subr.bf16.mxu1 %v7179_v14  ;;  %3126 = vmatpush1.bf16.msra.mxu0 %v6730_v10 }
 0x486   : > { %3127 = vmatprep.subr.bf16.mxu0 %v6736_v61 }
 0x488   : > { %3006 = vmatpush1.bf16.msra.mxu1 %v7187_v27 }
 0x489   : > { %3007 = vmatprep.subr.bf16.mxu1 %v7193_v48  ;;  %3128 = vmatpush1.bf16.msra.mxu0 %v6744_v39 }
 0x48a   : > { %3129 = vmatprep.subr.bf16.mxu0 %v6750_v2 }
 0x48c   : > { %3008 = vmatpush1.bf16.msra.mxu1 %v7201_v16 }
 0x48d   : > { %3009 = vmatprep.subr.bf16.mxu1 %v7207_v23  ;;  %3130 = vmatpush1.bf16.msra.mxu0 %v6758_v15 }
 0x48e   : > { %3131 = vmatprep.subr.bf16.mxu0 %v6764_v17 }
 0x490   : > { %3010 = vmatpush1.bf16.msra.mxu1 %v7215_v8 }
 0x491   : > { %3011 = vmatprep.subr.bf16.mxu1 %v7221_v56  ;;  %3132 = vmatpush1.bf16.msra.mxu0 %v6772_v20 }
 0x492   : > { %3133 = vmatprep.subr.bf16.mxu0 %v6778_v57 }
 0x494   : > { %3012 = vmatpush1.bf16.msra.mxu1 %v7229_v4 }
 0x495   : > { %3013 = vmatprep.subr.bf16.mxu1 %v7235_v60  ;;  %3134 = vmatpush1.bf16.msra.mxu0 %v6786_v12 }
 0x496   : > { %3135 = vmatprep.subr.bf16.mxu0 %v6792_v49 }
 0x498   : > { %3014 = vmatpush1.bf16.msra.mxu1 %v7243_v1 }
 0x499   : > { %3015 = vmatprep.subr.bf16.mxu1 %v7249_v9  ;;  %3136 = vmatpush1.bf16.msra.mxu0 %v6800_v53 }
 0x49a   : > { %3137 = vmatprep.subr.bf16.mxu0 %v6806_v5 }
 0x49c   : > { %3016 = vmatpush1.bf16.msra.mxu1 %v7257_v0 }
 0x49d   : > { %3017 = vmatprep.subr.bf16.mxu1 %v7263_v11  ;;  %3138 = vmatpush1.bf16.msra.mxu0 %v6814_v50 }
 0x49e   : > { %3139 = vmatprep.subr.bf16.mxu0 %v6820_v22  ;;  %v7285_v22 = vld [vmem:[%s8346_s5 + $0x2b0] ss:$24 sps:$4 sm:$0xff]  }
 0x49f   : > { %8823 = vst [vmem:[#allocation21_spill] sm:$0xff] %v7285_v22 }
 0x4a0   : > { %3018 = vmatpush2.bf16.msra.mxu1 %v7271_v33  ;;  %v7291_v33 = vld [vmem:[%s8346_s5 + $0x284] ss:$24 sps:$4 sm:$0xff]  }
 0x4a1   : > { %3019 = vmatprep.subr.bf16.mxu1 %v7277_v62  ;;  %3140 = vmatpush2.bf16.msra.mxu0 %v6828_v24 }
 0x4a2   : > { %3141 = vmatprep.subr.bf16.mxu0 %v6834_v26  ;;  %v7299_v26 = vld [vmem:[%s8346_s5 + $0x280] ss:$24 sps:$4 sm:$0xff]  }
 0x4a3   : > { %8824 = vst [vmem:[#allocation22_spill] sm:$0xff] %v7299_v26 }
 0x4a4   : > { %3020 = vmatpush2.bf16.msra.mxu1 %v7285_v22  ;;  %v7305_v22 = vld [vmem:[%s8346_s5 + $0x254] ss:$24 sps:$4 sm:$0xff]  }
 0x4a5   : > { %3021 = vmatprep.subr.bf16.mxu1 %v7291_v33  ;;  %3142 = vmatpush2.bf16.msra.mxu0 %v6842_v28 }
 0x4a6   : > { %3143 = vmatprep.subr.bf16.mxu0 %v6848_v30  ;;  %v7313_v30 = vld [vmem:[%s8346_s5 + $0x250] ss:$24 sps:$4 sm:$0xff]  }
 0x4a7   : > { %8825 = vst [vmem:[#allocation23_spill] sm:$0xff] %v7313_v30 }
 0x4a8   : > { %3022 = vmatpush2.bf16.msra.mxu1 %v7299_v26  ;;  %v7319_v26 = vld [vmem:[%s8346_s5 + $0x224] ss:$24 sps:$4 sm:$0xff]  }
 0x4a9   : > { %3023 = vmatprep.subr.bf16.mxu1 %v7305_v22  ;;  %3144 = vmatpush2.bf16.msra.mxu0 %v6856_v32  ;;  %8826 = vst [vmem:[#allocation24_spill] sm:$0xff] %v7319_v26 }
 0x4aa   : > { %3145 = vmatprep.subr.bf16.mxu0 %v6862_v34  ;;  %v7327_v34 = vld [vmem:[%s8346_s5 + $0x220] ss:$24 sps:$4 sm:$0xff]  }
 0x4ab   : > { %8827 = vst [vmem:[#allocation25_spill] sm:$0xff] %v7327_v34 }
 0x4ac   : > { %3024 = vmatpush2.bf16.msra.mxu1 %v7313_v30  ;;  %v7333_v30 = vld [vmem:[%s8346_s5 + $0x1f4] ss:$24 sps:$4 sm:$0xff]  }
 0x4ad   : > { %3025 = vmatprep.subr.bf16.mxu1 %v7319_v26  ;;  %3146 = vmatpush2.bf16.msra.mxu0 %v6870_v36  ;;  %8828 = vst [vmem:[#allocation26_spill] sm:$0xff] %v7333_v30 }
 0x4ae   : > { %3147 = vmatprep.subr.bf16.mxu0 %v6876_v38  ;;  %v7341_v38 = vld [vmem:[%s8346_s5 + $0x1f0] ss:$24 sps:$4 sm:$0xff]  }
 0x4af   : > { %8829 = vst [vmem:[#allocation27_spill] sm:$0xff] %v7341_v38 }
 0x4b0   : > { %3026 = vmatpush2.bf16.msra.mxu1 %v7327_v34  ;;  %v7347_v34 = vld [vmem:[%s8346_s5 + $0x1c4] ss:$24 sps:$4 sm:$0xff]  }
 0x4b1   : > { %3027 = vmatprep.subr.bf16.mxu1 %v7333_v30  ;;  %3148 = vmatpush2.bf16.msra.mxu0 %v6884_v40  ;;  %8830 = vst [vmem:[#allocation28_spill] sm:$0xff] %v7347_v34 }
 0x4b2   : > { %3149 = vmatprep.subr.bf16.mxu0 %v6890_v42  ;;  %v7355_v42 = vld [vmem:[%s8346_s5 + $0x1c0] ss:$24 sps:$4 sm:$0xff]  }
 0x4b3   : > { %8831 = vst [vmem:[#allocation29_spill] sm:$0xff] %v7355_v42 }
 0x4b4   : > { %3028 = vmatpush2.bf16.msra.mxu1 %v7341_v38  ;;  %v7361_v38 = vld [vmem:[%s8346_s5 + $0x194] ss:$24 sps:$4 sm:$0xff]  }
 0x4b5   : > { %3029 = vmatprep.subr.bf16.mxu1 %v7347_v34  ;;  %3150 = vmatpush2.bf16.msra.mxu0 %v6898_v44  ;;  %8832 = vst [vmem:[#allocation30_spill] sm:$0xff] %v7361_v38  ;;  %v8838_v44 = vld [vmem:[#allocation67_spill] sm:$0xff] }
 0x4b6   : > { %3151 = vmatprep.subr.bf16.mxu0 %v6904_v46  ;;  %v7369_v46 = vld [vmem:[%s8346_s5 + $0x190] ss:$24 sps:$4 sm:$0xff]  }
 0x4b7   : > { %8833 = vst [vmem:[#allocation31_spill] sm:$0xff] %v7369_v46 }
 0x4b8   : > { %3030 = vmatpush2.bf16.msra.mxu1 %v7355_v42  ;;  %v8837_v42 = vld [vmem:[#allocation66_spill] sm:$0xff] }
 0x4b9   : > { %3031 = vmatprep.subr.bf16.mxu1 %v7361_v38  ;;  %3152 = vmatpush2.bf16.msra.mxu0 %v6912_v52  ;;  %v8834_v52 = vld [vmem:[#allocation63_spill] sm:$0xff]  ;;  %v8836_v38 = vld [vmem:[#allocation65_spill] sm:$0xff] }
 0x4ba   : > { %3153 = vmatprep.subr.bf16.mxu0 %v6918_v54  ;;  %v8835_v54 = vld [vmem:[#allocation64_spill] sm:$0xff] }
 0x4bc   : > { %3032 = vmatpush2.bf16.msra.mxu1 %v7369_v46  ;;  %v8839_v46 = vld [vmem:[#allocation68_spill] sm:$0xff] }
 0x4bd   : > { %3164 = vmatprep.subr.bf16.mxu1 %v6925_v37  ;;  %3154 = vmatpush2.bf16.msra.mxu0 %v6931_v58  ;;  %v8840_v37 = vld [vmem:[#allocation69_spill] sm:$0xff]  ;;  %v8841_v58 = vld [vmem:[#allocation70_spill] sm:$0xff] }
 0x4be   : > { %3205 = vmatprep.subr.bf16.mxu0 %v6937_v51  ;;  %v8842_v51 = vld [vmem:[#allocation71_spill] sm:$0xff] }
 0x4bf   : > { %3034 = vmatmul.mubr.bf16.vlgmr.msra.gmra.mxu1 %v7152_v18  ;;  %v8843_v18 = vld [vmem:[#allocation33_spill] sm:$0xff] }
 0x4c0   : > { %3165 = vmatpush1.bf16.msra.mxu1 %v6944_v6  ;;  %v8844_v6 = vld [vmem:[#allocation72_spill] sm:$0xff] }
 0x4c1   : > { %3166 = vmatprep.subr.bf16.mxu1 %v8834_v52  ;;  %v8845_v52 = vld [vmem:[#allocation73_spill] sm:$0xff] }
 0x4c4   : > { %3167 = vmatpush1.bf16.msra.mxu1 %v8835_v54  ;;  %v8846_v54 = vld [vmem:[#allocation35_spill] sm:$0xff] }
 0x4c5   : > { %3168 = vmatprep.subr.bf16.mxu1 %v8836_v38  ;;  %v8847_v38 = vld [vmem:[#allocation37_spill] sm:$0xff] }
 0x4c8   : > { %3169 = vmatpush1.bf16.msra.mxu1 %v8837_v42  ;;  %v8848_v42 = vld [vmem:[#allocation74_spill] sm:$0xff] }
 0x4c9   : > { %3170 = vmatprep.subr.bf16.mxu1 %v8838_v44  ;;  %v8849_v44 = vld [vmem:[#allocation75_spill] sm:$0xff] }
 0x4cc   : > { %3171 = vmatpush1.bf16.msra.mxu1 %v8839_v46  ;;  %v8850_v46 = vld [vmem:[#allocation39_spill] sm:$0xff] }
 0x4cd   : > { %3172 = vmatprep.subr.bf16.mxu1 %v8840_v37  ;;  %v8851_v37 = vld [vmem:[#allocation41_spill] sm:$0xff] }
 0x4d0   : > { %3173 = vmatpush1.bf16.msra.mxu1 %v8841_v58  ;;  %v8852_v58 = vld [vmem:[#allocation76_spill] sm:$0xff] }
 0x4d1   : > { %3174 = vmatprep.subr.bf16.mxu1 %v8842_v51  ;;  %v8853_v51 = vld [vmem:[#allocation7_spill] sm:$0xff] }
 0x4d4   : > { %3175 = vmatpush1.bf16.msra.mxu1 %v8843_v18  ;;  %v8854_v18 = vld [vmem:[#allocation43_spill] sm:$0xff] }
 0x4d5   : > { %3176 = vmatprep.subr.bf16.mxu1 %v8844_v6  ;;  %v8855_v6 = vld [vmem:[#allocation45_spill] sm:$0xff] }
 0x4d8   : > { %3177 = vmatpush1.bf16.msra.mxu1 %v8845_v52  ;;  %v8856_v52 = vld [vmem:[#allocation10_spill] sm:$0xff] }
 0x4d9   : > { %3178 = vmatprep.subr.bf16.mxu1 %v8846_v54  ;;  %v8857_v54 = vld [vmem:[#allocation12_spill] sm:$0xff] }
 0x4dc   : > { %3179 = vmatpush1.bf16.msra.mxu1 %v8847_v38  ;;  %v8858_v38 = vld [vmem:[#allocation14_spill] sm:$0xff] }
 0x4dd   : > { %3180 = vmatprep.subr.bf16.mxu1 %v8848_v42  ;;  %v8859_v42 = vld [vmem:[#allocation15_spill] sm:$0xff] }
 0x4e0   : > { %3181 = vmatpush2.bf16.msra.mxu1 %v8849_v44  ;;  %v8860_v44 = vld [vmem:[#allocation16_spill] sm:$0xff] }
 0x4e1   : > { %3182 = vmatprep.subr.bf16.mxu1 %v8850_v46  ;;  %v8861_v46 = vld [vmem:[#allocation17_spill] sm:$0xff] }
 0x4e4   : > { %3183 = vmatpush2.bf16.msra.mxu1 %v8851_v37  ;;  %v8862_v37 = vld [vmem:[#allocation18_spill] sm:$0xff] }
 0x4e5   : > { %3184 = vmatprep.subr.bf16.mxu1 %v8852_v58  ;;  %v8863_v58 = vld [vmem:[#allocation19_spill] sm:$0xff] }
 0x4e8   : > { %3185 = vmatpush2.bf16.msra.mxu1 %v8853_v51  ;;  %v8864_v51 = vld [vmem:[#allocation52_spill] sm:$0xff] }
 0x4e9   : > { %3186 = vmatprep.subr.bf16.mxu1 %v8854_v18 }
 0x4ec   : > { %3187 = vmatpush2.bf16.msra.mxu1 %v8855_v6 }
 0x4ed   : > { %3188 = vmatprep.subr.bf16.mxu1 %v8856_v52 }
 0x4f0   : > { %3189 = vmatpush2.bf16.msra.mxu1 %v8857_v54 }
 0x4f1   : > { %3190 = vmatprep.subr.bf16.mxu1 %v8858_v38 }
 0x4f4   : > { %3191 = vmatpush2.bf16.msra.mxu1 %v8859_v42 }
 0x4f5   : > { %3192 = vmatprep.subr.bf16.mxu1 %v8860_v44 }
 0x4f8   : > { %3193 = vmatpush2.bf16.msra.mxu1 %v8861_v46 }
 0x4f9   : > { %3194 = vmatprep.subr.bf16.mxu1 %v8862_v37 }
 0x4fc   : > { %3195 = vmatpush2.bf16.msra.mxu1 %v8863_v58 }
 0x4fd   : > { %3303 = vmatprep.subr.bf16.mxu1 %v8864_v51 }
 0x53f   : > { %v2953_v18 = vpop.f32.mrf.mxu1  ;;  %v2994_v6 = vpop.f32.mrf.mxu0 }
 0x540   : > { %v2954_v42 = vadd.f32 %v2953_v18, %v6513_v13  ;;  %v2995_v51 = vadd.f32 %v2994_v6, %v6535_v31  ;;  %v8865_v6 = vld [vmem:[#allocation49_spill] sm:$0xff] }
 0x541   : > { %v2955_v34 = vpop.f32.mrf.mxu1  ;;  %v2996_v52 = vpop.f32.mrf.mxu0 }
 0x542   : > { %v2956_v44 = vadd.f32 %v2955_v34, %v6519_v45  ;;  %v3044_v36 = vrot.slane %v2954_v42, 2 }
 0x543   : > { %v2957_v40 = vpop.f32.mrf.mxu1  ;;  %v2998_v54 = vpop.f32.mrf.mxu0 }
 0x544   : > { %v3045_v46 = vrot.slane %v2956_v44, 2  ;;  %v3048_v37 = vadd.f32 %v3044_v36, %v6525_v47  ;;  %v2997_v40 = vadd.f32 %v2996_v52, %v6541_v25  ;;  %v3064_v54 = vrot.slane %v2995_v51, 2 }
 0x545   : > { %v2958_v30 = vpop.f32.mrf.mxu1  ;;  %v2999_v38 = vpop.f32.mrf.mxu0 }
 0x546   : > { %v3049_v58 = vadd.f32 %v3045_v46, %v6529_v43  ;;  %v4269_v26 = vmul.f32 -1.442695, %v3048_v37  ;;  %v3065_v30 = vrot.slane %v2997_v40, 2  ;;  %v3068_v38 = vadd.f32 %v3064_v54, %v6547_v29 }
 0x548   : > { %v4270_v32 = vmul.f32 -1.442695, %v3049_v58  ;;  %4800 = vpow2.f32 %v4269_v26  ;;  %v3069_v34 = vadd.f32 %v3065_v30, %v6551_v7  ;;  %v4271_v42 = vmul.f32 -1.442695, %v3068_v38 }
 0x54a   : > { %4802 = vpow2.f32 %v4270_v32  ;;  %v4272_v44 = vmul.f32 -1.442695, %v3069_v34 }
 0x54b   : > { %4804 = vpow2.f32 %v4271_v42 }
 0x54c   : > { %4806 = vpow2.f32 %v4272_v44  ;;  %v8866_v44 = vld [vmem:[#allocation6_spill] sm:$0xff] }
 0x555   : > { %v4801_v18 = vpop.eup %4800 }
 0x556   : > { %v3056_v43 = vadd.f32 1.0, %v4801_v18 }
 0x557   : > { %v4803_v47 = vpop.eup %4802 }
 0x558   : > { %v3057_v36 = vadd.f32 1.0, %v4803_v47  ;;  %4808 = vrcp.f32 %v3056_v43  ;;  %v4805_v26 = vpop.eup %4804  ;;  %v8867_v43 = vld [vmem:[#allocation79_spill] sm:$0xff] }
 0x559   : > { %v4807_v46 = vpop.eup %4806  ;;  %v3076_v37 = vadd.f32 1.0, %v4805_v26 }
 0x55a   : > { %4810 = vrcp.f32 %v3057_v36  ;;  %v3077_v29 = vadd.f32 1.0, %v4807_v46 }
 0x55b   : > { %4812 = vrcp.f32 %v3076_v37  ;;  %v3111_v37 = vstv %s3110_s17  ;;  %s3902_s17 = scalar_select %p3901_p12, 1, 0 }
 0x55c   : > { %4814 = vrcp.f32 %v3077_v29  ;;  %vm3112_vm2 = vcmp.eq.s32.totalorder %v3111_v37, 1  ;;  %v8889_v37 = vld [vmem:[#allocation30_spill] sm:$0xff] }
 0x565   : > { %v4809_v40 = vpop.eup %4808 }
 0x567   : > { %v4811_v34 = vpop.eup %4810 }
 0x568   : > { %v4813_v26 = vpop.eup %4812 }
 0x569   : > { %v4815_v46 = vpop.eup %4814 }
 0x56a   : > { %v3095_v29 = vsub.f32 1.0, %v4815_v46 }
 0x57f   : > { %v3035_v52 = vpop.f32.mrf.mxu1 }
 0x580   : > { %v3036_v32 = vadd.f32 %v3035_v52, %v6557_v35  ;;  %v3100_v52 = vrot.slane %v7144_v3, 6 }
 0x581   : > { %v3037_v58 = vpop.f32.mrf.mxu1 }
 0x582   : > { %v3084_v7 = vrot.slane %v3036_v32, 2  ;;  %v3038_v51 = vadd.f32 %v3037_v58, %v8865_v6  ;;  %v3094_v32 = vsub.f32 1.0, %v4813_v26 }
 0x583   : > { %v3039_v54 = vpop.f32.mrf.mxu1 }
 0x584   : > { %v3088_v30 = vmul.f32 %v4809_v40, %v3084_v7  ;;  %v3085_v38 = vrot.slane %v3038_v51, 2  ;;  %v3101_v7 = vrot.slane %v7146_v59, 6  ;;  %v3104_v40 = vmul.f32 %v4813_v26, %v3100_v52  ;;  %v8886_v26 = vld [vmem:[#allocation54_spill] sm:$0xff] }
 0x585   : > { %v3040_v42 = vpop.f32.mrf.mxu1 }
 0x586   : > { %v3090_v18 = vadd.f32 %v3088_v30, %v8866_v44  ;;  %v3089_v47 = vmul.f32 %v4811_v34, %v3085_v38  ;;  %v3105_v38 = vmul.f32 %v4815_v46, %v3101_v7  ;;  %v8887_v46 = vld [vmem:[#allocation13_spill] sm:$0xff] }
 0x588   : > { %4816 = vtanh.f32 %v3090_v18  ;;  %v3091_v36 = vadd.f32 %v3089_v47, %v8867_v43 }
 0x58a   : > { %4818 = vtanh.f32 %v3091_v36  ;;  %v8885_v36 = vld [vmem:[#allocation28_spill] sm:$0xff] }
 0x595   : > { %v4817_v58 = vpop.eup %4816 }
 0x596   : > { %v3096_v51 = vmul.f32 %v4817_v58, %v3094_v32  ;;  %v8890_v32 = vld [vmem:[#allocation57_spill] sm:$0xff]  ;;  %v8891_v58 = vld [vmem:[#allocation58_spill] sm:$0xff] }
 0x597   : > { %v4819_v54 = vpop.eup %4818 }
 0x598   : > { %v3097_v30 = vmul.f32 %v4819_v54, %v3095_v29  ;;  %v3106_v34 = vadd.f32 %v3104_v40, %v3096_v51  ;;  %v8893_v29 = vld [vmem:[#allocation59_spill] sm:$0xff]  ;;  %v8894_v51 = vld [vmem:[#allocation60_spill] sm:$0xff]  ;;  %v8895_v40 = vld [vmem:[#allocation61_spill] sm:$0xff] }
 0x599   : > { %v8896_v54 = vld [vmem:[#allocation62_spill] sm:$0xff] }
 0x59a   : > { %v3107_v42 = vadd.f32 %v3105_v38, %v3097_v30  ;;  %v7424_v44 = vsel %vm3112_vm2, %v3106_v34, %v3100_v52  ;;  %v8888_v52 = vld [vmem:[#allocation29_spill] sm:$0xff]  ;;  %v8897_v30 = vld [vmem:[#allocation63_spill] sm:$0xff]  ;;  %v8898_v38 = vld [vmem:[#allocation64_spill] sm:$0xff] }
 0x59b   : > { %v3115_v3 = vpack.c.bf16 %v7424_v44, %v7424_v44  ;;  %v8899_v34 = vld [vmem:[#allocation65_spill] sm:$0xff] }
 0x59c   : > { %v7426_v18 = vsel %vm3112_vm2, %v3107_v42, %v3101_v7  ;;  %v8892_v7 = vld [vmem:[#allocation31_spill] sm:$0xff]  ;;  %v8900_v42 = vld [vmem:[#allocation66_spill] sm:$0xff] }
 0x59d   : > { %v3116_v47 = vpack.c.bf16 %v7426_v18, %v7426_v18  ;;  %v7432_v43 = vrot.slane %v3115_v3, 3  ;;  %v8901_v3 = vld [vmem:[#allocation67_spill] sm:$0xff] }
 0x59f   : > { %v3120_v59 = vrot.slane %v3116_v47, 3  ;;  %v8902_v47 = vld [vmem:[#allocation68_spill] sm:$0xff] }
 0x5a1   : > { %3155 = vmatprep.mubr.bf16.mxu0 %v3120_v59  ;;  %3196 = vmatprep.mubr.bf16.mxu1 %v3120_v59 }
 0x5a2   : > { %3156 = vmatmul.mubr.bf16.vlgmr.msra.gmra.mxu0 %v7432_v43  ;;  %3197 = vmatmul.mubr.bf16.vlgmr.msra.gmra.mxu1 %v7432_v43 }
 0x5a3   : > { %3206 = vmatpush1.bf16.msra.mxu0 %v7159_v19  ;;  %3237 = vmatprep.mubr.bf16.mxu0 %v3120_v59  ;;  %v8903_v59 = vld [vmem:[#allocation69_spill] sm:$0xff] }
 0x5a4   : > { %3207 = vmatprep.subr.bf16.mxu0 %v7165_v41  ;;  %3304 = vmatpush1.bf16.msra.mxu1 %v6716_v21  ;;  %v8868_v21 = vld [vmem:[#allocation50_spill] sm:$0xff] }
 0x5a5   : > { %3305 = vmatprep.subr.bf16.mxu1 %v6722_v55  ;;  %v8869_v55 = vld [vmem:[#allocation20_spill] sm:$0xff] }
 0x5a7   : > { %3208 = vmatpush1.bf16.msra.mxu0 %v7173_v63 }
 0x5a8   : > { %3209 = vmatprep.subr.bf16.mxu0 %v7179_v14  ;;  %3306 = vmatpush1.bf16.msra.mxu1 %v6730_v10  ;;  %v8870_v10 = vld [vmem:[#allocation53_spill] sm:$0xff] }
 0x5a9   : > { %3307 = vmatprep.subr.bf16.mxu1 %v6736_v61  ;;  %v8871_v61 = vld [vmem:[#allocation21_spill] sm:$0xff] }
 0x5ab   : > { %3210 = vmatpush1.bf16.msra.mxu0 %v7187_v27 }
 0x5ac   : > { %3211 = vmatprep.subr.bf16.mxu0 %v7193_v48  ;;  %3308 = vmatpush1.bf16.msra.mxu1 %v6744_v39  ;;  %v8872_v39 = vld [vmem:[#allocation5_spill] sm:$0xff] }
 0x5ad   : > { %3309 = vmatprep.subr.bf16.mxu1 %v6750_v2  ;;  %v8873_v2 = vld [vmem:[#allocation22_spill] sm:$0xff] }
 0x5af   : > { %3212 = vmatpush1.bf16.msra.mxu0 %v7201_v16 }
 0x5b0   : > { %3213 = vmatprep.subr.bf16.mxu0 %v7207_v23  ;;  %3310 = vmatpush1.bf16.msra.mxu1 %v6758_v15  ;;  %v8874_v15 = vld [vmem:[#allocation8_spill] sm:$0xff] }
 0x5b1   : > { %3311 = vmatprep.subr.bf16.mxu1 %v6764_v17  ;;  %v8875_v17 = vld [vmem:[#allocation47_spill] sm:$0xff] }
 0x5b3   : > { %3214 = vmatpush1.bf16.msra.mxu0 %v7215_v8 }
 0x5b4   : > { %3215 = vmatprep.subr.bf16.mxu0 %v7221_v56  ;;  %3312 = vmatpush1.bf16.msra.mxu1 %v6772_v20  ;;  %v8876_v20 = vld [vmem:[#allocation23_spill] sm:$0xff] }
 0x5b5   : > { %3313 = vmatprep.subr.bf16.mxu1 %v6778_v57  ;;  %v8877_v57 = vld [vmem:[#allocation24_spill] sm:$0xff] }
 0x5b7   : > { %3216 = vmatpush1.bf16.msra.mxu0 %v7229_v4 }
 0x5b8   : > { %3217 = vmatprep.subr.bf16.mxu0 %v7235_v60  ;;  %3314 = vmatpush1.bf16.msra.mxu1 %v6786_v12  ;;  %v8878_v12 = vld [vmem:[#allocation48_spill] sm:$0xff] }
 0x5b9   : > { %3315 = vmatprep.subr.bf16.mxu1 %v6792_v49  ;;  %v8879_v49 = vld [vmem:[#allocation9_spill] sm:$0xff] }
 0x5bb   : > { %3218 = vmatpush1.bf16.msra.mxu0 %v7243_v1 }
 0x5bc   : > { %3219 = vmatprep.subr.bf16.mxu0 %v7249_v9  ;;  %3316 = vmatpush1.bf16.msra.mxu1 %v6800_v53  ;;  %v8880_v53 = vld [vmem:[#allocation25_spill] sm:$0xff] }
 0x5bd   : > { %3317 = vmatprep.subr.bf16.mxu1 %v6806_v5  ;;  %v8881_v5 = vld [vmem:[#allocation26_spill] sm:$0xff] }
 0x5bf   : > { %3220 = vmatpush1.bf16.msra.mxu0 %v7257_v0 }
 0x5c0   : > { %3221 = vmatprep.subr.bf16.mxu0 %v7263_v11  ;;  %3318 = vmatpush1.bf16.msra.mxu1 %v6814_v50  ;;  %v8882_v50 = vld [vmem:[#allocation11_spill] sm:$0xff] }
 0x5c1   : > { %3319 = vmatprep.subr.bf16.mxu1 %v8868_v21  ;;  %v8904_v21 = vld [vmem:[#allocation70_spill] sm:$0xff] }
 0x5c3   : > { %3222 = vmatpush2.bf16.msra.mxu0 %v8869_v55 }
 0x5c4   : > { %3223 = vmatprep.subr.bf16.mxu0 %v7277_v62  ;;  %3320 = vmatpush2.bf16.msra.mxu1 %v6828_v24  ;;  %v8883_v24 = vld [vmem:[#allocation51_spill] sm:$0xff] }
 0x5c5   : > { %3321 = vmatprep.subr.bf16.mxu1 %v8870_v10  ;;  %v8905_v10 = vld [vmem:[#allocation71_spill] sm:$0xff] }
 0x5c7   : > { %3224 = vmatpush2.bf16.msra.mxu0 %v8871_v61 }
 0x5c8   : > { %3225 = vmatprep.subr.bf16.mxu0 %v7291_v33  ;;  %3322 = vmatpush2.bf16.msra.mxu1 %v6842_v28  ;;  %v8884_v28 = vld [vmem:[#allocation27_spill] sm:$0xff] }
 0x5c9   : > { %3323 = vmatprep.subr.bf16.mxu1 %v8872_v39  ;;  %v8907_v39 = vld [vmem:[#allocation72_spill] sm:$0xff] }
 0x5cb   : > { %3226 = vmatpush2.bf16.msra.mxu0 %v8873_v2 }
 0x5cc   : > { %3227 = vmatprep.subr.bf16.mxu0 %v7305_v22  ;;  %3324 = vmatpush2.bf16.msra.mxu1 %v8874_v15  ;;  %v8908_v15 = vld [vmem:[#allocation73_spill] sm:$0xff] }
 0x5cd   : > { %3325 = vmatprep.subr.bf16.mxu1 %v8875_v17  ;;  %v8909_v17 = vld [vmem:[#allocation35_spill] sm:$0xff] }
 0x5cf   : > { %3228 = vmatpush2.bf16.msra.mxu0 %v8876_v20 }
 0x5d0   : > { %3229 = vmatprep.subr.bf16.mxu0 %v8877_v57  ;;  %3326 = vmatpush2.bf16.msra.mxu1 %v8878_v12  ;;  %v8910_v12 = vld [vmem:[#allocation37_spill] sm:$0xff] }
 0x5d1   : > { %3327 = vmatprep.subr.bf16.mxu1 %v8879_v49  ;;  %v8911_v49 = vld [vmem:[#allocation74_spill] sm:$0xff] }
 0x5d3   : > { %3230 = vmatpush2.bf16.msra.mxu0 %v8880_v53 }
 0x5d4   : > { %3231 = vmatprep.subr.bf16.mxu0 %v8881_v5  ;;  %3328 = vmatpush2.bf16.msra.mxu1 %v8882_v50  ;;  %v8912_v50 = vld [vmem:[#allocation75_spill] sm:$0xff] }
 0x5d5   : > { %3329 = vmatprep.subr.bf16.mxu1 %v8883_v24  ;;  %v8913_v24 = vld [vmem:[#allocation39_spill] sm:$0xff] }
 0x5d7   : > { %3232 = vmatpush2.bf16.msra.mxu0 %v8884_v28 }
 0x5d8   : > { %3233 = vmatprep.subr.bf16.mxu0 %v8885_v36  ;;  %3330 = vmatpush2.bf16.msra.mxu1 %v8886_v26  ;;  %v8914_v26 = vld [vmem:[#allocation41_spill] sm:$0xff] }
 0x5d9   : > { %3331 = vmatprep.subr.bf16.mxu1 %v8887_v46  ;;  %v8915_v46 = vld [vmem:[#allocation76_spill] sm:$0xff] }
 0x5db   : > { %3234 = vmatpush2.bf16.msra.mxu0 %v8888_v52 }
 0x5dc   : > { %3235 = vmatprep.subr.bf16.mxu0 %v8889_v37  ;;  %3332 = vmatpush2.bf16.msra.mxu1 %v8890_v32  ;;  %v8916_v32 = vld [vmem:[#allocation7_spill] sm:$0xff] }
 0x5dd   : > { %3333 = vmatprep.subr.bf16.mxu1 %v8891_v58  ;;  %v8917_v58 = vld [vmem:[#allocation43_spill] sm:$0xff] }
 0x5df   : > { %3236 = vmatpush2.bf16.msra.mxu0 %v8892_v7 }
 0x5e0   : > { %3344 = vmatprep.subr.bf16.mxu0 %v8893_v29  ;;  %3334 = vmatpush2.bf16.msra.mxu1 %v8894_v51  ;;  %v8918_v29 = vld [vmem:[#allocation45_spill] sm:$0xff]  ;;  %v8919_v51 = vld [vmem:[#allocation10_spill] sm:$0xff] }
 0x5e1   : > { %3385 = vmatprep.subr.bf16.mxu1 %v8895_v40  ;;  %v8920_v40 = vld [vmem:[#allocation12_spill] sm:$0xff] }
 0x5e2   : > { %3238 = vmatmul.mubr.bf16.vlgmr.msra.gmra.mxu0 %v7432_v43  ;;  %v8906_v43 = vld [vmem:[#allocation33_spill] sm:$0xff] }
 0x5e3   : > { %3345 = vmatpush1.bf16.msra.mxu0 %v8896_v54  ;;  %v8921_v54 = vld [vmem:[#allocation14_spill] sm:$0xff] }
 0x5e4   : > { %3346 = vmatprep.subr.bf16.mxu0 %v8897_v30  ;;  %v8922_v30 = vld [vmem:[#allocation15_spill] sm:$0xff] }
 0x5e7   : > { %3347 = vmatpush1.bf16.msra.mxu0 %v8898_v38  ;;  %v8923_v38 = vld [vmem:[#allocation16_spill] sm:$0xff] }
 0x5e8   : > { %3348 = vmatprep.subr.bf16.mxu0 %v8899_v34  ;;  %v8924_v34 = vld [vmem:[#allocation17_spill] sm:$0xff] }
 0x5eb   : > { %3349 = vmatpush1.bf16.msra.mxu0 %v8900_v42  ;;  %v8925_v42 = vld [vmem:[#allocation18_spill] sm:$0xff] }
 0x5ec   : > { %3350 = vmatprep.subr.bf16.mxu0 %v8901_v3  ;;  %v8926_v3 = vld [vmem:[#allocation19_spill] sm:$0xff] }
 0x5ef   : > { %3351 = vmatpush1.bf16.msra.mxu0 %v8902_v47  ;;  %v7535_v47 = vld [vmem:[%s8346_s5 + $0x154] ss:$24 sps:$4 sm:$0xff]  }
 0x5f0   : > { %3352 = vmatprep.subr.bf16.mxu0 %v8903_v59 }
 0x5f3   : > { %3353 = vmatpush1.bf16.msra.mxu0 %v8904_v21 }
 0x5f4   : > { %3354 = vmatprep.subr.bf16.mxu0 %v8905_v10 }
 0x5f7   : > { %3355 = vmatpush1.bf16.msra.mxu0 %v8906_v43 }
 0x5f8   : > { %3356 = vmatprep.subr.bf16.mxu0 %v8907_v39 }
 0x5fb   : > { %3357 = vmatpush1.bf16.msra.mxu0 %v8908_v15 }
 0x5fc   : > { %3358 = vmatprep.subr.bf16.mxu0 %v8909_v17 }
 0x5ff   : > { %3359 = vmatpush1.bf16.msra.mxu0 %v8910_v12 }
 0x600   : > { %3360 = vmatprep.subr.bf16.mxu0 %v8911_v49 }
 0x603   : > { %3361 = vmatpush2.bf16.msra.mxu0 %v8912_v50 }
 0x604   : > { %3362 = vmatprep.subr.bf16.mxu0 %v8913_v24  ;;  %v8927_v24 = vld [vmem:[#allocation55_spill] sm:$0xff] }
 0x607   : > { %3363 = vmatpush2.bf16.msra.mxu0 %v8914_v26 }
 0x608   : > { %3364 = vmatprep.subr.bf16.mxu0 %v8915_v46  ;;  %v8928_v46 = vld [vmem:[#allocation56_spill] sm:$0xff] }
 0x60b   : > { %3365 = vmatpush2.bf16.msra.mxu0 %v8916_v32 }
 0x60c   : > { %3366 = vmatprep.subr.bf16.mxu0 %v8917_v58 }
 0x60f   : > { %3367 = vmatpush2.bf16.msra.mxu0 %v8918_v29 }
 0x610   : > { %3368 = vmatprep.subr.bf16.mxu0 %v8919_v51 }
 0x613   : > { %3369 = vmatpush2.bf16.msra.mxu0 %v8920_v40 }
 0x614   : > { %3370 = vmatprep.subr.bf16.mxu0 %v8921_v54  ;;  %v8929_v54 = vld [vmem:[#allocation77_spill] sm:$0xff] }
 0x617   : > { %3371 = vmatpush2.bf16.msra.mxu0 %v8922_v30 }
 0x618   : > { %3372 = vmatprep.subr.bf16.mxu0 %v8923_v38  ;;  %v8930_v38 = vld [vmem:[#allocation78_spill] sm:$0xff] }
 0x61b   : > { %3373 = vmatpush2.bf16.msra.mxu0 %v8924_v34 }
 0x61c   : > { %3374 = vmatprep.subr.bf16.mxu0 %v8925_v42 }
 0x61f   : > { %3375 = vmatpush2.bf16.msra.mxu0 %v8926_v3 }
 0x620   : > { %3507 = vmatprep.subr.bf16.mxu0 %v7535_v47 }
 0x662   : > { %v3157_v59 = vpop.f32.mrf.mxu0  ;;  %v3198_v21 = vpop.f32.mrf.mxu1 }
 0x663   : > { %v3158_v49 = vadd.f32 %v3157_v59, %v6513_v13  ;;  %v3199_v51 = vadd.f32 %v3198_v21, %v6535_v31 }
 0x664   : > { %v3159_v10 = vpop.f32.mrf.mxu0  ;;  %v3200_v43 = vpop.f32.mrf.mxu1 }
 0x665   : > { %v3160_v50 = vadd.f32 %v3159_v10, %v6519_v45  ;;  %v3246_v26 = vadd.f32 %v3158_v49, %v8927_v24  ;;  %v3201_v40 = vadd.f32 %v3200_v43, %v6541_v25  ;;  %v3260_v30 = vadd.f32 %v3199_v51, %v8929_v54 }
 0x666   : > { %v3161_v39 = vpop.f32.mrf.mxu0  ;;  %v3202_v15 = vpop.f32.mrf.mxu1 }
 0x667   : > { %v3247_v32 = vadd.f32 %v3160_v50, %v8928_v46  ;;  %v4273_v58 = vmul.f32 -1.442695, %v3246_v26  ;;  %v3261_v34 = vadd.f32 %v3201_v40, %v8930_v38  ;;  %v4275_v42 = vmul.f32 -1.442695, %v3260_v30  ;;  %v8931_v30 = vld [vmem:[#allocation80_spill] sm:$0xff] }
 0x668   : > { %v3162_v17 = vpop.f32.mrf.mxu0  ;;  %v3203_v12 = vpop.f32.mrf.mxu1 }
 0x669   : > { %v4274_v29 = vmul.f32 -1.442695, %v3247_v32  ;;  %4820 = vpow2.f32 %v4273_v58  ;;  %v4276_v3 = vmul.f32 -1.442695, %v3261_v34 }
 0x66b   : > { %4822 = vpow2.f32 %v4274_v29 }
 0x66c   : > { %4824 = vpow2.f32 %v4275_v42 }
 0x66d   : > { %4826 = vpow2.f32 %v4276_v3 }
 0x676   : > { %v4821_v59 = vpop.eup %4820 }
 0x677   : > { %v3254_v39 = vadd.f32 1.0, %v4821_v59  ;;  %v8932_v59 = vld [vmem:[#allocation81_spill] sm:$0xff] }
 0x678   : > { %v4823_v10 = vpop.eup %4822 }
 0x679   : > { %v3255_v15 = vadd.f32 1.0, %v4823_v10  ;;  %4828 = vrcp.f32 %v3254_v39  ;;  %v4825_v17 = vpop.eup %4824 }
 0x67a   : > { %v4827_v12 = vpop.eup %4826  ;;  %v3268_v21 = vadd.f32 1.0, %v4825_v17  ;;  %v3286_v17 = vrot.slane %v7424_v44, 6 }
 0x67b   : > { %4830 = vrcp.f32 %v3255_v15  ;;  %v3269_v50 = vadd.f32 1.0, %v4827_v12 }
 0x67c   : > { %4832 = vrcp.f32 %v3268_v21 }
 0x67d   : > { %4834 = vrcp.f32 %v3269_v50  ;;  %v3287_v50 = vrot.slane %v7426_v18, 6  ;;  %v7571_v18 = vld [vmem:[%s8346_s5 + $0x150] ss:$24 sps:$4 sm:$0xff]  }
 0x686   : > { %v4829_v26 = vpop.eup %4828 }
 0x688   : > { %v4831_v51 = vpop.eup %4830 }
 0x689   : > { %v4833_v39 = vpop.eup %4832 }
 0x68a   : > { %v4835_v15 = vpop.eup %4834  ;;  %v3280_v12 = vsub.f32 1.0, %v4833_v39 }
 0x6a2   : > { %v3239_v49 = vpop.f32.mrf.mxu0 }
 0x6a3   : > { %v3240_v43 = vadd.f32 %v3239_v49, %v6557_v35  ;;  %v3297_v49 = vstv %s3296_s21 }
 0x6a4   : > { %v3241_v32 = vpop.f32.mrf.mxu0  ;;  %vm3298_vm3 = vcmp.eq.s32.totalorder %v3297_v49, 1  ;;  %v7823_v49 = vld [vmem:[%s8346_s5 + $0xf8] ss:$24 sps:$4 sm:$0xff]  }
 0x6a5   : > { %v3274_v58 = vmul.f32 %v4829_v26, %v3240_v43  ;;  %v3242_v29 = vadd.f32 %v3241_v32, %v8865_v6  ;;  %v3281_v43 = vsub.f32 1.0, %v4835_v15  ;;  %v3290_v32 = vmul.f32 %v4833_v39, %v3286_v17  ;;  %v7577_v39 = vld [vmem:[%s8346_s5 + $0x124] ss:$24 sps:$4 sm:$0xff]   ;;  %8937 = vst [vmem:[#allocation40_spill] sm:$0xff] %v7823_v49 }
 0x6a6   : > { %v3243_v40 = vpop.f32.mrf.mxu0 }
 0x6a7   : > { %v3276_v34 = vadd.f32 %v3274_v58, %v8931_v30  ;;  %v3275_v42 = vmul.f32 %v4831_v51, %v3242_v29  ;;  %v3291_v51 = vmul.f32 %v4835_v15, %v3287_v50  ;;  %v7792_v15 = vld [vmem:[%s8346_s5 + $0x164] ss:$24 sps:$4 sm:$0xff]  }
 0x6a8   : > { %v3244_v3 = vpop.f32.mrf.mxu0 }
 0x6a9   : > { %4836 = vtanh.f32 %v3276_v34  ;;  %v3277_v10 = vadd.f32 %v3275_v42, %v8932_v59 }
 0x6ab   : > { %4838 = vtanh.f32 %v3277_v10 }
 0x6b6   : > { %v4837_v21 = vpop.eup %4836 }
 0x6b7   : > { %v3282_v26 = vmul.f32 %v4837_v21, %v3280_v12  ;;  %v7811_v12 = vld [vmem:[%s8346_s5 + $0x128] ss:$24 sps:$4 sm:$0xff]   ;;  %v7817_v21 = vld [vmem:[%s8346_s5 + $0xfc] ss:$24 sps:$4 sm:$0xff]  }
 0x6b8   : > { %v4839_v58 = vpop.eup %4838  ;;  %8935 = vst [vmem:[#allocation36_spill] sm:$0xff] %v7811_v12  ;;  %8936 = vst [vmem:[#allocation38_spill] sm:$0xff] %v7817_v21 }
 0x6b9   : > { %v3283_v29 = vmul.f32 %v4839_v58, %v3281_v43  ;;  %v3292_v40 = vadd.f32 %v3290_v32, %v3282_v26  ;;  %v7835_v43 = vld [vmem:[%s8346_s5 + $0xc8] ss:$24 sps:$4 sm:$0xff]   ;;  %v7841_v26 = vld [vmem:[%s8346_s5 + $0x9c] ss:$24 sps:$4 sm:$0xff]   ;;  %v7847_v32 = vld [vmem:[%s8346_s5 + $0x98] ss:$24 sps:$4 sm:$0xff]  }
 0x6ba   : > { %8939 = vst [vmem:[#allocation44_spill] sm:$0xff] %v7835_v43  ;;  %8940 = vst [vmem:[#allocation52_spill] sm:$0xff] %v7841_v26  ;;  %v7853_v58 = vld [vmem:[%s8346_s5 + $0x6c] ss:$24 sps:$4 sm:$0xff]  }
 0x6bb   : > { %v3293_v34 = vadd.f32 %v3291_v51, %v3283_v29  ;;  %v7554_v42 = vsel %vm3298_vm3, %v3292_v40, %v3286_v17  ;;  %v7805_v17 = vld [vmem:[%s8346_s5 + $0x12c] ss:$24 sps:$4 sm:$0xff]   ;;  %8941 = vst [vmem:[#allocation49_spill] sm:$0xff] %v7847_v32  ;;  %8942 = vst [vmem:[#allocation6_spill] sm:$0xff] %v7853_v58  ;;  %v7859_v29 = vld [vmem:[%s8346_s5 + $0x68] ss:$24 sps:$4 sm:$0xff]  }
 0x6bc   : > { %v7562_v10 = vpack.c.bf16 %v7554_v42, %v7554_v42  ;;  %8934 = vst [vmem:[#allocation34_spill] sm:$0xff] %v7805_v17  ;;  %8943 = vst [vmem:[#allocation79_spill] sm:$0xff] %v7859_v29  ;;  %v7865_v51 = vld [vmem:[%s8346_s5 + $0x3c] ss:$24 sps:$4 sm:$0xff]   ;;  %v7871_v40 = vld [vmem:[%s8346_s5 + $0x38] ss:$24 sps:$4 sm:$0xff]  }
 0x6bd   : > { %v7556_v3 = vsel %vm3298_vm3, %v3293_v34, %v3287_v50  ;;  %v7829_v50 = vld [vmem:[%s8346_s5 + $0xcc] ss:$24 sps:$4 sm:$0xff]   ;;  %8944 = vst [vmem:[#allocation50_spill] sm:$0xff] %v7865_v51  ;;  %8945 = vst [vmem:[#allocation20_spill] sm:$0xff] %v7871_v40 }
 0x6be   : > { %v3302_v44 = vpack.c.bf16 %v7556_v3, %v7556_v3  ;;  %8938 = vst [vmem:[#allocation42_spill] sm:$0xff] %v7829_v50  ;;  %v7877_v34 = vld [vmem:[%s8346_s5 + $0xc] ss:$24 sps:$4 sm:$0xff]  }
 0x6bf   : > { %8946 = vst [vmem:[#allocation53_spill] sm:$0xff] %v7877_v34 }
 0x6c0   : > { %3335 = vmatprep.mubr.bf16.mxu1 %v3302_v44  ;;  %3376 = vmatprep.mubr.bf16.mxu0 %v3302_v44 }
 0x6c1   : > { %3336 = vmatmul.mubr.bf16.vlgmr.msra.gmra.mxu1 %v7562_v10  ;;  %3377 = vmatmul.mubr.bf16.vlgmr.msra.gmra.mxu0 %v7562_v10 }
 0x6c2   : > { %3386 = vmatpush1.bf16.msra.mxu1 %v7159_v19  ;;  %3417 = vmatprep.mubr.bf16.mxu1 %v3302_v44  ;;  %v7585_v19 = vld [vmem:[%s8346_s5 + $0x120] ss:$24 sps:$4 sm:$0xff]  }
 0x6c3   : > { %3387 = vmatprep.subr.bf16.mxu1 %v7165_v41  ;;  %3508 = vmatpush1.bf16.msra.mxu0 %v7571_v18  ;;  %v7591_v41 = vld [vmem:[%s8346_s5 + $0xf4] ss:$24 sps:$4 sm:$0xff]   ;;  %v7883_v44 = vld [vmem:[%s8346_s5 + $0x8] ss:$24 sps:$4 sm:$0xff]  }
 0x6c4   : > { %3509 = vmatprep.subr.bf16.mxu0 %v7577_v39  ;;  %8947 = vst [vmem:[#allocation21_spill] sm:$0xff] %v7883_v44 }
 0x6c6   : > { %3388 = vmatpush1.bf16.msra.mxu1 %v7173_v63  ;;  %v7599_v63 = vld [vmem:[%s8346_s5 + $0xf0] ss:$24 sps:$4 sm:$0xff]  }
 0x6c7   : > { %3389 = vmatprep.subr.bf16.mxu1 %v7179_v14  ;;  %3510 = vmatpush1.bf16.msra.mxu0 %v7585_v19  ;;  %v7605_v14 = vld [vmem:[%s8346_s5 + $0xc4] ss:$24 sps:$4 sm:$0xff]  }
 0x6c8   : > { %3511 = vmatprep.subr.bf16.mxu0 %v7591_v41 }
 0x6ca   : > { %3390 = vmatpush1.bf16.msra.mxu1 %v7187_v27  ;;  %v7613_v27 = vld [vmem:[%s8346_s5 + $0xc0] ss:$24 sps:$4 sm:$0xff]  }
 0x6cb   : > { %3391 = vmatprep.subr.bf16.mxu1 %v7193_v48  ;;  %3512 = vmatpush1.bf16.msra.mxu0 %v7599_v63  ;;  %v7619_v48 = vld [vmem:[%s8346_s5 + $0x94] ss:$24 sps:$4 sm:$0xff]  }
 0x6cc   : > { %3513 = vmatprep.subr.bf16.mxu0 %v7605_v14 }
 0x6ce   : > { %3392 = vmatpush1.bf16.msra.mxu1 %v7201_v16  ;;  %v7627_v16 = vld [vmem:[%s8346_s5 + $0x90] ss:$24 sps:$4 sm:$0xff]  }
 0x6cf   : > { %3393 = vmatprep.subr.bf16.mxu1 %v7207_v23  ;;  %3514 = vmatpush1.bf16.msra.mxu0 %v7613_v27  ;;  %v7633_v23 = vld [vmem:[%s8346_s5 + $0x64] ss:$24 sps:$4 sm:$0xff]  }
 0x6d0   : > { %3515 = vmatprep.subr.bf16.mxu0 %v7619_v48 }
 0x6d2   : > { %3394 = vmatpush1.bf16.msra.mxu1 %v7215_v8  ;;  %v7641_v8 = vld [vmem:[%s8346_s5 + $0x60] ss:$24 sps:$4 sm:$0xff]  }
 0x6d3   : > { %3395 = vmatprep.subr.bf16.mxu1 %v7221_v56  ;;  %3516 = vmatpush1.bf16.msra.mxu0 %v7627_v16  ;;  %v7647_v56 = vld [vmem:[%s8346_s5 + $0x34] ss:$24 sps:$4 sm:$0xff]  }
 0x6d4   : > { %3517 = vmatprep.subr.bf16.mxu0 %v7633_v23 }
 0x6d6   : > { %3396 = vmatpush1.bf16.msra.mxu1 %v7229_v4  ;;  %v7655_v4 = vld [vmem:[%s8346_s5 + $0x30] ss:$24 sps:$4 sm:$0xff]  }
 0x6d7   : > { %3397 = vmatprep.subr.bf16.mxu1 %v7235_v60  ;;  %3518 = vmatpush1.bf16.msra.mxu0 %v7641_v8  ;;  %v7661_v60 = vld [vmem:[%s8346_s5 + $0x4] ss:$24 sps:$4 sm:$0xff]  }
 0x6d8   : > { %3519 = vmatprep.subr.bf16.mxu0 %v7647_v56 }
 0x6da   : > { %3398 = vmatpush1.bf16.msra.mxu1 %v7243_v1  ;;  %v7669_v1 = vld [vmem:[%s8346_s5] ss:$24 sps:$4 sm:$0xff]  }
 0x6db   : > { %3399 = vmatprep.subr.bf16.mxu1 %v7249_v9  ;;  %3520 = vmatpush1.bf16.msra.mxu0 %v7655_v4  ;;  %v7675_v9 = vld [vmem:[%s8346_s5 + $0x2d4] ss:$24 sps:$4 sm:$0xff]  }
 0x6dc   : > { %3521 = vmatprep.subr.bf16.mxu0 %v7661_v60 }
 0x6de   : > { %3400 = vmatpush1.bf16.msra.mxu1 %v7257_v0  ;;  %v7683_v0 = vld [vmem:[%s8346_s5 + $0x2d0] ss:$24 sps:$4 sm:$0xff]  }
 0x6df   : > { %3401 = vmatprep.subr.bf16.mxu1 %v7263_v11  ;;  %3522 = vmatpush1.bf16.msra.mxu0 %v7669_v1  ;;  %v7689_v11 = vld [vmem:[%s8346_s5 + $0x2a4] ss:$24 sps:$4 sm:$0xff]  }
 0x6e0   : > { %3523 = vmatprep.subr.bf16.mxu0 %v7675_v9 }
 0x6e2   : > { %3402 = vmatpush2.bf16.msra.mxu1 %v8869_v55  ;;  %v7703_v55 = vld [vmem:[%s8346_s5 + $0x274] ss:$24 sps:$4 sm:$0xff]  }
 0x6e3   : > { %3403 = vmatprep.subr.bf16.mxu1 %v7277_v62  ;;  %3524 = vmatpush2.bf16.msra.mxu0 %v7683_v0  ;;  %v7697_v62 = vld [vmem:[%s8346_s5 + $0x2a0] ss:$24 sps:$4 sm:$0xff]  }
 0x6e4   : > { %3525 = vmatprep.subr.bf16.mxu0 %v7689_v11 }
 0x6e6   : > { %3404 = vmatpush2.bf16.msra.mxu1 %v8871_v61  ;;  %v7717_v61 = vld [vmem:[%s8346_s5 + $0x244] ss:$24 sps:$4 sm:$0xff]  }
 0x6e7   : > { %3405 = vmatprep.subr.bf16.mxu1 %v7291_v33  ;;  %3526 = vmatpush2.bf16.msra.mxu0 %v7697_v62  ;;  %v7711_v33 = vld [vmem:[%s8346_s5 + $0x270] ss:$24 sps:$4 sm:$0xff]  }
 0x6e8   : > { %3527 = vmatprep.subr.bf16.mxu0 %v7703_v55 }
 0x6ea   : > { %3406 = vmatpush2.bf16.msra.mxu1 %v8873_v2  ;;  %v7731_v2 = vld [vmem:[%s8346_s5 + $0x214] ss:$24 sps:$4 sm:$0xff]  }
 0x6eb   : > { %3407 = vmatprep.subr.bf16.mxu1 %v7305_v22  ;;  %3528 = vmatpush2.bf16.msra.mxu0 %v7711_v33  ;;  %v7725_v22 = vld [vmem:[%s8346_s5 + $0x240] ss:$24 sps:$4 sm:$0xff]  }
 0x6ec   : > { %3529 = vmatprep.subr.bf16.mxu0 %v7717_v61 }
 0x6ee   : > { %3408 = vmatpush2.bf16.msra.mxu1 %v8876_v20  ;;  %v7739_v20 = vld [vmem:[%s8346_s5 + $0x210] ss:$24 sps:$4 sm:$0xff]  }
 0x6ef   : > { %3409 = vmatprep.subr.bf16.mxu1 %v8877_v57  ;;  %3530 = vmatpush2.bf16.msra.mxu0 %v7725_v22  ;;  %v7745_v57 = vld [vmem:[%s8346_s5 + $0x1e4] ss:$24 sps:$4 sm:$0xff]  }
 0x6f0   : > { %3531 = vmatprep.subr.bf16.mxu0 %v7731_v2 }
 0x6f2   : > { %3410 = vmatpush2.bf16.msra.mxu1 %v8880_v53  ;;  %v7753_v53 = vld [vmem:[%s8346_s5 + $0x1e0] ss:$24 sps:$4 sm:$0xff]  }
 0x6f3   : > { %3411 = vmatprep.subr.bf16.mxu1 %v8881_v5  ;;  %3532 = vmatpush2.bf16.msra.mxu0 %v7739_v20  ;;  %v7759_v5 = vld [vmem:[%s8346_s5 + $0x1b4] ss:$24 sps:$4 sm:$0xff]  }
 0x6f4   : > { %3533 = vmatprep.subr.bf16.mxu0 %v7745_v57 }
 0x6f6   : > { %3412 = vmatpush2.bf16.msra.mxu1 %v8884_v28  ;;  %v7767_v28 = vld [vmem:[%s8346_s5 + $0x1b0] ss:$24 sps:$4 sm:$0xff]  }
 0x6f7   : > { %3413 = vmatprep.subr.bf16.mxu1 %v8885_v36  ;;  %3534 = vmatpush2.bf16.msra.mxu0 %v7753_v53  ;;  %v7773_v36 = vld [vmem:[%s8346_s5 + $0x184] ss:$24 sps:$4 sm:$0xff]  }
 0x6f8   : > { %3535 = vmatprep.subr.bf16.mxu0 %v7759_v5 }
 0x6fa   : > { %3414 = vmatpush2.bf16.msra.mxu1 %v8888_v52  ;;  %v7780_v52 = vld [vmem:[%s8346_s5 + $0x15c] ss:$24 sps:$4 sm:$0xff]  }
 0x6fb   : > { %3415 = vmatprep.subr.bf16.mxu1 %v8889_v37  ;;  %3536 = vmatpush2.bf16.msra.mxu0 %v7767_v28  ;;  %v7786_v37 = vld [vmem:[%s8346_s5 + $0x180] ss:$24 sps:$4 sm:$0xff]  }
 0x6fc   : > { %3537 = vmatprep.subr.bf16.mxu0 %v7773_v36 }
 0x6fe   : > { %3416 = vmatpush2.bf16.msra.mxu1 %v8892_v7  ;;  %v7799_v7 = vld [vmem:[%s8346_s5 + $0x158] ss:$24 sps:$4 sm:$0xff]  }
 0x6ff   : > { %3548 = vmatprep.subr.bf16.mxu1 %v7780_v52  ;;  %3538 = vmatpush2.bf16.msra.mxu0 %v7786_v37  ;;  %8933 = vst [vmem:[#allocation32_spill] sm:$0xff] %v7799_v7 }
 0x700   : > { %3589 = vmatprep.subr.bf16.mxu0 %v7792_v15 }
 0x701   : > { %3418 = vmatmul.mubr.bf16.vlgmr.msra.gmra.mxu1 %v7562_v10  ;;  %v7889_v10 = vld [vmem:[%s8346_s5 + $0x2dc] ss:$24 sps:$4 sm:$0xff]  }
 0x702   : > { %3549 = vmatpush1.bf16.msra.mxu1 %v7799_v7  ;;  %8948 = vst [vmem:[#allocation5_spill] sm:$0xff] %v7889_v10 }
 0x703   : > { %3550 = vmatprep.subr.bf16.mxu1 %v7805_v17 }
 0x706   : > { %3551 = vmatpush1.bf16.msra.mxu1 %v7811_v12 }
 0x707   : > { %3552 = vmatprep.subr.bf16.mxu1 %v7817_v21 }
 0x70a   : > { %3553 = vmatpush1.bf16.msra.mxu1 %v7823_v49 }
 0x70b   : > { %3554 = vmatprep.subr.bf16.mxu1 %v7829_v50 }
 0x70e   : > { %3555 = vmatpush1.bf16.msra.mxu1 %v7835_v43 }
 0x70f   : > { %3556 = vmatprep.subr.bf16.mxu1 %v7841_v26 }
 0x712   : > { %3557 = vmatpush1.bf16.msra.mxu1 %v7847_v32 }
 0x713   : > { %3558 = vmatprep.subr.bf16.mxu1 %v7853_v58 }
 0x716   : > { %3559 = vmatpush1.bf16.msra.mxu1 %v7859_v29 }
 0x717   : > { %3560 = vmatprep.subr.bf16.mxu1 %v7865_v51 }
 0x71a   : > { %3561 = vmatpush1.bf16.msra.mxu1 %v7871_v40  ;;  %v7895_v40 = vld [vmem:[%s8346_s5 + $0x2d8] ss:$24 sps:$4 sm:$0xff]  }
 0x71b   : > { %3562 = vmatprep.subr.bf16.mxu1 %v7877_v34  ;;  %8949 = vst [vmem:[#allocation22_spill] sm:$0xff] %v7895_v40  ;;  %v7901_v34 = vld [vmem:[%s8346_s5 + $0x2ac] ss:$24 sps:$4 sm:$0xff]  }
 0x71c   : > { %8950 = vst [vmem:[#allocation8_spill] sm:$0xff] %v7901_v34 }
 0x71e   : > { %3563 = vmatpush1.bf16.msra.mxu1 %v7883_v44  ;;  %v7907_v44 = vld [vmem:[%s8346_s5 + $0x2a8] ss:$24 sps:$4 sm:$0xff]  }
 0x71f   : > { %3564 = vmatprep.subr.bf16.mxu1 %v7889_v10  ;;  %8951 = vst [vmem:[#allocation47_spill] sm:$0xff] %v7907_v44  ;;  %v7913_v10 = vld [vmem:[%s8346_s5 + $0x27c] ss:$24 sps:$4 sm:$0xff]  }
 0x720   : > { %8952 = vst [vmem:[#allocation23_spill] sm:$0xff] %v7913_v10 }
 0x722   : > { %3565 = vmatpush2.bf16.msra.mxu1 %v7895_v40  ;;  %v7919_v40 = vld [vmem:[%s8346_s5 + $0x278] ss:$24 sps:$4 sm:$0xff]  }
 0x723   : > { %3566 = vmatprep.subr.bf16.mxu1 %v7901_v34  ;;  %8953 = vst [vmem:[#allocation24_spill] sm:$0xff] %v7919_v40  ;;  %v7925_v34 = vld [vmem:[%s8346_s5 + $0x24c] ss:$24 sps:$4 sm:$0xff]  }
 0x724   : > { %8954 = vst [vmem:[#allocation48_spill] sm:$0xff] %v7925_v34 }
 0x726   : > { %3567 = vmatpush2.bf16.msra.mxu1 %v7907_v44  ;;  %v7931_v44 = vld [vmem:[%s8346_s5 + $0x248] ss:$24 sps:$4 sm:$0xff]  }
 0x727   : > { %3568 = vmatprep.subr.bf16.mxu1 %v7913_v10  ;;  %8955 = vst [vmem:[#allocation9_spill] sm:$0xff] %v7931_v44  ;;  %v7937_v10 = vld [vmem:[%s8346_s5 + $0x21c] ss:$24 sps:$4 sm:$0xff]  }
 0x728   : > { %8956 = vst [vmem:[#allocation25_spill] sm:$0xff] %v7937_v10 }
 0x72a   : > { %3569 = vmatpush2.bf16.msra.mxu1 %v7919_v40  ;;  %v7943_v40 = vld [vmem:[%s8346_s5 + $0x218] ss:$24 sps:$4 sm:$0xff]  }
 0x72b   : > { %3570 = vmatprep.subr.bf16.mxu1 %v7925_v34  ;;  %8957 = vst [vmem:[#allocation26_spill] sm:$0xff] %v7943_v40  ;;  %v7949_v34 = vld [vmem:[%s8346_s5 + $0x1ec] ss:$24 sps:$4 sm:$0xff]  }
 0x72c   : > { %8958 = vst [vmem:[#allocation11_spill] sm:$0xff] %v7949_v34 }
 0x72e   : > { %3571 = vmatpush2.bf16.msra.mxu1 %v7931_v44  ;;  %v7955_v44 = vld [vmem:[%s8346_s5 + $0x1e8] ss:$24 sps:$4 sm:$0xff]  }
 0x72f   : > { %3572 = vmatprep.subr.bf16.mxu1 %v7937_v10  ;;  %8959 = vst [vmem:[#allocation51_spill] sm:$0xff] %v7955_v44  ;;  %v7961_v10 = vld [vmem:[%s8346_s5 + $0x1bc] ss:$24 sps:$4 sm:$0xff]  }
 0x730   : > { %8960 = vst [vmem:[#allocation27_spill] sm:$0xff] %v7961_v10 }
 0x732   : > { %3573 = vmatpush2.bf16.msra.mxu1 %v7943_v40  ;;  %v7967_v40 = vld [vmem:[%s8346_s5 + $0x1b8] ss:$24 sps:$4 sm:$0xff]  }
 0x733   : > { %3574 = vmatprep.subr.bf16.mxu1 %v7949_v34  ;;  %8961 = vst [vmem:[#allocation28_spill] sm:$0xff] %v7967_v40  ;;  %v7973_v34 = vld [vmem:[%s8346_s5 + $0x18c] ss:$24 sps:$4 sm:$0xff]  }
 0x734   : > { %8962 = vst [vmem:[#allocation54_spill] sm:$0xff] %v7973_v34 }
 0x736   : > { %3575 = vmatpush2.bf16.msra.mxu1 %v7955_v44  ;;  %v7979_v44 = vld [vmem:[%s8346_s5 + $0x188] ss:$24 sps:$4 sm:$0xff]  }
 0x737   : > { %3576 = vmatprep.subr.bf16.mxu1 %v7961_v10  ;;  %8963 = vst [vmem:[#allocation13_spill] sm:$0xff] %v7979_v44 }
 0x73a   : > { %3577 = vmatpush2.bf16.msra.mxu1 %v7967_v40 }
 0x73b   : > { %3578 = vmatprep.subr.bf16.mxu1 %v7973_v34 }
 0x73e   : > { %3579 = vmatpush2.bf16.msra.mxu1 %v7979_v44 }
 0x73f   : > { %3711 = vmatprep.subr.bf16.mxu1 %v7535_v47 }
 0x781   : > { %v3337_v10 = vpop.f32.mrf.mxu1  ;;  %v3378_v51 = vpop.f32.mrf.mxu0 }
 0x782   : > { %v3338_v50 = vadd.f32 %v3337_v10, %v6513_v13  ;;  %v3379_v47 = vadd.f32 %v3378_v51, %v6535_v31 }
 0x783   : > { %v3339_v29 = vpop.f32.mrf.mxu1  ;;  %v3380_v40 = vpop.f32.mrf.mxu0 }
 0x784   : > { %v3340_v34 = vadd.f32 %v3339_v29, %v6519_v45  ;;  %v3428_v49 = vrot.slane %v3338_v50, 6 }
 0x785   : > { %v3341_v58 = vpop.f32.mrf.mxu1  ;;  %v3382_v32 = vpop.f32.mrf.mxu0 }
 0x786   : > { %v3429_v21 = vrot.slane %v3340_v34, 6  ;;  %v3432_v12 = vadd.f32 %v3428_v49, %v8927_v24  ;;  %v3381_v58 = vadd.f32 %v3380_v40, %v6541_v25  ;;  %v3448_v32 = vrot.slane %v3379_v47, 6 }
 0x787   : > { %v3342_v26 = vpop.f32.mrf.mxu1  ;;  %v3383_v43 = vpop.f32.mrf.mxu0 }
 0x788   : > { %v3433_v44 = vadd.f32 %v3429_v21, %v8928_v46  ;;  %v4277_v17 = vmul.f32 -1.442695, %v3432_v12  ;;  %v3449_v43 = vrot.slane %v3381_v58, 6  ;;  %v3452_v26 = vadd.f32 %v3448_v32, %v8929_v54 }
 0x78a   : > { %v4278_v7 = vmul.f32 -1.442695, %v3433_v44  ;;  %4840 = vpow2.f32 %v4277_v17  ;;  %v3453_v29 = vadd.f32 %v3449_v43, %v8930_v38  ;;  %v4279_v50 = vmul.f32 -1.442695, %v3452_v26 }
 0x78c   : > { %4842 = vpow2.f32 %v4278_v7  ;;  %v4280_v34 = vmul.f32 -1.442695, %v3453_v29 }
 0x78d   : > { %4844 = vpow2.f32 %v4279_v50 }
 0x78e   : > { %4846 = vpow2.f32 %v4280_v34 }
 0x797   : > { %v4841_v10 = vpop.eup %4840 }
 0x798   : > { %v3440_v21 = vadd.f32 1.0, %v4841_v10 }
 0x799   : > { %v4843_v49 = vpop.eup %4842 }
 0x79a   : > { %v3441_v12 = vadd.f32 1.0, %v4843_v49  ;;  %4848 = vrcp.f32 %v3440_v21  ;;  %v4845_v17 = vpop.eup %4844 }
 0x79b   : > { %v4847_v51 = vpop.eup %4846  ;;  %v3460_v44 = vadd.f32 1.0, %v4845_v17 }
 0x79c   : > { %4850 = vrcp.f32 %v3441_v12  ;;  %v3461_v58 = vadd.f32 1.0, %v4847_v51 }
 0x79d   : > { %4852 = vrcp.f32 %v3460_v44  ;;  %v3495_v44 = vstv %s3494_s11 }
 0x79e   : > { %4854 = vrcp.f32 %v3461_v58  ;;  %vm3496_vm4 = vcmp.eq.s32.totalorder %v3495_v44, 1  ;;  %v8967_v44 = vld [vmem:[#allocation38_spill] sm:$0xff] }
 0x7a7   : > { %v4849_v26 = vpop.eup %4848 }
 0x7a9   : > { %v4851_v10 = vpop.eup %4850 }
 0x7aa   : > { %v4853_v51 = vpop.eup %4852 }
 0x7c1   : > { %v3419_v40 = vpop.f32.mrf.mxu1 }
 0x7c2   : > { %v3420_v7 = vadd.f32 %v3419_v40, %v6557_v35  ;;  %v4855_v40 = vpop.eup %4854 }
 0x7c3   : > { %v3421_v47 = vpop.f32.mrf.mxu1  ;;  %v3479_v58 = vsub.f32 1.0, %v4855_v40 }
 0x7c4   : > { %v3468_v32 = vrot.slane %v3420_v7, 6  ;;  %v3422_v43 = vadd.f32 %v3421_v47, %v8865_v6  ;;  %v3484_v7 = vrot.slane %v7554_v42, 6  ;;  %v3478_v47 = vsub.f32 1.0, %v4853_v51 }
 0x7c5   : > { %v3423_v29 = vpop.f32.mrf.mxu1 }
 0x7c6   : > { %v3472_v50 = vmul.f32 %v4849_v26, %v3468_v32  ;;  %v3469_v34 = vrot.slane %v3422_v43, 6  ;;  %v3485_v43 = vrot.slane %v7556_v3, 6  ;;  %v3488_v29 = vmul.f32 %v4853_v51, %v3484_v7  ;;  %v8014_v51 = vld [vmem:[%s8346_s5 + $0x160] ss:$24 sps:$4 sm:$0xff]  }
 0x7c7   : > { %v3424_v49 = vpop.f32.mrf.mxu1 }
 0x7c8   : > { %v3474_v21 = vadd.f32 %v3472_v50, %v8931_v30  ;;  %v3473_v12 = vmul.f32 %v4851_v10, %v3469_v34  ;;  %v3489_v10 = vmul.f32 %v4855_v40, %v3485_v43  ;;  %v8028_v40 = vld [vmem:[%s8346_s5 + $0x130] ss:$24 sps:$4 sm:$0xff]  }
 0x7ca   : > { %4856 = vtanh.f32 %v3474_v21  ;;  %v3475_v17 = vadd.f32 %v3473_v12, %v8932_v59 }
 0x7cc   : > { %4858 = vtanh.f32 %v3475_v17 }
 0x7d7   : > { %v4857_v32 = vpop.eup %4856 }
 0x7d8   : > { %v3480_v26 = vmul.f32 %v4857_v32, %v3478_v47  ;;  %v8968_v47 = vld [vmem:[#allocation40_spill] sm:$0xff]  ;;  %v8969_v32 = vld [vmem:[#allocation42_spill] sm:$0xff] }
 0x7d9   : > { %v4859_v50 = vpop.eup %4858 }
 0x7da   : > { %v3481_v34 = vmul.f32 %v4859_v50, %v3479_v58  ;;  %v3490_v49 = vadd.f32 %v3488_v29, %v3480_v26  ;;  %v8975_v58 = vld [vmem:[#allocation50_spill] sm:$0xff]  ;;  %v8976_v26 = vld [vmem:[#allocation20_spill] sm:$0xff]  ;;  %v8977_v29 = vld [vmem:[#allocation53_spill] sm:$0xff] }
 0x7db   : > { %v8978_v50 = vld [vmem:[#allocation21_spill] sm:$0xff] }
 0x7dc   : > { %v3491_v21 = vadd.f32 %v3489_v10, %v3481_v34  ;;  %v7999_v12 = vsel %vm3496_vm4, %v3490_v49, %v3484_v7  ;;  %v8034_v7 = vld [vmem:[%s8346_s5 + $0x104] ss:$24 sps:$4 sm:$0xff]   ;;  %v8980_v10 = vld [vmem:[#allocation22_spill] sm:$0xff] }
 0x7dd   : > { %v3499_v42 = vpack.c.bf16 %v7999_v12, %v7999_v12  ;;  %v8979_v34 = vld [vmem:[#allocation5_spill] sm:$0xff]  ;;  %v8981_v49 = vld [vmem:[#allocation8_spill] sm:$0xff] }
 0x7de   : > { %v8001_v17 = vsel %vm3496_vm4, %v3491_v21, %v3485_v43  ;;  %v8970_v43 = vld [vmem:[#allocation44_spill] sm:$0xff]  ;;  %v8982_v21 = vld [vmem:[#allocation47_spill] sm:$0xff] }
 0x7df   : > { %v3500_v59 = vpack.c.bf16 %v8001_v17, %v8001_v17  ;;  %v8007_v30 = vrot.slane %v3499_v42, 1  ;;  %v8983_v42 = vld [vmem:[#allocation23_spill] sm:$0xff] }
 0x7e1   : > { %v3504_v3 = vrot.slane %v3500_v59, 1  ;;  %v8020_v59 = vld [vmem:[%s8346_s5 + $0x134] ss:$24 sps:$4 sm:$0xff]  }
 0x7e3   : > { %3539 = vmatprep.mubr.bf16.mxu0 %v3504_v3  ;;  %3580 = vmatprep.mubr.bf16.mxu1 %v3504_v3 }
 0x7e4   : > { %3540 = vmatmul.mubr.bf16.vlgmr.msra.gmra.mxu0 %v8007_v30  ;;  %3581 = vmatmul.mubr.bf16.vlgmr.msra.gmra.mxu1 %v8007_v30 }
 0x7e5   : > { %3590 = vmatpush1.bf16.msra.mxu0 %v8014_v51  ;;  %3621 = vmatprep.mubr.bf16.mxu0 %v3504_v3  ;;  %v8984_v3 = vld [vmem:[#allocation24_spill] sm:$0xff] }
 0x7e6   : > { %3591 = vmatprep.subr.bf16.mxu0 %v8020_v59  ;;  %3712 = vmatpush1.bf16.msra.mxu1 %v7571_v18  ;;  %v8042_v18 = vld [vmem:[%s8346_s5 + $0x100] ss:$24 sps:$4 sm:$0xff]  }
 0x7e7   : > { %3713 = vmatprep.subr.bf16.mxu1 %v7577_v39  ;;  %v8048_v39 = vld [vmem:[%s8346_s5 + $0xd4] ss:$24 sps:$4 sm:$0xff]  }
 0x7e9   : > { %3592 = vmatpush1.bf16.msra.mxu0 %v8028_v40 }
 0x7ea   : > { %3593 = vmatprep.subr.bf16.mxu0 %v8034_v7  ;;  %3714 = vmatpush1.bf16.msra.mxu1 %v7585_v19  ;;  %v8056_v19 = vld [vmem:[%s8346_s5 + $0xd0] ss:$24 sps:$4 sm:$0xff]  }
 0x7eb   : > { %3715 = vmatprep.subr.bf16.mxu1 %v7591_v41  ;;  %v8062_v41 = vld [vmem:[%s8346_s5 + $0xa4] ss:$24 sps:$4 sm:$0xff]  }
 0x7ed   : > { %3594 = vmatpush1.bf16.msra.mxu0 %v8042_v18 }
 0x7ee   : > { %3595 = vmatprep.subr.bf16.mxu0 %v8048_v39  ;;  %3716 = vmatpush1.bf16.msra.mxu1 %v7599_v63  ;;  %v8070_v63 = vld [vmem:[%s8346_s5 + $0xa0] ss:$24 sps:$4 sm:$0xff]  }
 0x7ef   : > { %3717 = vmatprep.subr.bf16.mxu1 %v7605_v14  ;;  %v8076_v14 = vld [vmem:[%s8346_s5 + $0x74] ss:$24 sps:$4 sm:$0xff]  }
 0x7f1   : > { %3596 = vmatpush1.bf16.msra.mxu0 %v8056_v19 }
 0x7f2   : > { %3597 = vmatprep.subr.bf16.mxu0 %v8062_v41  ;;  %3718 = vmatpush1.bf16.msra.mxu1 %v7613_v27  ;;  %v8084_v27 = vld [vmem:[%s8346_s5 + $0x70] ss:$24 sps:$4 sm:$0xff]  }
 0x7f3   : > { %3719 = vmatprep.subr.bf16.mxu1 %v7619_v48  ;;  %v8090_v48 = vld [vmem:[%s8346_s5 + $0x44] ss:$24 sps:$4 sm:$0xff]  }
 0x7f5   : > { %3598 = vmatpush1.bf16.msra.mxu0 %v8070_v63 }
 0x7f6   : > { %3599 = vmatprep.subr.bf16.mxu0 %v8076_v14  ;;  %3720 = vmatpush1.bf16.msra.mxu1 %v7627_v16  ;;  %v8098_v16 = vld [vmem:[%s8346_s5 + $0x40] ss:$24 sps:$4 sm:$0xff]  }
 0x7f7   : > { %3721 = vmatprep.subr.bf16.mxu1 %v7633_v23  ;;  %v8104_v23 = vld [vmem:[%s8346_s5 + $0x14] ss:$24 sps:$4 sm:$0xff]  }
 0x7f9   : > { %3600 = vmatpush1.bf16.msra.mxu0 %v8084_v27 }
 0x7fa   : > { %3601 = vmatprep.subr.bf16.mxu0 %v8090_v48  ;;  %3722 = vmatpush1.bf16.msra.mxu1 %v7641_v8  ;;  %v8112_v8 = vld [vmem:[%s8346_s5 + $0x10] ss:$24 sps:$4 sm:$0xff]  }
 0x7fb   : > { %3723 = vmatprep.subr.bf16.mxu1 %v7647_v56  ;;  %v8118_v56 = vld [vmem:[%s8346_s5 + $0x2e4] ss:$24 sps:$4 sm:$0xff]  }
 0x7fd   : > { %3602 = vmatpush1.bf16.msra.mxu0 %v8098_v16 }
 0x7fe   : > { %3603 = vmatprep.subr.bf16.mxu0 %v8104_v23  ;;  %3724 = vmatpush1.bf16.msra.mxu1 %v7655_v4  ;;  %v8126_v4 = vld [vmem:[%s8346_s5 + $0x2e0] ss:$24 sps:$4 sm:$0xff]  }
 0x7ff   : > { %3725 = vmatprep.subr.bf16.mxu1 %v7661_v60  ;;  %v8132_v60 = vld [vmem:[%s8346_s5 + $0x2b4] ss:$24 sps:$4 sm:$0xff]  }
 0x801   : > { %3604 = vmatpush1.bf16.msra.mxu0 %v8112_v8 }
 0x802   : > { %3605 = vmatprep.subr.bf16.mxu0 %v8118_v56  ;;  %3726 = vmatpush1.bf16.msra.mxu1 %v7669_v1  ;;  %v8140_v1 = vld [vmem:[%s8346_s5 + $0x2b0] ss:$24 sps:$4 sm:$0xff]  }
 0x803   : > { %3727 = vmatprep.subr.bf16.mxu1 %v7675_v9  ;;  %v8146_v9 = vld [vmem:[%s8346_s5 + $0x284] ss:$24 sps:$4 sm:$0xff]  }
 0x805   : > { %3606 = vmatpush2.bf16.msra.mxu0 %v8126_v4 }
 0x806   : > { %3607 = vmatprep.subr.bf16.mxu0 %v8132_v60  ;;  %3728 = vmatpush2.bf16.msra.mxu1 %v7683_v0  ;;  %v8154_v0 = vld [vmem:[%s8346_s5 + $0x280] ss:$24 sps:$4 sm:$0xff]  }
 0x807   : > { %3729 = vmatprep.subr.bf16.mxu1 %v7689_v11  ;;  %v8160_v11 = vld [vmem:[%s8346_s5 + $0x254] ss:$24 sps:$4 sm:$0xff]  }
 0x809   : > { %3608 = vmatpush2.bf16.msra.mxu0 %v8140_v1 }
 0x80a   : > { %3609 = vmatprep.subr.bf16.mxu0 %v8146_v9  ;;  %3730 = vmatpush2.bf16.msra.mxu1 %v7697_v62  ;;  %v8168_v62 = vld [vmem:[%s8346_s5 + $0x250] ss:$24 sps:$4 sm:$0xff]  }
 0x80b   : > { %3731 = vmatprep.subr.bf16.mxu1 %v7703_v55  ;;  %v8174_v55 = vld [vmem:[%s8346_s5 + $0x224] ss:$24 sps:$4 sm:$0xff]  }
 0x80d   : > { %3610 = vmatpush2.bf16.msra.mxu0 %v8154_v0 }
 0x80e   : > { %3611 = vmatprep.subr.bf16.mxu0 %v8160_v11  ;;  %3732 = vmatpush2.bf16.msra.mxu1 %v7711_v33  ;;  %v8182_v33 = vld [vmem:[%s8346_s5 + $0x220] ss:$24 sps:$4 sm:$0xff]  }
 0x80f   : > { %3733 = vmatprep.subr.bf16.mxu1 %v7717_v61  ;;  %v8188_v61 = vld [vmem:[%s8346_s5 + $0x1f4] ss:$24 sps:$4 sm:$0xff]  }
 0x811   : > { %3612 = vmatpush2.bf16.msra.mxu0 %v8168_v62 }
 0x812   : > { %3613 = vmatprep.subr.bf16.mxu0 %v8174_v55  ;;  %3734 = vmatpush2.bf16.msra.mxu1 %v7725_v22  ;;  %v8196_v22 = vld [vmem:[%s8346_s5 + $0x1f0] ss:$24 sps:$4 sm:$0xff]  }
 0x813   : > { %3735 = vmatprep.subr.bf16.mxu1 %v7731_v2  ;;  %v8202_v2 = vld [vmem:[%s8346_s5 + $0x1c4] ss:$24 sps:$4 sm:$0xff]  }
 0x815   : > { %3614 = vmatpush2.bf16.msra.mxu0 %v8182_v33 }
 0x816   : > { %3615 = vmatprep.subr.bf16.mxu0 %v8188_v61  ;;  %3736 = vmatpush2.bf16.msra.mxu1 %v7739_v20  ;;  %v8210_v20 = vld [vmem:[%s8346_s5 + $0x1c0] ss:$24 sps:$4 sm:$0xff]  }
 0x817   : > { %3737 = vmatprep.subr.bf16.mxu1 %v7745_v57  ;;  %v8216_v57 = vld [vmem:[%s8346_s5 + $0x194] ss:$24 sps:$4 sm:$0xff]  }
 0x819   : > { %3616 = vmatpush2.bf16.msra.mxu0 %v8196_v22 }
 0x81a   : > { %3617 = vmatprep.subr.bf16.mxu0 %v8202_v2  ;;  %3738 = vmatpush2.bf16.msra.mxu1 %v7753_v53  ;;  %v8224_v53 = vld [vmem:[%s8346_s5 + $0x190] ss:$24 sps:$4 sm:$0xff]  }
 0x81b   : > { %3739 = vmatprep.subr.bf16.mxu1 %v7759_v5  ;;  %v8964_v5 = vld [vmem:[#allocation32_spill] sm:$0xff] }
 0x81d   : > { %3618 = vmatpush2.bf16.msra.mxu0 %v8210_v20 }
 0x81e   : > { %3619 = vmatprep.subr.bf16.mxu0 %v8216_v57  ;;  %3740 = vmatpush2.bf16.msra.mxu1 %v7767_v28  ;;  %v8965_v28 = vld [vmem:[#allocation34_spill] sm:$0xff] }
 0x81f   : > { %3741 = vmatprep.subr.bf16.mxu1 %v7773_v36  ;;  %v8966_v36 = vld [vmem:[#allocation36_spill] sm:$0xff] }
 0x821   : > { %3620 = vmatpush2.bf16.msra.mxu0 %v8224_v53 }
 0x822   : > { %3752 = vmatprep.subr.bf16.mxu0 %v7780_v52  ;;  %3742 = vmatpush2.bf16.msra.mxu1 %v7786_v37  ;;  %v8971_v52 = vld [vmem:[#allocation52_spill] sm:$0xff]  ;;  %v8972_v37 = vld [vmem:[#allocation49_spill] sm:$0xff] }
 0x823   : > { %3793 = vmatprep.subr.bf16.mxu1 %v7792_v15  ;;  %v8973_v15 = vld [vmem:[#allocation6_spill] sm:$0xff] }
 0x824   : > { %3622 = vmatmul.mubr.bf16.vlgmr.msra.gmra.mxu0 %v8007_v30  ;;  %v8974_v30 = vld [vmem:[#allocation79_spill] sm:$0xff] }
 0x825   : > { %3753 = vmatpush1.bf16.msra.mxu0 %v8964_v5  ;;  %v8985_v5 = vld [vmem:[#allocation48_spill] sm:$0xff] }
 0x826   : > { %3754 = vmatprep.subr.bf16.mxu0 %v8965_v28  ;;  %v8986_v28 = vld [vmem:[#allocation9_spill] sm:$0xff] }
 0x829   : > { %3755 = vmatpush1.bf16.msra.mxu0 %v8966_v36  ;;  %v8987_v36 = vld [vmem:[#allocation25_spill] sm:$0xff] }
 0x82a   : > { %3756 = vmatprep.subr.bf16.mxu0 %v8967_v44  ;;  %v8988_v44 = vld [vmem:[#allocation26_spill] sm:$0xff] }
 0x82d   : > { %3757 = vmatpush1.bf16.msra.mxu0 %v8968_v47  ;;  %v8989_v47 = vld [vmem:[#allocation11_spill] sm:$0xff] }
 0x82e   : > { %3758 = vmatprep.subr.bf16.mxu0 %v8969_v32  ;;  %v8990_v32 = vld [vmem:[#allocation51_spill] sm:$0xff] }
 0x831   : > { %3759 = vmatpush1.bf16.msra.mxu0 %v8970_v43  ;;  %v8991_v43 = vld [vmem:[#allocation27_spill] sm:$0xff] }
 0x832   : > { %3760 = vmatprep.subr.bf16.mxu0 %v8971_v52  ;;  %v8992_v52 = vld [vmem:[#allocation28_spill] sm:$0xff] }
 0x835   : > { %3761 = vmatpush1.bf16.msra.mxu0 %v8972_v37  ;;  %v8993_v37 = vld [vmem:[#allocation54_spill] sm:$0xff] }
 0x836   : > { %3762 = vmatprep.subr.bf16.mxu0 %v8973_v15  ;;  %v8994_v15 = vld [vmem:[#allocation13_spill] sm:$0xff] }
 0x839   : > { %3763 = vmatpush1.bf16.msra.mxu0 %v8974_v30 }
 0x83a   : > { %3764 = vmatprep.subr.bf16.mxu0 %v8975_v58 }
 0x83d   : > { %3765 = vmatpush1.bf16.msra.mxu0 %v8976_v26 }
 0x83e   : > { %3766 = vmatprep.subr.bf16.mxu0 %v8977_v29 }
 0x841   : > { %3767 = vmatpush1.bf16.msra.mxu0 %v8978_v50 }
 0x842   : > { %3768 = vmatprep.subr.bf16.mxu0 %v8979_v34 }
 0x845   : > { %3769 = vmatpush2.bf16.msra.mxu0 %v8980_v10 }
 0x846   : > { %3770 = vmatprep.subr.bf16.mxu0 %v8981_v49 }
 0x849   : > { %3771 = vmatpush2.bf16.msra.mxu0 %v8982_v21 }
 0x84a   : > { %3772 = vmatprep.subr.bf16.mxu0 %v8983_v42 }
 0x84d   : > { %3773 = vmatpush2.bf16.msra.mxu0 %v8984_v3 }
 0x84e   : > { %3774 = vmatprep.subr.bf16.mxu0 %v8985_v5 }
 0x851   : > { %3775 = vmatpush2.bf16.msra.mxu0 %v8986_v28 }
 0x852   : > { %3776 = vmatprep.subr.bf16.mxu0 %v8987_v36 }
 0x855   : > { %3777 = vmatpush2.bf16.msra.mxu0 %v8988_v44 }
 0x856   : > { %3778 = vmatprep.subr.bf16.mxu0 %v8989_v47 }
 0x859   : > { %3779 = vmatpush2.bf16.msra.mxu0 %v8990_v32 }
 0x85a   : > { %3780 = vmatprep.subr.bf16.mxu0 %v8991_v43 }
 0x85d   : > { %3781 = vmatpush2.bf16.msra.mxu0 %v8992_v52 }
 0x85e   : > { %3782 = vmatprep.subr.bf16.mxu0 %v8993_v37 }
 0x861   : > { %3783 = vmatpush2.bf16.msra.mxu0 %v8994_v15 }
 0x8a4   : > { %v3541_v30 = vpop.f32.mrf.mxu0  ;;  %v3582_v58 = vpop.f32.mrf.mxu1 }
 0x8a5   : > { %v3542_v21 = vadd.f32 %v3541_v30, %v6513_v13  ;;  %v3583_v47 = vadd.f32 %v3582_v58, %v6535_v31 }
 0x8a6   : > { %v3543_v26 = vpop.f32.mrf.mxu0  ;;  %v3584_v29 = vpop.f32.mrf.mxu1 }
 0x8a7   : > { %v3544_v42 = vadd.f32 %v3543_v26, %v6519_v45  ;;  %v3632_v3 = vrot.slane %v3542_v21, 4  ;;  %v3585_v43 = vadd.f32 %v3584_v29, %v6541_v25  ;;  %v3652_v52 = vrot.slane %v3583_v47, 4 }
 0x8a8   : > { %v3545_v50 = vpop.f32.mrf.mxu0  ;;  %v3586_v34 = vpop.f32.mrf.mxu1 }
 0x8a9   : > { %v3633_v5 = vrot.slane %v3544_v42, 4  ;;  %v3636_v28 = vadd.f32 %v3632_v3, %v8927_v24  ;;  %v3653_v37 = vrot.slane %v3585_v43, 4  ;;  %v3656_v15 = vadd.f32 %v3652_v52, %v8929_v54 }
 0x8aa   : > { %v3546_v10 = vpop.f32.mrf.mxu0  ;;  %v3587_v49 = vpop.f32.mrf.mxu1 }
 0x8ab   : > { %v3637_v36 = vadd.f32 %v3633_v5, %v8928_v46  ;;  %v4281_v44 = vmul.f32 -1.442695, %v3636_v28  ;;  %v3657_v30 = vadd.f32 %v3653_v37, %v8930_v38  ;;  %v4283_v26 = vmul.f32 -1.442695, %v3656_v15 }
 0x8ad   : > { %v4282_v32 = vmul.f32 -1.442695, %v3637_v36  ;;  %4860 = vpow2.f32 %v4281_v44  ;;  %v4284_v50 = vmul.f32 -1.442695, %v3657_v30 }
 0x8af   : > { %4862 = vpow2.f32 %v4282_v32 }
 0x8b0   : > { %4864 = vpow2.f32 %v4283_v26  ;;  %v8995_v26 = vld [vmem:[#allocation80_spill] sm:$0xff] }
 0x8b1   : > { %4866 = vpow2.f32 %v4284_v50 }
 0x8ba   : > { %v4861_v34 = vpop.eup %4860 }
 0x8bb   : > { %v3644_v49 = vadd.f32 1.0, %v4861_v34 }
 0x8bc   : > { %v4863_v10 = vpop.eup %4862 }
 0x8bd   : > { %v3645_v21 = vadd.f32 1.0, %v4863_v10  ;;  %4868 = vrcp.f32 %v3644_v49  ;;  %v4865_v58 = vpop.eup %4864  ;;  %v8996_v10 = vld [vmem:[#allocation81_spill] sm:$0xff] }
 0x8be   : > { %v4867_v42 = vpop.eup %4866  ;;  %v3664_v3 = vadd.f32 1.0, %v4865_v58 }
 0x8bf   : > { %4870 = vrcp.f32 %v3645_v21  ;;  %v3665_v36 = vadd.f32 1.0, %v4867_v42  ;;  %v3688_v42 = vrot.slane %v7999_v12, 6 }
 0x8c0   : > { %4872 = vrcp.f32 %v3664_v3 }
 0x8c1   : > { %4874 = vrcp.f32 %v3665_v36 }
 0x8ca   : > { %v4869_v32 = vpop.eup %4868 }
 0x8cc   : > { %v4871_v15 = vpop.eup %4870 }
 0x8cd   : > { %v4873_v21 = vpop.eup %4872 }
 0x8ce   : > { %v4875_v58 = vpop.eup %4874  ;;  %v3682_v3 = vsub.f32 1.0, %v4873_v21 }
 0x8cf   : > { %v3683_v36 = vsub.f32 1.0, %v4875_v58 }
 0x8e4   : > { %v3623_v29 = vpop.f32.mrf.mxu0 }
 0x8e5   : > { %v3624_v5 = vadd.f32 %v3623_v29, %v6557_v35  ;;  %v3699_v29 = vstv %s3698_s15 }
 0x8e6   : > { %v3625_v28 = vpop.f32.mrf.mxu0  ;;  %vm3700_vm5 = vcmp.eq.s32.totalorder %v3699_v29, 1 }
 0x8e7   : > { %v3672_v44 = vrot.slane %v3624_v5, 4  ;;  %v3626_v47 = vadd.f32 %v3625_v28, %v8865_v6  ;;  %v3689_v28 = vrot.slane %v8001_v17, 6 }
 0x8e8   : > { %v3627_v43 = vpop.f32.mrf.mxu0 }
 0x8e9   : > { %v3676_v52 = vmul.f32 %v4869_v32, %v3672_v44  ;;  %v3673_v37 = vrot.slane %v3626_v47, 4  ;;  %v3692_v47 = vmul.f32 %v4873_v21, %v3688_v42 }
 0x8ea   : > { %v3628_v30 = vpop.f32.mrf.mxu0 }
 0x8eb   : > { %v3678_v50 = vadd.f32 %v3676_v52, %v8995_v26  ;;  %v3677_v34 = vmul.f32 %v4871_v15, %v3673_v37  ;;  %v3693_v52 = vmul.f32 %v4875_v58, %v3689_v28 }
 0x8ed   : > { %4876 = vtanh.f32 %v3678_v50  ;;  %v3679_v49 = vadd.f32 %v3677_v34, %v8996_v10 }
 0x8ef   : > { %4878 = vtanh.f32 %v3679_v49 }
 0x8fa   : > { %v4877_v5 = vpop.eup %4876 }
 0x8fb   : > { %v3684_v44 = vmul.f32 %v4877_v5, %v3682_v3 }
 0x8fc   : > { %v4879_v32 = vpop.eup %4878 }
 0x8fd   : > { %v3685_v43 = vmul.f32 %v4879_v32, %v3683_v36  ;;  %v3694_v37 = vadd.f32 %v3692_v47, %v3684_v44  ;;  %v5100_v36 = vmov 1983009808  }
 0x8fe   : > { %v3911_v44 = vunpack.c.l.s4 %v5100_v36 }
 0x8ff   : > { %v3695_v15 = vadd.f32 %v3693_v52, %v3685_v43  ;;  %v8278_v30 = vsel %vm3700_vm5, %v3694_v37, %v3688_v42 }
 0x900   : > { %v3703_v12 = vpack.c.bf16 %v8278_v30, %v8278_v30  ;;  %v3892_v47 = vrot.slane %v8278_v30, 6 }
 0x901   : > { %v8280_v50 = vsel %vm3700_vm5, %v3695_v15, %v3689_v28  ;;  %v3903_v15 = vstv %s3902_s17 }
 0x902   : > { %v3704_v34 = vpack.c.bf16 %v8280_v50, %v8280_v50  ;;  %v3707_v49 = vrot.slane %v3703_v12, 2  ;;  %v3893_v52 = vrot.slane %v8280_v50, 6  ;;  %vm3904_vm6 = vcmp.eq.s32.totalorder %v3903_v15, 1 }
 0x904   : > { %v3708_v17 = vrot.slane %v3704_v34, 2 }
 0x906   : > { %3743 = vmatprep.mubr.bf16.mxu1 %v3708_v17  ;;  %3784 = vmatprep.mubr.bf16.mxu0 %v3708_v17 }
 0x907   : > { %3744 = vmatmul.mubr.bf16.vlgmr.msra.gmra.mxu1 %v3707_v49  ;;  %3785 = vmatmul.mubr.bf16.vlgmr.msra.gmra.mxu0 %v3707_v49 }
 0x908   : > { %3794 = vmatpush1.bf16.msra.mxu1 %v8014_v51  ;;  %3825 = vmatprep.mubr.bf16.mxu1 %v3708_v17 }
 0x909   : > { %3795 = vmatprep.subr.bf16.mxu1 %v8020_v59 }
 0x90c   : > { %3796 = vmatpush1.bf16.msra.mxu1 %v8028_v40 }
 0x90d   : > { %3797 = vmatprep.subr.bf16.mxu1 %v8034_v7 }
 0x910   : > { %3798 = vmatpush1.bf16.msra.mxu1 %v8042_v18 }
 0x911   : > { %3799 = vmatprep.subr.bf16.mxu1 %v8048_v39 }
 0x914   : > { %3800 = vmatpush1.bf16.msra.mxu1 %v8056_v19 }
 0x915   : > { %3801 = vmatprep.subr.bf16.mxu1 %v8062_v41 }
 0x918   : > { %3802 = vmatpush1.bf16.msra.mxu1 %v8070_v63 }
 0x919   : > { %3803 = vmatprep.subr.bf16.mxu1 %v8076_v14 }
 0x91c   : > { %3804 = vmatpush1.bf16.msra.mxu1 %v8084_v27 }
 0x91d   : > { %3805 = vmatprep.subr.bf16.mxu1 %v8090_v48 }
 0x920   : > { %3806 = vmatpush1.bf16.msra.mxu1 %v8098_v16 }
 0x921   : > { %3807 = vmatprep.subr.bf16.mxu1 %v8104_v23 }
 0x924   : > { %3808 = vmatpush1.bf16.msra.mxu1 %v8112_v8 }
 0x925   : > { %3809 = vmatprep.subr.bf16.mxu1 %v8118_v56 }
 0x928   : > { %3810 = vmatpush2.bf16.msra.mxu1 %v8126_v4 }
 0x929   : > { %3811 = vmatprep.subr.bf16.mxu1 %v8132_v60 }
 0x92c   : > { %3812 = vmatpush2.bf16.msra.mxu1 %v8140_v1 }
 0x92d   : > { %3813 = vmatprep.subr.bf16.mxu1 %v8146_v9 }
 0x930   : > { %3814 = vmatpush2.bf16.msra.mxu1 %v8154_v0 }
 0x931   : > { %3815 = vmatprep.subr.bf16.mxu1 %v8160_v11 }
 0x934   : > { %3816 = vmatpush2.bf16.msra.mxu1 %v8168_v62 }
 0x935   : > { %3817 = vmatprep.subr.bf16.mxu1 %v8174_v55 }
 0x938   : > { %3818 = vmatpush2.bf16.msra.mxu1 %v8182_v33 }
 0x939   : > { %3819 = vmatprep.subr.bf16.mxu1 %v8188_v61 }
 0x93c   : > { %3820 = vmatpush2.bf16.msra.mxu1 %v8196_v22 }
 0x93d   : > { %3821 = vmatprep.subr.bf16.mxu1 %v8202_v2 }
 0x940   : > { %3822 = vmatpush2.bf16.msra.mxu1 %v8210_v20 }
 0x941   : > { %3823 = vmatprep.subr.bf16.mxu1 %v8216_v57 }
 0x944   : > { %3824 = vmatpush2.bf16.msra.mxu1 %v8224_v53 }
 0x947   : > { %3826 = vmatmul.mubr.bf16.vlgmr.msra.gmra.mxu1 %v3707_v49 }
 0x9c7   : > { %v3745_v51 = vpop.f32.mrf.mxu1  ;;  %v3786_v59 = vpop.f32.mrf.mxu0 }
 0x9c8   : > { %v3746_v63 = vadd.f32 %v3745_v51, %v6513_v13  ;;  %v3787_v56 = vadd.f32 %v3786_v59, %v6535_v31 }
 0x9c9   : > { %v3747_v40 = vpop.f32.mrf.mxu1  ;;  %v3788_v7 = vpop.f32.mrf.mxu0 }
 0x9ca   : > { %v3748_v14 = vadd.f32 %v3747_v40, %v6519_v45  ;;  %v3836_v27 = vrot.slane %v3746_v63, 2  ;;  %v3789_v60 = vadd.f32 %v3788_v7, %v6541_v25  ;;  %v3856_v1 = vrot.slane %v3787_v56, 2  ;;  %v8997_v40 = vld [vmem:[#allocation46_spill] sm:$0xff] }
 0x9cb   : > { %v3749_v18 = vpop.f32.mrf.mxu1  ;;  %v3790_v39 = vpop.f32.mrf.mxu0 }
 0x9cc   : > { %v3837_v48 = vrot.slane %v3748_v14, 2  ;;  %v3840_v16 = vadd.f32 %v3836_v27, %v8927_v24  ;;  %v3857_v9 = vrot.slane %v3789_v60, 2  ;;  %v3860_v13 = vadd.f32 %v3856_v1, %v8929_v54 }
 0x9cd   : > { %v3750_v19 = vpop.f32.mrf.mxu1  ;;  %v3791_v41 = vpop.f32.mrf.mxu0 }
 0x9ce   : > { %v3841_v23 = vadd.f32 %v3837_v48, %v8928_v46  ;;  %v4285_v8 = vmul.f32 -1.442695, %v3840_v16  ;;  %v3861_v45 = vadd.f32 %v3857_v9, %v8930_v38  ;;  %v4287_v0 = vmul.f32 -1.442695, %v3860_v13 }
 0x9d0   : > { %v4286_v4 = vmul.f32 -1.442695, %v3841_v23  ;;  %4880 = vpow2.f32 %v4285_v8  ;;  %v4288_v11 = vmul.f32 -1.442695, %v3861_v45 }
 0x9d2   : > { %4882 = vpow2.f32 %v4286_v4 }
 0x9d3   : > { %4884 = vpow2.f32 %v4287_v0 }
 0x9d4   : > { %4886 = vpow2.f32 %v4288_v11 }
 0x9dd   : > { %v4881_v62 = vpop.eup %4880 }
 0x9de   : > { %v3848_v46 = vadd.f32 1.0, %v4881_v62 }
 0x9df   : > { %v4883_v24 = vpop.eup %4882 }
 0x9e0   : > { %v3849_v55 = vadd.f32 1.0, %v4883_v24  ;;  %4888 = vrcp.f32 %v3848_v46  ;;  %v4885_v31 = vpop.eup %4884 }
 0x9e1   : > { %v4887_v33 = vpop.eup %4886  ;;  %v3868_v61 = vadd.f32 1.0, %v4885_v31 }
 0x9e2   : > { %4890 = vrcp.f32 %v3849_v55  ;;  %v3869_v54 = vadd.f32 1.0, %v4887_v33 }
 0x9e3   : > { %4892 = vrcp.f32 %v3868_v61 }
 0x9e4   : > { %4894 = vrcp.f32 %v3869_v54 }
 0x9ed   : > { %v4889_v57 = vpop.eup %4888 }
 0x9ef   : > { %v4891_v42 = vpop.eup %4890 }
 0x9f0   : > { %v4893_v28 = vpop.eup %4892 }
 0x9f1   : > { %v3886_v32 = vsub.f32 1.0, %v4893_v28  ;;  %v3896_v37 = vmul.f32 %v4893_v28, %v3892_v47 }
 0xa07   : > { %v3827_v25 = vpop.f32.mrf.mxu1 }
 0xa08   : > { %v3828_v22 = vadd.f32 %v3827_v25, %v6557_v35 }
 0xa09   : > { %v3829_v2 = vpop.f32.mrf.mxu1 }
 0xa0a   : > { %v3876_v38 = vrot.slane %v3828_v22, 2  ;;  %v3830_v20 = vadd.f32 %v3829_v2, %v8865_v6  ;;  %v4895_v6 = vpop.eup %4894 }
 0xa0b   : > { %v3831_v53 = vpop.f32.mrf.mxu1  ;;  %v3887_v12 = vsub.f32 1.0, %v4895_v6  ;;  %v3897_v17 = vmul.f32 %v4895_v6, %v3893_v52 }
 0xa0c   : > { %v3880_v21 = vmul.f32 %v4889_v57, %v3876_v38  ;;  %v3877_v58 = vrot.slane %v3830_v20, 2 }
 0xa0d   : > { %v3832_v29 = vpop.f32.mrf.mxu1 }
 0xa0e   : > { %v3882_v3 = vadd.f32 %v3880_v21, %v8995_v26  ;;  %v3881_v5 = vmul.f32 %v4891_v42, %v3877_v58 }
 0xa10   : > { %4896 = vtanh.f32 %v3882_v3  ;;  %v3883_v35 = vadd.f32 %v3881_v5, %v8996_v10  ;;  %v3912_v10 = vunpack.c.0.s8 %v3911_v44 }
 0xa12   : > { %4898 = vtanh.f32 %v3883_v35  ;;  %v3915_v7 = vsub.s32 %v3912_v10, %v8997_v40 }
 0xa1d   : > { %v4897_v43 = vpop.eup %4896 }
 0xa1e   : > { %v3888_v26 = vmul.f32 %v4897_v43, %v3886_v32 }
 0xa1f   : > { %v4899_v34 = vpop.eup %4898 }
 0xa20   : > { %v3898_v49 = vadd.f32 %v3896_v37, %v3888_v26  ;;  %v3889_v51 = vmul.f32 %v4899_v34, %v3887_v12 }
 0xa22   : > { %v3899_v59 = vadd.f32 %v3897_v17, %v3889_v51  ;;  %v3905_v18 = vsel %vm3904_vm6, %v3898_v49, %v3892_v47 }
 0xa24   : > { %v3906_v39 = vsel %vm3904_vm6, %v3899_v59, %v3893_v52 }
 0xa25   : > { %v3909_v30 = vcombine.high %v3905_v18, %v3906_v39 }
 0xa27   : > { %v3916_v19 = vrot.slane %v3909_v30, %v3915_v7 }
 0xa29   : > { %v3917_v41 = vcombine.high %v3916_v19, %v3916_v19 }
 0xa2b   : > { %3919 = vst [vmem:[#allocation2] sm:$0xf] %v3917_v41 }
 0xa2c PF: > { %p4289_p13 = scmp.ne.s32.totalorder %s5150_s27, 1 }
 0xa2e   : > { %3923 = sbr.rel (%p4289_p13) target bundleno = 2613 (0xa35), region = 56 }
 0xa33   : > { %v3924_v50 = vld [vmem:[#allocation2] sm:$0xf] }
 0xa34   : > { %3925 = vst [vmem:[%s8348_s7] sm:$0xf] %v3924_v50 }
 0xa35 PF: > { %s18_s26 = sadd.s32 1, %s5098_s26  }
 0xa36   : > { %p15_p0 = scmp.ge.s32.totalorder %s18_s26, 4  }
 0xa38   :  { %17 = sbr.rel (!%p15_p0) target bundleno = 2 (0x2), region = 82 }

</bundles_post_ra>
